<compile_context>
chip_gen: v6e
topology: v6e:2x2x1
jax: 0.10.0
libtpu: 0.0.40
codegen_flags: <defaults>
</compile_context>

<pallas_src>
import functools
import math

import numpy as np
import jax
import jax.numpy as jnp
from jax.experimental import pallas as pl
from jax.experimental.pallas import tpu as pltpu


# --------------------------------------------------------------------------------------
# Per-generation tiling configuration
# --------------------------------------------------------------------------------------
def _detect_vmem_bytes():
    try:
        info = pltpu.get_tpu_info()
        vmem = getattr(info, "vmem_capacity_bytes", None)
        if vmem:
            return int(vmem)
    except Exception:
        pass
    return 64 * 1024 * 1024  # conservative (v7x-sized) default


_VMEM_PHYS = _detect_vmem_bytes()
if _VMEM_PHYS >= 100 * 1024 * 1024:      # v5e / v6e: 128 MiB physical VMEM
    TM_DEFAULT = 512                     # larger row tiles -> ~85% of HBM roofline
    _VMEM_LIMIT = 64 * 1024 * 1024
else:                                    # v7x: 64 MiB physical per TensorCore
    TM_DEFAULT = 256
    _VMEM_LIMIT = 32 * 1024 * 1024

_TK_ATTN = 512                           # kv tile for the flash attention kernel
_TM_CONV = 2048                          # conv-as-matmul has tiny K/N -> bigger row tiles


def _params_rows():
    return pltpu.CompilerParams(dimension_semantics=("parallel",),
                                vmem_limit_bytes=_VMEM_LIMIT)


def _params_attn():
    return pltpu.CompilerParams(dimension_semantics=("parallel", "arbitrary"),
                                vmem_limit_bytes=_VMEM_LIMIT)


def _row_tile(M, cap=None):
    """Rows-per-tile and grid size: whole M if small, else `cap`-row tiles."""
    cap = TM_DEFAULT if cap is None else cap
    if M <= cap:
        return M, 1
    return cap, pl.cdiv(M, cap)


def _cost(flops, bytes_accessed, transcendentals=0):
    return pl.CostEstimate(flops=int(flops), transcendentals=int(transcendentals),
                           bytes_accessed=int(bytes_accessed))


# --------------------------------------------------------------------------------------
# Single-buffering of grid-invariant blocks (weights / biases / LN params).
# Feature-probed at runtime so the script always runs, even if pipeline_mode/Buffered(1)
# is unavailable on the installed JAX.
# --------------------------------------------------------------------------------------
_CONST_MODE_CACHE = []


def _probe_buffered_one():
    mode = pl.Buffered(1)

    def k(x_ref, w_ref, o_ref):
        o_ref[...] = x_ref[...] + w_ref[...]

    f = pl.pallas_call(
        k,
        grid=(2,),
        in_specs=[pl.BlockSpec((8, 128), lambda i: (i, 0)),
                  pl.BlockSpec((8, 128), lambda i: (0, 0), pipeline_mode=mode)],
        out_specs=pl.BlockSpec((8, 128), lambda i: (i, 0)),
        out_shape=jax.ShapeDtypeStruct((16, 128), jnp.float32),
    )
    out = jax.block_until_ready(f(jnp.ones((16, 128), jnp.float32),
                                  jnp.full((8, 128), 2.0, jnp.float32)))
    if not bool(jnp.all(out == 3.0)):
        raise RuntimeError("Buffered(1) probe produced wrong values")
    return mode


def _const_mode():
    if not _CONST_MODE_CACHE:
        try:
            _CONST_MODE_CACHE.append(_probe_buffered_one())
        except Exception:
            _CONST_MODE_CACHE.append(None)   # fall back to default double buffering
    return _CONST_MODE_CACHE[0]


def _const_spec(shape, index_map):
    """BlockSpec for a grid-invariant block: single-buffered when supported."""
    mode = _const_mode()
    if mode is not None:
        return pl.BlockSpec(shape, index_map, pipeline_mode=mode)
    return pl.BlockSpec(shape, index_map)


# --------------------------------------------------------------------------------------
# Pallas kernels (bf16 MXU matmuls, f32 accumulation / statistics)
# --------------------------------------------------------------------------------------
def _linear_kernel(x_ref, w_ref, b_ref, o_ref, *, relu):
    acc = jnp.dot(x_ref[...].astype(jnp.bfloat16), w_ref[...],
                  preferred_element_type=jnp.float32) + b_ref[...]
    if relu:
        acc = jnp.maximum(acc, 0.0)
    o_ref[...] = acc.astype(o_ref.dtype)


def _linear_addnorm_kernel(x_ref, w_ref, b_ref, res_ref, g_ref, be_ref, o_ref):
    # out = LayerNorm(x @ W + b + residual)   (biased variance, eps=1e-5, f32 stats)
    y = jnp.dot(x_ref[...].astype(jnp.bfloat16), w_ref[...],
                preferred_element_type=jnp.float32) + b_ref[...]
    y = y + res_ref[...].astype(jnp.float32)
    mean = jnp.mean(y, axis=-1, keepdims=True)
    var = jnp.mean((y - mean) ** 2, axis=-1, keepdims=True)
    norm = (y - mean) * jax.lax.rsqrt(var + 1e-5)
    o_ref[...] = (norm * g_ref[...] + be_ref[...]).astype(o_ref.dtype)


def _ffn_addnorm_kernel(x_ref, w1_ref, b1_ref, w2_ref, b2_ref, g_ref, be_ref, o_ref):
    # out = LayerNorm(W2 @ relu(W1 @ x + b1) + b2 + x)
    # TODO(synk): if d_ff grows beyond ~2048 on v7x, add a d_ff grid axis ('arbitrary')
    # with an f32 accumulator scratch instead of keeping W1, W2 and the (tm, d_ff) hidden
    # resident in VMEM.
    x_bf = x_ref[...].astype(jnp.bfloat16)
    h = jnp.dot(x_bf, w1_ref[...], preferred_element_type=jnp.float32) + b1_ref[...]
    h = jnp.maximum(h, 0.0)
    y = jnp.dot(h.astype(jnp.bfloat16), w2_ref[...],
                preferred_element_type=jnp.float32) + b2_ref[...]
    y = y + x_bf.astype(jnp.float32)
    mean = jnp.mean(y, axis=-1, keepdims=True)
    var = jnp.mean((y - mean) ** 2, axis=-1, keepdims=True)
    norm = (y - mean) * jax.lax.rsqrt(var + 1e-5)
    o_ref[...] = (norm * g_ref[...] + be_ref[...]).astype(o_ref.dtype)


def _flash_mha_kernel(q_ref, kv_ref, o_ref, m_sc, l_sc, acc_sc, *,
                      n_heads, d_model, k_offset, kv_len, kv_tile):
    # Flash-style attention: grid=(B, n_kv).  q_ref block (1, Lq, Wq) is resident across the
    # kv axis; kv_ref block (1, tk, Wkv) streams across Lk.  Heads are handled with a static
    # Python loop over lane slices of the fused activation (no in-kernel reshape/transpose).
    # Output is a lane-dense (Lq, d_model) row block (heads concatenated along lanes).
    # The 1/sqrt(dh) scale is folded into the Q projection weights; no causal/pad mask
    # (matches the reference mask=None call path).
    kv_i = pl.program_id(1)
    dh = d_model // n_heads

    @pl.when(kv_i == 0)
    def _init():
        m_sc[...] = jnp.full(m_sc.shape, -jnp.inf, m_sc.dtype)
        l_sc[...] = jnp.zeros(l_sc.shape, l_sc.dtype)
        acc_sc[...] = jnp.zeros(acc_sc.shape, acc_sc.dtype)

    q_all = q_ref[0]                       # (Lq, Wq)  bf16, loaded from VMEM
    kv_all = kv_ref[0]                     # (tk, Wkv) bf16

    ragged = (kv_len % kv_tile) != 0
    if ragged:
        # only emitted when the last kv tile runs past Lk: mask out-of-range scores and
        # zero the garbage V rows so 0 * garbage can never produce NaN.
        col = kv_i * kv_tile + jax.lax.broadcasted_iota(jnp.int32, (1, kv_tile), 1)
        col_valid = col < kv_len                                            # (1, tk)
        row = kv_i * kv_tile + jax.lax.broadcasted_iota(jnp.int32, (kv_tile, 1), 0)
        row_valid = row < kv_len                                            # (tk, 1)

    for h in range(n_heads):
        q_h = q_all[:, h * dh:(h + 1) * dh]                                 # (Lq, dh)
        k_h = kv_all[:, k_offset + h * dh:k_offset + (h + 1) * dh]          # (tk, dh)
        v_h = kv_all[:, k_offset + d_model + h * dh:
                     k_offset + d_model + (h + 1) * dh]                     # (tk, dh)
        s = jax.lax.dot_general(q_h, k_h, (((1,), (1,)), ((), ())),
                                preferred_element_type=jnp.float32)         # (Lq, tk)
        if ragged:
            s = jnp.where(col_valid, s, -1e30)
            v_h = jnp.where(row_valid, v_h, jnp.zeros_like(v_h))

        m_prev = m_sc[h]                                                    # (Lq, 1)
        m_new = jnp.maximum(m_prev, jnp.max(s, axis=-1, keepdims=True))
        alpha = jnp.exp(m_prev - m_new)
        p = jnp.exp(s - m_new)
        l_sc[h] = alpha * l_sc[h] + jnp.sum(p, axis=-1, keepdims=True)
        acc_sc[h] = alpha * acc_sc[h] + jax.lax.dot_general(
            p.astype(jnp.bfloat16), v_h, (((1,), (0,)), ((), ())),
            preferred_element_type=jnp.float32)                             # (Lq, dh)
        m_sc[h] = m_new

    @pl.when(kv_i == pl.num_programs(1) - 1)
    def _finalize():
        heads = [acc_sc[h] * pl.reciprocal(l_sc[h], approx=True)            # EUP, not VPU
                 for h in range(n_heads)]
        o_ref[0] = jnp.concatenate(heads, axis=-1).astype(o_ref.dtype)


# --------------------------------------------------------------------------------------
# Pallas wrappers (M-tiled grids, single-buffered VMEM-resident bf16 weights)
# --------------------------------------------------------------------------------------
def pallas_linear(x2d, w, b, relu=False, out_dtype=jnp.bfloat16, row_cap=None):
    M, K = x2d.shape
    N = w.shape[1]
    tm, gm = _row_tile(M, row_cap)
    bytes_accessed = (M * K * x2d.dtype.itemsize + K * N * w.dtype.itemsize
                      + M * N * jnp.dtype(out_dtype).itemsize)
    return pl.pallas_call(
        functools.partial(_linear_kernel, relu=relu),
        grid=(gm,),
        in_specs=[
            pl.BlockSpec((tm, K), lambda i: (i, 0)),
            _const_spec((K, N), lambda i: (0, 0)),
            _const_spec((1, N), lambda i: (0, 0)),
        ],
        out_specs=pl.BlockSpec((tm, N), lambda i: (i, 0)),
        out_shape=jax.ShapeDtypeStruct((M, N), out_dtype),
        compiler_params=_params_rows(),
        cost_estimate=_cost(2 * M * K * N, bytes_accessed),
    )(x2d, w, b.reshape(1, N))


def pallas_linear_addnorm(x2d, w, b, res2d, gamma, beta, out_dtype=jnp.bfloat16):
    M, K = x2d.shape
    N = w.shape[1]
    tm, gm = _row_tile(M)
    bytes_accessed = (M * K * x2d.dtype.itemsize + K * N * w.dtype.itemsize
                      + M * N * res2d.dtype.itemsize + M * N * jnp.dtype(out_dtype).itemsize)
    return pl.pallas_call(
        _linear_addnorm_kernel,
        grid=(gm,),
        in_specs=[
            pl.BlockSpec((tm, K), lambda i: (i, 0)),
            _const_spec((K, N), lambda i: (0, 0)),
            _const_spec((1, N), lambda i: (0, 0)),
            pl.BlockSpec((tm, N), lambda i: (i, 0)),
            _const_spec((1, N), lambda i: (0, 0)),
            _const_spec((1, N), lambda i: (0, 0)),
        ],
        out_specs=pl.BlockSpec((tm, N), lambda i: (i, 0)),
        out_shape=jax.ShapeDtypeStruct((M, N), out_dtype),
        compiler_params=_params_rows(),
        cost_estimate=_cost(2 * M * K * N, bytes_accessed),
    )(x2d, w, b.reshape(1, N), res2d, gamma.reshape(1, N), beta.reshape(1, N))


def pallas_ffn_addnorm(x2d, w1, b1, w2, b2, gamma, beta, out_dtype=jnp.bfloat16):
    M, D = x2d.shape
    H = w1.shape[1]
    tm, gm = _row_tile(M)
    bytes_accessed = (M * D * x2d.dtype.itemsize + 2 * D * H * w1.dtype.itemsize
                      + M * D * jnp.dtype(out_dtype).itemsize)
    return pl.pallas_call(
        _ffn_addnorm_kernel,
        grid=(gm,),
        in_specs=[
            pl.BlockSpec((tm, D), lambda i: (i, 0)),
            _const_spec((D, H), lambda i: (0, 0)),
            _const_spec((1, H), lambda i: (0, 0)),
            _const_spec((H, D), lambda i: (0, 0)),
            _const_spec((1, D), lambda i: (0, 0)),
            _const_spec((1, D), lambda i: (0, 0)),
            _const_spec((1, D), lambda i: (0, 0)),
        ],
        out_specs=pl.BlockSpec((tm, D), lambda i: (i, 0)),
        out_shape=jax.ShapeDtypeStruct((M, D), out_dtype),
        compiler_params=_params_rows(),
        cost_estimate=_cost(4 * M * D * H, bytes_accessed),
    )(x2d, w1, b1.reshape(1, H), w2, b2.reshape(1, D),
      gamma.reshape(1, D), beta.reshape(1, D))


def pallas_mha(q_src, kv_src, *, n_heads, d_model, k_offset):
    """Flash-style multi-head attention.

    q_src : (B, Lq, Wq)  with Q  in columns [0:d_model]                       (bf16)
    kv_src: (B, Lk, Wkv) with K in [k_offset:k_offset+D], V in the next D cols (bf16)
    Returns the context, heads re-assembled lane-dense as (B, Lq, d_model) bf16.
    """
    # TODO(synk): for extremely long utterances (Lq*3D bf16 > a few MiB) also tile Lq.
    B, Lq, Wq = q_src.shape
    _, Lk, Wkv = kv_src.shape
    dh = d_model // n_heads
    tk = min(Lk, _TK_ATTN)
    n_kv = pl.cdiv(Lk, tk)
    kernel = functools.partial(_flash_mha_kernel, n_heads=n_heads, d_model=d_model,
                               k_offset=k_offset, kv_len=Lk, kv_tile=tk)
    bytes_accessed = (q_src.size * q_src.dtype.itemsize
                      + kv_src.size * kv_src.dtype.itemsize
                      + B * Lq * d_model * 2)
    return pl.pallas_call(
        kernel,
        grid=(B, n_kv),
        in_specs=[
            pl.BlockSpec((1, Lq, Wq), lambda b, k: (b, 0, 0)),     # Q tile: resident over kv
            pl.BlockSpec((1, tk, Wkv), lambda b, k: (b, k, 0)),    # K|V stream over kv tiles
        ],
        out_specs=pl.BlockSpec((1, Lq, d_model), lambda b, k: (b, 0, 0)),
        out_shape=jax.ShapeDtypeStruct((B, Lq, d_model), jnp.bfloat16),
        scratch_shapes=[
            pltpu.VMEM((n_heads, Lq, 1), jnp.float32),    # running max  m
            pltpu.VMEM((n_heads, Lq, 1), jnp.float32),    # running denom l
            pltpu.VMEM((n_heads, Lq, dh), jnp.float32),   # running context accumulator
        ],
        compiler_params=_params_attn(),
        cost_estimate=_cost(4 * B * Lq * Lk * d_model, bytes_accessed,
                            transcendentals=B * n_heads * Lq * Lk),
    )(q_src, kv_src)


# --------------------------------------------------------------------------------------
# Model pieces (glue in JAX, compute in Pallas)
# --------------------------------------------------------------------------------------
VGG_CHANNELS = 64  # matches 3392 = 64 * (214 // 4) of the original hard-coded Linear(3392, d_model)


def positional_encoding(length, d_model):
    pos = np.arange(length)[:, None].astype(np.float64)
    i = np.arange(d_model)[None, :].astype(np.float64)
    angle = pos / np.power(10000.0, (2.0 * (i // 2)) / d_model)
    pe = np.zeros((length, d_model), dtype=np.float64)
    pe[:, 0::2] = np.sin(angle[:, 0::2])
    pe[:, 1::2] = np.cos(angle[:, 1::2])
    return jnp.asarray(pe, jnp.float32)


def vgg_extractor(params, x):
    # two [3x3 conv (pad=1) -> ReLU -> 2x2 max-pool] blocks, 64 channels each.
    # conv implemented as im2col (XLA glue, bf16) + tiled Pallas matmul+ReLU.
    # TODO(synk): conv1's K=9 contraction underfills the MXU and im2col inflates HBM traffic
    # 9x; a fused shifted-VMEM-read VPU conv with the 2x2 pool folded into the epilogue would
    # be the right kernel for real spectrogram sizes (the conv2 path, K=576, can stay on MXU).
    # NOTE: im2col tap ordering is (di, dj) outer / Cin inner; real PyTorch (Cout,Cin,kh,kw)
    # weights must be permuted to match before loading.
    B = x.shape[0]
    h = x.astype(jnp.bfloat16)[..., None]  # NHWC: (B, T, F, 1), bf16
    for blk in ("conv1", "conv2"):
        w, b = params[blk]["w"], params[blk]["b"]
        Cin = h.shape[-1]
        Tc, Fc = h.shape[1], h.shape[2]
        hp = jnp.pad(h, ((0, 0), (1, 1), (1, 1), (0, 0)))
        cols = [hp[:, di:di + Tc, dj:dj + Fc, :] for di in range(3) for dj in range(3)]
        patches = jnp.concatenate(cols, axis=-1)                 # (B, T, F, 9*Cin) bf16
        flat = patches.reshape(B * Tc * Fc, 9 * Cin)
        out = pallas_linear(flat, w, b, relu=True, row_cap=_TM_CONV)
        h = out.reshape(B, Tc, Fc, w.shape[1])
        # 2x2 max-pool (cheap reduction, kept as XLA glue)
        h = h.reshape(B, Tc // 2, 2, Fc // 2, 2, h.shape[-1]).max(axis=(2, 4))
    B2, Tp, Fp, C = h.shape
    # flatten channel-major, like torch's view of a (B, C, T', F') tensor -> (B, T', C*F')
    return h.transpose(0, 1, 3, 2).reshape(B2, Tp, C * Fp)


def self_attention(p, x, n_heads):
    # fused QKV projection; the (B, L, 3D) activation feeds the attention kernel directly
    # (no reshape/transpose HBM round-trip); returns the context as (B*L, D) bf16.
    B, L, D = x.shape
    qkv = pallas_linear(x.reshape(B * L, D), p["wqkv"], p["bqkv"])        # (B*L, 3D)
    qkv = qkv.reshape(B, L, 3 * D)                                        # free reshape
    ctx = pallas_mha(qkv, qkv, n_heads=n_heads, d_model=D, k_offset=D)    # (B, L, D)
    return ctx.reshape(B * L, D)


def cross_attention(p, x, enc, n_heads):
    B, Lq, D = x.shape
    Lk = enc.shape[1]
    q = pallas_linear(x.reshape(B * Lq, D), p["wq"], p["bq"]).reshape(B, Lq, D)
    kv = pallas_linear(enc.reshape(B * Lk, D), p["wkv"], p["bkv"]).reshape(B, Lk, 2 * D)
    ctx = pallas_mha(q, kv, n_heads=n_heads, d_model=D, k_offset=0)       # (B, Lq, D)
    return ctx.reshape(B * Lq, D)


def encoder_layer(p, x, n_heads):
    B, T, D = x.shape
    x2d = x.reshape(B * T, D)
    ctx = self_attention(p["mha"], x, n_heads)
    # fused: output projection + residual add + LayerNorm
    x2d = pallas_linear_addnorm(ctx, p["mha"]["wo"], p["mha"]["bo"], x2d,
                                p["ln1"]["g"], p["ln1"]["b"])
    # fused: FFN + residual add + LayerNorm
    x2d = pallas_ffn_addnorm(x2d, p["w1"], p["b1"], p["w2"], p["b2"],
                             p["ln2"]["g"], p["ln2"]["b"])
    return x2d.reshape(B, T, D)


def decoder_layer(p, x, enc_out, n_heads):
    B, T, D = x.shape
    x2d = x.reshape(B * T, D)
    ctx = self_attention(p["mha"], x, n_heads)
    x2d = pallas_linear_addnorm(ctx, p["mha"]["wo"], p["mha"]["bo"], x2d,
                                p["ln1"]["g"], p["ln1"]["b"])
    ctx2 = cross_attention(p["cross_mha"], x2d.reshape(B, T, D), enc_out, n_heads)
    x2d = pallas_linear_addnorm(ctx2, p["cross_mha"]["wo"], p["cross_mha"]["bo"], x2d,
                                p["ln_cross"]["g"], p["ln_cross"]["b"])
    x2d = pallas_ffn_addnorm(x2d, p["w1"], p["b1"], p["w2"], p["b2"],
                             p["ln2"]["g"], p["ln2"]["b"])
    return x2d.reshape(B, T, D)


def encoder_forward(p, x, n_heads):
    conv_out = vgg_extractor(p["vgg"], x)                                 # (B, T', Dc) bf16
    B, T, Dc = conv_out.shape
    h = pallas_linear(conv_out.reshape(B * T, Dc), p["linear"]["w"], p["linear"]["b"])
    D = h.shape[-1]
    h = h.reshape(B, T, D)
    h = h + positional_encoding(T, D).astype(h.dtype)[None]
    # dropout -> identity (eval mode)
    for lp in p["layers"]:
        h = encoder_layer(lp, h, n_heads)
    return h


def decoder_forward(p, x, enc_out, n_heads):
    conv_out = vgg_extractor(p["vgg"], x)
    B, T, Dc = conv_out.shape
    h = pallas_linear(conv_out.reshape(B * T, Dc), p["linear"]["w"], p["linear"]["b"])
    D = h.shape[-1]
    h = h.reshape(B, T, D)
    h = h + positional_encoding(T, D).astype(h.dtype)[None]
    # dropout -> identity (eval mode)
    for lp in p["layers"]:
        h = decoder_layer(lp, h, enc_out, n_heads)
    # final projection (bias=False in the reference -> zero bias), f32 logits out
    out = pallas_linear(h.reshape(B * T, D), p["fc"]["w"], p["fc"]["b"],
                        out_dtype=jnp.float32)
    return out.reshape(B, T, -1)


def speech_transformer_forward(params, mask, target, n_heads):
    # attention maps (self/cross) are intentionally not materialized: the reference
    # SpeechTransformer.forward returns only decoder_outputs and discards them.
    enc_out = encoder_forward(params["encoder"], mask, n_heads)
    dec_out = decoder_forward(params["decoder"], target, enc_out, n_heads)
    return dec_out


# --------------------------------------------------------------------------------------
# Deterministic synthetic parameters
#   * matmul weights pre-cast to bf16 (halved DMA + VMEM), biases / LN params f32
#   * QKV / KV weights stored pre-fused; the 1/sqrt(dh) softmax scale is folded into
#     the Q projection columns
# --------------------------------------------------------------------------------------
def init_params(key, input_dim, d_model, d_ff, n_heads, n_enc, n_dec):
    keys = iter(jax.random.split(key, 1024))
    attn_scale = 1.0 / math.sqrt(d_model // n_heads)

    def nk():
        return next(keys)

    def w32(i, o):
        return jax.random.normal(nk(), (i, o), jnp.float32) * 0.02

    def wbf(i, o):
        return w32(i, o).astype(jnp.bfloat16)

    def lin(i, o):
        return {"w": wbf(i, o), "b": jnp.zeros((o,), jnp.float32)}

    def ln(d):
        return {"g": jnp.ones((d,), jnp.float32), "b": jnp.zeros((d,), jnp.float32)}

    def vgg():
        return {"conv1": lin(9 * 1, VGG_CHANNELS),
                "conv2": lin(9 * VGG_CHANNELS, VGG_CHANNELS)}

    def mha_self():
        wqkv = w32(d_model, 3 * d_model)
        wqkv = wqkv.at[:, :d_model].multiply(attn_scale)   # fold softmax scale into Q
        return {"wqkv": wqkv.astype(jnp.bfloat16),
                "bqkv": jnp.zeros((3 * d_model,), jnp.float32),
                "wo": wbf(d_model, d_model), "bo": jnp.zeros((d_model,), jnp.float32)}

    def mha_cross():
        return {"wq": (w32(d_model, d_model) * attn_scale).astype(jnp.bfloat16),
                "bq": jnp.zeros((d_model,), jnp.float32),
                "wkv": wbf(d_model, 2 * d_model),
                "bkv": jnp.zeros((2 * d_model,), jnp.float32),
                "wo": wbf(d_model, d_model), "bo": jnp.zeros((d_model,), jnp.float32)}

    def base_layer():
        return {"mha": mha_self(), "ln1": ln(d_model),
                "w1": wbf(d_model, d_ff), "b1": jnp.zeros((d_ff,), jnp.float32),
                "w2": wbf(d_ff, d_model), "b2": jnp.zeros((d_model,), jnp.float32),
                "ln2": ln(d_model)}

    def dec_layer():
        d = base_layer()
        d["cross_mha"] = mha_cross()
        d["ln_cross"] = ln(d_model)
        return d

    conv_flat = VGG_CHANNELS * (input_dim // 4)
    encoder = {"vgg": vgg(), "linear": lin(conv_flat, d_model),
               "layers": [base_layer() for _ in range(n_enc)]}
    decoder = {"vgg": vgg(), "linear": lin(conv_flat, d_model),
               "layers": [dec_layer() for _ in range(n_dec)],
               "fc": lin(d_model, input_dim)}   # bias kept zero (bias=False)
    return {"encoder": encoder, "decoder": decoder}


# --------------------------------------------------------------------------------------
if __name__ == "__main__":
    # small, forward-consistent shapes (time and feat divisible by 4 for the VGG pooling)
    B, T_enc, T_dec, input_dim = 2, 8, 8, 16
    d_model, d_ff, n_heads = 64, 128, 4
    n_encoder_layers, n_decoder_layers = 2, 2

    # probe Buffered(1) support once, before tracing the full forward
    _const_mode()

    key = jax.random.PRNGKey(0)
    k_mask, k_tgt, k_params = jax.random.split(key, 3)
    mask = jax.random.normal(k_mask, (B, T_enc, input_dim), jnp.float32)    # encoder input
    target = jax.random.normal(k_tgt, (B, T_dec, input_dim), jnp.float32)   # decoder input

    params = init_params(k_params, input_dim, d_model, d_ff, n_heads,
                         n_encoder_layers, n_decoder_layers)

    fwd = jax.jit(functools.partial(speech_transformer_forward, n_heads=n_heads))
    out = fwd(params, mask, target)
    jax.block_until_ready(out)
    assert out.shape == (B, T_dec // 4, input_dim)
    assert bool(jnp.all(jnp.isfinite(out)))
    print("KERNEL_OK")
</pallas_src>

<mosaic_0001>
module attributes {stable_mosaic.version = 11 : i64} {
  func.func @k(%arg0: i32, %arg1: memref<8x128xf32, #tpu.memory_space<vmem>>, %arg2: memref<8x128xf32, #tpu.memory_space<vmem>>, %arg3: memref<8x128xf32, #tpu.memory_space<vmem>>) attributes {dimension_semantics = [#tpu.dimension_semantics<arbitrary>], iteration_bounds = array<i64: 2>, scalar_prefetch = 0 : i64, scratch_operands = 0 : i64, tpu.core_type = #tpu.core_type<tc>, window_params = [{transform_indices = @transform_0, window_bounds = array<i64: 8, 128>}, {pipeline_mode = #tpu.pipeline_mode<synchronous>, transform_indices = @transform_1, window_bounds = array<i64: 8, 128>}, {transform_indices = @transform_2, window_bounds = array<i64: 8, 128>}]} {
    %c0 = arith.constant 0 : index
    %c0_0 = arith.constant 0 : index
    %0 = vector.load %arg1[%c0, %c0_0] : memref<8x128xf32, #tpu.memory_space<vmem>>, vector<8x128xf32>
    %c0_1 = arith.constant 0 : index
    %c0_2 = arith.constant 0 : index
    %1 = vector.load %arg2[%c0_1, %c0_2] : memref<8x128xf32, #tpu.memory_space<vmem>>, vector<8x128xf32>
    %2 = arith.addf %0, %1 : vector<8x128xf32>
    %c0_3 = arith.constant 0 : index
    %c0_4 = arith.constant 0 : index
    %3 = vector.load %arg3[%c0_3, %c0_4] : memref<8x128xf32, #tpu.memory_space<vmem>>, vector<8x128xf32>
    tpu.vector_store %arg3[%c0_3, %c0_4], %2 {strides = array<i32>} : memref<8x128xf32, #tpu.memory_space<vmem>>, vector<8x128xf32>,
    return
  }
  func.func @transform_0(%arg0: i32) -> (i32, i32) {
    %c0_i32 = arith.constant 0 : i32
    %c0_i32_0 = arith.constant 0 : i32
    return %arg0, %c0_i32 : i32, i32
  }
  func.func @transform_1(%arg0: i32) -> (i32, i32) {
    %c0_i32 = arith.constant 0 : i32
    %c0_i32_0 = arith.constant 0 : i32
    %c0_i32_1 = arith.constant 0 : i32
    return %c0_i32, %c0_i32_0 : i32, i32
  }
  func.func @transform_2(%arg0: i32) -> (i32, i32) {
    %c0_i32 = arith.constant 0 : i32
    %c0_i32_0 = arith.constant 0 : i32
    return %arg0, %c0_i32 : i32, i32
  }
}

module attributes {stable_mosaic.version = 11 : i64} {
  func.func @_linear_kernel(%arg0: i32, %arg1: memref<256x9xbf16, #tpu.memory_space<vmem>>, %arg2: memref<9x64xbf16, #tpu.memory_space<vmem>>, %arg3: memref<1x64xf32, #tpu.memory_space<vmem>>, %arg4: memref<256x64xbf16, #tpu.memory_space<vmem>>) attributes {dimension_semantics = [#tpu.dimension_semantics<parallel>], iteration_bounds = array<i64: 1>, scalar_prefetch = 0 : i64, scratch_operands = 0 : i64, tpu.core_type = #tpu.core_type<tc>, window_params = [{transform_indices = @transform_0, window_bounds = array<i64: 256, 9>}, {pipeline_mode = #tpu.pipeline_mode<synchronous>, transform_indices = @transform_1, window_bounds = array<i64: 9, 64>}, {pipeline_mode = #tpu.pipeline_mode<synchronous>, transform_indices = @transform_2, window_bounds = array<i64: 1, 64>}, {transform_indices = @transform_3, window_bounds = array<i64: 256, 64>}]} {
    %c0 = arith.constant 0 : index
    %c0_0 = arith.constant 0 : index
    %0 = vector.load %arg1[%c0, %c0_0] : memref<256x9xbf16, #tpu.memory_space<vmem>>, vector<256x9xbf16>
    %c0_1 = arith.constant 0 : index
    %c0_2 = arith.constant 0 : index
    %1 = vector.load %arg2[%c0_1, %c0_2] : memref<9x64xbf16, #tpu.memory_space<vmem>>, vector<9x64xbf16>
    %cst = arith.constant dense<0.000000e+00> : vector<256x64xf32>
    %2 = tpu.matmul %0, %1, %cst {dimension_numbers = #tpu.dot_dimension_numbers<[1], [0], [0], [1], [0, 0, 1, 1], [], []>} : vector<256x9xbf16>, vector<9x64xbf16>, vector<256x64xf32> -> vector<256x64xf32>
    %c0_3 = arith.constant 0 : index
    %c0_4 = arith.constant 0 : index
    %3 = vector.load %arg3[%c0_3, %c0_4] : memref<1x64xf32, #tpu.memory_space<vmem>>, vector<1x64xf32>
    %4 = vector.broadcast %3 : vector<1x64xf32> to vector<256x64xf32>
    %5 = arith.addf %2, %4 : vector<256x64xf32>
    %cst_5 = arith.constant 0.000000e+00 : f32
    %6 = vector.broadcast %cst_5 : f32 to vector<256x64xf32>
    %7 = arith.maximumf %5, %6 : vector<256x64xf32>
    %8 = arith.truncf %7 : vector<256x64xf32> to vector<256x64xbf16>
    %c0_6 = arith.constant 0 : index
    %c0_7 = arith.constant 0 : index
    %9 = vector.load %arg4[%c0_6, %c0_7] : memref<256x64xbf16, #tpu.memory_space<vmem>>, vector<256x64xbf16>
    tpu.vector_store %arg4[%c0_6, %c0_7], %8 {strides = array<i32>} : memref<256x64xbf16, #tpu.memory_space<vmem>>, vector<256x64xbf16>,
    return
  }
  func.func @transform_0(%arg0: i32) -> (i32, i32) {
    %c0_i32 = arith.constant 0 : i32
    %c0_i32_0 = arith.constant 0 : i32
    return %arg0, %c0_i32 : i32, i32
  }
  func.func @transform_1(%arg0: i32) -> (i32, i32) {
    %c0_i32 = arith.constant 0 : i32
    %c0_i32_0 = arith.constant 0 : i32
    %c0_i32_1 = arith.constant 0 : i32
    return %c0_i32, %c0_i32_0 : i32, i32
  }
  func.func @transform_2(%arg0: i32) -> (i32, i32) {
    %c0_i32 = arith.constant 0 : i32
    %c0_i32_0 = arith.constant 0 : i32
    %c0_i32_1 = arith.constant 0 : i32
    return %c0_i32, %c0_i32_0 : i32, i32
  }
  func.func @transform_3(%arg0: i32) -> (i32, i32) {
    %c0_i32 = arith.constant 0 : i32
    %c0_i32_0 = arith.constant 0 : i32
    return %arg0, %c0_i32 : i32, i32
  }
}

module attributes {stable_mosaic.version = 11 : i64} {
  func.func @_linear_kernel(%arg0: i32, %arg1: memref<64x576xbf16, #tpu.memory_space<vmem>>, %arg2: memref<576x64xbf16, #tpu.memory_space<vmem>>, %arg3: memref<1x64xf32, #tpu.memory_space<vmem>>, %arg4: memref<64x64xbf16, #tpu.memory_space<vmem>>) attributes {dimension_semantics = [#tpu.dimension_semantics<parallel>], iteration_bounds = array<i64: 1>, scalar_prefetch = 0 : i64, scratch_operands = 0 : i64, tpu.core_type = #tpu.core_type<tc>, window_params = [{transform_indices = @transform_0, window_bounds = array<i64: 64, 576>}, {pipeline_mode = #tpu.pipeline_mode<synchronous>, transform_indices = @transform_1, window_bounds = array<i64: 576, 64>}, {pipeline_mode = #tpu.pipeline_mode<synchronous>, transform_indices = @transform_2, window_bounds = array<i64: 1, 64>}, {transform_indices = @transform_3, window_bounds = array<i64: 64, 64>}]} {
    %c0 = arith.constant 0 : index
    %c0_0 = arith.constant 0 : index
    %0 = vector.load %arg1[%c0, %c0_0] : memref<64x576xbf16, #tpu.memory_space<vmem>>, vector<64x576xbf16>
    %c0_1 = arith.constant 0 : index
    %c0_2 = arith.constant 0 : index
    %1 = vector.load %arg2[%c0_1, %c0_2] : memref<576x64xbf16, #tpu.memory_space<vmem>>, vector<576x64xbf16>
    %cst = arith.constant dense<0.000000e+00> : vector<64x64xf32>
    %2 = tpu.matmul %0, %1, %cst {dimension_numbers = #tpu.dot_dimension_numbers<[1], [0], [0], [1], [0, 0, 1, 1], [], []>} : vector<64x576xbf16>, vector<576x64xbf16>, vector<64x64xf32> -> vector<64x64xf32>
    %c0_3 = arith.constant 0 : index
    %c0_4 = arith.constant 0 : index
    %3 = vector.load %arg3[%c0_3, %c0_4] : memref<1x64xf32, #tpu.memory_space<vmem>>, vector<1x64xf32>
    %4 = vector.broadcast %3 : vector<1x64xf32> to vector<64x64xf32>
    %5 = arith.addf %2, %4 : vector<64x64xf32>
    %cst_5 = arith.constant 0.000000e+00 : f32
    %6 = vector.broadcast %cst_5 : f32 to vector<64x64xf32>
    %7 = arith.maximumf %5, %6 : vector<64x64xf32>
    %8 = arith.truncf %7 : vector<64x64xf32> to vector<64x64xbf16>
    %c0_6 = arith.constant 0 : index
    %c0_7 = arith.constant 0 : index
    %9 = vector.load %arg4[%c0_6, %c0_7] : memref<64x64xbf16, #tpu.memory_space<vmem>>, vector<64x64xbf16>
    tpu.vector_store %arg4[%c0_6, %c0_7], %8 {strides = array<i32>} : memref<64x64xbf16, #tpu.memory_space<vmem>>, vector<64x64xbf16>,
    return
  }
  func.func @transform_0(%arg0: i32) -> (i32, i32) {
    %c0_i32 = arith.constant 0 : i32
    %c0_i32_0 = arith.constant 0 : i32
    return %arg0, %c0_i32 : i32, i32
  }
  func.func @transform_1(%arg0: i32) -> (i32, i32) {
    %c0_i32 = arith.constant 0 : i32
    %c0_i32_0 = arith.constant 0 : i32
    %c0_i32_1 = arith.constant 0 : i32
    return %c0_i32, %c0_i32_0 : i32, i32
  }
  func.func @transform_2(%arg0: i32) -> (i32, i32) {
    %c0_i32 = arith.constant 0 : i32
    %c0_i32_0 = arith.constant 0 : i32
    %c0_i32_1 = arith.constant 0 : i32
    return %c0_i32, %c0_i32_0 : i32, i32
  }
  func.func @transform_3(%arg0: i32) -> (i32, i32) {
    %c0_i32 = arith.constant 0 : i32
    %c0_i32_0 = arith.constant 0 : i32
    return %arg0, %c0_i32 : i32, i32
  }
}

module attributes {stable_mosaic.version = 11 : i64} {
  func.func @_linear_kernel(%arg0: i32, %arg1: memref<4x256xbf16, #tpu.memory_space<vmem>>, %arg2: memref<256x64xbf16, #tpu.memory_space<vmem>>, %arg3: memref<1x64xf32, #tpu.memory_space<vmem>>, %arg4: memref<4x64xbf16, #tpu.memory_space<vmem>>) attributes {dimension_semantics = [#tpu.dimension_semantics<parallel>], iteration_bounds = array<i64: 1>, scalar_prefetch = 0 : i64, scratch_operands = 0 : i64, tpu.core_type = #tpu.core_type<tc>, window_params = [{transform_indices = @transform_0, window_bounds = array<i64: 4, 256>}, {pipeline_mode = #tpu.pipeline_mode<synchronous>, transform_indices = @transform_1, window_bounds = array<i64: 256, 64>}, {pipeline_mode = #tpu.pipeline_mode<synchronous>, transform_indices = @transform_2, window_bounds = array<i64: 1, 64>}, {transform_indices = @transform_3, window_bounds = array<i64: 4, 64>}]} {
    %c0 = arith.constant 0 : index
    %c0_0 = arith.constant 0 : index
    %0 = vector.load %arg1[%c0, %c0_0] : memref<4x256xbf16, #tpu.memory_space<vmem>>, vector<4x256xbf16>
    %c0_1 = arith.constant 0 : index
    %c0_2 = arith.constant 0 : index
    %1 = vector.load %arg2[%c0_1, %c0_2] : memref<256x64xbf16, #tpu.memory_space<vmem>>, vector<256x64xbf16>
    %cst = arith.constant dense<0.000000e+00> : vector<4x64xf32>
    %2 = tpu.matmul %0, %1, %cst {dimension_numbers = #tpu.dot_dimension_numbers<[1], [0], [0], [1], [0, 0, 1, 1], [], []>} : vector<4x256xbf16>, vector<256x64xbf16>, vector<4x64xf32> -> vector<4x64xf32>
    %c0_3 = arith.constant 0 : index
    %c0_4 = arith.constant 0 : index
    %3 = vector.load %arg3[%c0_3, %c0_4] : memref<1x64xf32, #tpu.memory_space<vmem>>, vector<1x64xf32>
    %4 = vector.broadcast %3 : vector<1x64xf32> to vector<4x64xf32>
    %5 = arith.addf %2, %4 : vector<4x64xf32>
    %6 = arith.truncf %5 : vector<4x64xf32> to vector<4x64xbf16>
    %c0_5 = arith.constant 0 : index
    %c0_6 = arith.constant 0 : index
    %7 = vector.load %arg4[%c0_5, %c0_6] : memref<4x64xbf16, #tpu.memory_space<vmem>>, vector<4x64xbf16>
    tpu.vector_store %arg4[%c0_5, %c0_6], %6 {strides = array<i32>} : memref<4x64xbf16, #tpu.memory_space<vmem>>, vector<4x64xbf16>,
    return
  }
  func.func @transform_0(%arg0: i32) -> (i32, i32) {
    %c0_i32 = arith.constant 0 : i32
    %c0_i32_0 = arith.constant 0 : i32
    return %arg0, %c0_i32 : i32, i32
  }
  func.func @transform_1(%arg0: i32) -> (i32, i32) {
    %c0_i32 = arith.constant 0 : i32
    %c0_i32_0 = arith.constant 0 : i32
    %c0_i32_1 = arith.constant 0 : i32
    return %c0_i32, %c0_i32_0 : i32, i32
  }
  func.func @transform_2(%arg0: i32) -> (i32, i32) {
    %c0_i32 = arith.constant 0 : i32
    %c0_i32_0 = arith.constant 0 : i32
    %c0_i32_1 = arith.constant 0 : i32
    return %c0_i32, %c0_i32_0 : i32, i32
  }
  func.func @transform_3(%arg0: i32) -> (i32, i32) {
    %c0_i32 = arith.constant 0 : i32
    %c0_i32_0 = arith.constant 0 : i32
    return %arg0, %c0_i32 : i32, i32
  }
}

module attributes {stable_mosaic.version = 11 : i64} {
  func.func @_linear_kernel(%arg0: i32, %arg1: memref<4x64xbf16, #tpu.memory_space<vmem>>, %arg2: memref<64x192xbf16, #tpu.memory_space<vmem>>, %arg3: memref<1x192xf32, #tpu.memory_space<vmem>>, %arg4: memref<4x192xbf16, #tpu.memory_space<vmem>>) attributes {dimension_semantics = [#tpu.dimension_semantics<parallel>], iteration_bounds = array<i64: 1>, scalar_prefetch = 0 : i64, scratch_operands = 0 : i64, tpu.core_type = #tpu.core_type<tc>, window_params = [{transform_indices = @transform_0, window_bounds = array<i64: 4, 64>}, {pipeline_mode = #tpu.pipeline_mode<synchronous>, transform_indices = @transform_1, window_bounds = array<i64: 64, 192>}, {pipeline_mode = #tpu.pipeline_mode<synchronous>, transform_indices = @transform_2, window_bounds = array<i64: 1, 192>}, {transform_indices = @transform_3, window_bounds = array<i64: 4, 192>}]} {
    %c0 = arith.constant 0 : index
    %c0_0 = arith.constant 0 : index
    %0 = vector.load %arg1[%c0, %c0_0] : memref<4x64xbf16, #tpu.memory_space<vmem>>, vector<4x64xbf16>
    %c0_1 = arith.constant 0 : index
    %c0_2 = arith.constant 0 : index
    %1 = vector.load %arg2[%c0_1, %c0_2] : memref<64x192xbf16, #tpu.memory_space<vmem>>, vector<64x192xbf16>
    %cst = arith.constant dense<0.000000e+00> : vector<4x192xf32>
    %2 = tpu.matmul %0, %1, %cst {dimension_numbers = #tpu.dot_dimension_numbers<[1], [0], [0], [1], [0, 0, 1, 1], [], []>} : vector<4x64xbf16>, vector<64x192xbf16>, vector<4x192xf32> -> vector<4x192xf32>
    %c0_3 = arith.constant 0 : index
    %c0_4 = arith.constant 0 : index
    %3 = vector.load %arg3[%c0_3, %c0_4] : memref<1x192xf32, #tpu.memory_space<vmem>>, vector<1x192xf32>
    %4 = vector.broadcast %3 : vector<1x192xf32> to vector<4x192xf32>
    %5 = arith.addf %2, %4 : vector<4x192xf32>
    %6 = arith.truncf %5 : vector<4x192xf32> to vector<4x192xbf16>
    %c0_5 = arith.constant 0 : index
    %c0_6 = arith.constant 0 : index
    %7 = vector.load %arg4[%c0_5, %c0_6] : memref<4x192xbf16, #tpu.memory_space<vmem>>, vector<4x192xbf16>
    tpu.vector_store %arg4[%c0_5, %c0_6], %6 {strides = array<i32>} : memref<4x192xbf16, #tpu.memory_space<vmem>>, vector<4x192xbf16>,
    return
  }
  func.func @transform_0(%arg0: i32) -> (i32, i32) {
    %c0_i32 = arith.constant 0 : i32
    %c0_i32_0 = arith.constant 0 : i32
    return %arg0, %c0_i32 : i32, i32
  }
  func.func @transform_1(%arg0: i32) -> (i32, i32) {
    %c0_i32 = arith.constant 0 : i32
    %c0_i32_0 = arith.constant 0 : i32
    %c0_i32_1 = arith.constant 0 : i32
    return %c0_i32, %c0_i32_0 : i32, i32
  }
  func.func @transform_2(%arg0: i32) -> (i32, i32) {
    %c0_i32 = arith.constant 0 : i32
    %c0_i32_0 = arith.constant 0 : i32
    %c0_i32_1 = arith.constant 0 : i32
    return %c0_i32, %c0_i32_0 : i32, i32
  }
  func.func @transform_3(%arg0: i32) -> (i32, i32) {
    %c0_i32 = arith.constant 0 : i32
    %c0_i32_0 = arith.constant 0 : i32
    return %arg0, %c0_i32 : i32, i32
  }
}

module attributes {stable_mosaic.version = 11 : i64} {
  func.func @_linear_addnorm_kernel(%arg0: i32, %arg1: memref<4x64xbf16, #tpu.memory_space<vmem>>, %arg2: memref<64x64xbf16, #tpu.memory_space<vmem>>, %arg3: memref<1x64xf32, #tpu.memory_space<vmem>>, %arg4: memref<4x64xbf16, #tpu.memory_space<vmem>>, %arg5: memref<1x64xf32, #tpu.memory_space<vmem>>, %arg6: memref<1x64xf32, #tpu.memory_space<vmem>>, %arg7: memref<4x64xbf16, #tpu.memory_space<vmem>>) attributes {dimension_semantics = [#tpu.dimension_semantics<parallel>], iteration_bounds = array<i64: 1>, scalar_prefetch = 0 : i64, scratch_operands = 0 : i64, tpu.core_type = #tpu.core_type<tc>, window_params = [{transform_indices = @transform_0, window_bounds = array<i64: 4, 64>}, {pipeline_mode = #tpu.pipeline_mode<synchronous>, transform_indices = @transform_1, window_bounds = array<i64: 64, 64>}, {pipeline_mode = #tpu.pipeline_mode<synchronous>, transform_indices = @transform_2, window_bounds = array<i64: 1, 64>}, {transform_indices = @transform_3, window_bounds = array<i64: 4, 64>}, {pipeline_mode = #tpu.pipeline_mode<synchronous>, transform_indices = @transform_4, window_bounds = array<i64: 1, 64>}, {pipeline_mode = #tpu.pipeline_mode<synchronous>, transform_indices = @transform_5, window_bounds = array<i64: 1, 64>}, {transform_indices = @transform_6, window_bounds = array<i64: 4, 64>}]} {
    %c0 = arith.constant 0 : index
    %c0_0 = arith.constant 0 : index
    %0 = vector.load %arg1[%c0, %c0_0] : memref<4x64xbf16, #tpu.memory_space<vmem>>, vector<4x64xbf16>
    %c0_1 = arith.constant 0 : index
    %c0_2 = arith.constant 0 : index
    %1 = vector.load %arg2[%c0_1, %c0_2] : memref<64x64xbf16, #tpu.memory_space<vmem>>, vector<64x64xbf16>
    %cst = arith.constant dense<0.000000e+00> : vector<4x64xf32>
    %2 = tpu.matmul %0, %1, %cst {dimension_numbers = #tpu.dot_dimension_numbers<[1], [0], [0], [1], [0, 0, 1, 1], [], []>} : vector<4x64xbf16>, vector<64x64xbf16>, vector<4x64xf32> -> vector<4x64xf32>
    %c0_3 = arith.constant 0 : index
    %c0_4 = arith.constant 0 : index
    %3 = vector.load %arg3[%c0_3, %c0_4] : memref<1x64xf32, #tpu.memory_space<vmem>>, vector<1x64xf32>
    %4 = vector.broadcast %3 : vector<1x64xf32> to vector<4x64xf32>
    %5 = arith.addf %2, %4 : vector<4x64xf32>
    %c0_5 = arith.constant 0 : index
    %c0_6 = arith.constant 0 : index
    %6 = vector.load %arg4[%c0_5, %c0_6] : memref<4x64xbf16, #tpu.memory_space<vmem>>, vector<4x64xbf16>
    %7 = arith.extf %6 : vector<4x64xbf16> to vector<4x64xf32>
    %8 = arith.addf %5, %7 : vector<4x64xf32>
    %cst_7 = arith.constant dense<0.000000e+00> : vector<4xf32>
    %9 = vector.multi_reduction <add>, %8, %cst_7 [1] : vector<4x64xf32> to vector<4xf32>
    %10 = vector.shape_cast %9 : vector<4xf32> to vector<4x1xf32>
    %cst_8 = arith.constant 6.400000e+01 : f32
    %11 = vector.broadcast %cst_8 : f32 to vector<4x1xf32>
    %12 = arith.divf %10, %11 : vector<4x1xf32>
    %13 = vector.broadcast %12 : vector<4x1xf32> to vector<4x64xf32>
    %14 = arith.subf %8, %13 : vector<4x64xf32>
    %15 = arith.mulf %14, %14 : vector<4x64xf32>
    %cst_9 = arith.constant dense<0.000000e+00> : vector<4xf32>
    %16 = vector.multi_reduction <add>, %15, %cst_9 [1] : vector<4x64xf32> to vector<4xf32>
    %17 = vector.shape_cast %16 : vector<4xf32> to vector<4x1xf32>
    %cst_10 = arith.constant 6.400000e+01 : f32
    %18 = vector.broadcast %cst_10 : f32 to vector<4x1xf32>
    %19 = arith.divf %17, %18 : vector<4x1xf32>
    %20 = vector.broadcast %12 : vector<4x1xf32> to vector<4x64xf32>
    %21 = arith.subf %8, %20 : vector<4x64xf32>
    %cst_11 = arith.constant 9.99999974E-6 : f32
    %22 = vector.broadcast %cst_11 : f32 to vector<4x1xf32>
    %23 = arith.addf %19, %22 : vector<4x1xf32>
    %24 = math.rsqrt %23 : vector<4x1xf32>
    %25 = vector.broadcast %24 : vector<4x1xf32> to vector<4x64xf32>
    %26 = arith.mulf %21, %25 : vector<4x64xf32>
    %c0_12 = arith.constant 0 : index
    %c0_13 = arith.constant 0 : index
    %27 = vector.load %arg5[%c0_12, %c0_13] : memref<1x64xf32, #tpu.memory_space<vmem>>, vector<1x64xf32>
    %28 = vector.broadcast %27 : vector<1x64xf32> to vector<4x64xf32>
    %29 = arith.mulf %26, %28 : vector<4x64xf32>
    %c0_14 = arith.constant 0 : index
    %c0_15 = arith.constant 0 : index
    %30 = vector.load %arg6[%c0_14, %c0_15] : memref<1x64xf32, #tpu.memory_space<vmem>>, vector<1x64xf32>
    %31 = vector.broadcast %30 : vector<1x64xf32> to vector<4x64xf32>
    %32 = arith.addf %29, %31 : vector<4x64xf32>
    %33 = arith.truncf %32 : vector<4x64xf32> to vector<4x64xbf16>
    %c0_16 = arith.constant 0 : index
    %c0_17 = arith.constant 0 : index
    %34 = vector.load %arg7[%c0_16, %c0_17] : memref<4x64xbf16, #tpu.memory_space<vmem>>, vector<4x64xbf16>
    tpu.vector_store %arg7[%c0_16, %c0_17], %33 {strides = array<i32>} : memref<4x64xbf16, #tpu.memory_space<vmem>>, vector<4x64xbf16>,
    return
  }
  func.func @transform_0(%arg0: i32) -> (i32, i32) {
    %c0_i32 = arith.constant 0 : i32
    %c0_i32_0 = arith.constant 0 : i32
    return %arg0, %c0_i32 : i32, i32
  }
  func.func @transform_1(%arg0: i32) -> (i32, i32) {
    %c0_i32 = arith.constant 0 : i32
    %c0_i32_0 = arith.constant 0 : i32
    %c0_i32_1 = arith.constant 0 : i32
    return %c0_i32, %c0_i32_0 : i32, i32
  }
  func.func @transform_2(%arg0: i32) -> (i32, i32) {
    %c0_i32 = arith.constant 0 : i32
    %c0_i32_0 = arith.constant 0 : i32
    %c0_i32_1 = arith.constant 0 : i32
    return %c0_i32, %c0_i32_0 : i32, i32
  }
  func.func @transform_3(%arg0: i32) -> (i32, i32) {
    %c0_i32 = arith.constant 0 : i32
    %c0_i32_0 = arith.constant 0 : i32
    return %arg0, %c0_i32 : i32, i32
  }
  func.func @transform_4(%arg0: i32) -> (i32, i32) {
    %c0_i32 = arith.constant 0 : i32
    %c0_i32_0 = arith.constant 0 : i32
    %c0_i32_1 = arith.constant 0 : i32
    return %c0_i32, %c0_i32_0 : i32, i32
  }
  func.func @transform_5(%arg0: i32) -> (i32, i32) {
    %c0_i32 = arith.constant 0 : i32
    %c0_i32_0 = arith.constant 0 : i32
    %c0_i32_1 = arith.constant 0 : i32
    return %c0_i32, %c0_i32_0 : i32, i32
  }
  func.func @transform_6(%arg0: i32) -> (i32, i32) {
    %c0_i32 = arith.constant 0 : i32
    %c0_i32_0 = arith.constant 0 : i32
    return %arg0, %c0_i32 : i32, i32
  }
}

module attributes {stable_mosaic.version = 11 : i64} {
  func.func @_flash_mha_kernel(%arg0: i32, %arg1: i32, %arg2: memref<1x2x192xbf16, #tpu.memory_space<vmem>>, %arg3: memref<1x2x192xbf16, #tpu.memory_space<vmem>>, %arg4: memref<1x2x64xbf16, #tpu.memory_space<vmem>>, %arg5: memref<4x2x1xf32, #tpu.memory_space<vmem>>, %arg6: memref<4x2x1xf32, #tpu.memory_space<vmem>>, %arg7: memref<4x2x16xf32, #tpu.memory_space<vmem>>) attributes {dimension_semantics = [#tpu.dimension_semantics<parallel>, #tpu.dimension_semantics<arbitrary>], iteration_bounds = array<i64: 2, 1>, scalar_prefetch = 0 : i64, scratch_operands = 3 : i64, tpu.core_type = #tpu.core_type<tc>, window_params = [{transform_indices = @transform_0, window_bounds = array<i64: 1, 2, 192>}, {transform_indices = @transform_1, window_bounds = array<i64: 1, 2, 192>}, {transform_indices = @transform_2, window_bounds = array<i64: 1, 2, 64>}]} {
    %c0_i32 = arith.constant 0 : i32
    %0 = arith.cmpi eq, %arg1, %c0_i32 : i32
    %1 = arith.extui %0 : i1 to i32
    %c0_i32_0 = arith.constant 0 : i32
    %2 = arith.cmpi ne, %1, %c0_i32_0 : i32
    scf.if %2 {
      %cst_92 = arith.constant 0xFF800000 : f32
      %154 = vector.broadcast %cst_92 : f32 to vector<4x2x1xf32>
      %c0_93 = arith.constant 0 : index
      %c0_94 = arith.constant 0 : index
      %c0_95 = arith.constant 0 : index
      %155 = vector.load %arg5[%c0_93, %c0_94, %c0_95] : memref<4x2x1xf32, #tpu.memory_space<vmem>>, vector<4x2x1xf32>
      tpu.vector_store %arg5[%c0_93, %c0_94, %c0_95], %154 {strides = array<i32>} : memref<4x2x1xf32, #tpu.memory_space<vmem>>, vector<4x2x1xf32>,
      %cst_96 = arith.constant 0.000000e+00 : f32
      %156 = vector.broadcast %cst_96 : f32 to vector<4x2x1xf32>
      %c0_97 = arith.constant 0 : index
      %c0_98 = arith.constant 0 : index
      %c0_99 = arith.constant 0 : index
      %157 = vector.load %arg6[%c0_97, %c0_98, %c0_99] : memref<4x2x1xf32, #tpu.memory_space<vmem>>, vector<4x2x1xf32>
      tpu.vector_store %arg6[%c0_97, %c0_98, %c0_99], %156 {strides = array<i32>} : memref<4x2x1xf32, #tpu.memory_space<vmem>>, vector<4x2x1xf32>,
      %cst_100 = arith.constant 0.000000e+00 : f32
      %158 = vector.broadcast %cst_100 : f32 to vector<4x2x16xf32>
      %c0_101 = arith.constant 0 : index
      %c0_102 = arith.constant 0 : index
      %c0_103 = arith.constant 0 : index
      %159 = vector.load %arg7[%c0_101, %c0_102, %c0_103] : memref<4x2x16xf32, #tpu.memory_space<vmem>>, vector<4x2x16xf32>
      tpu.vector_store %arg7[%c0_101, %c0_102, %c0_103], %158 {strides = array<i32>} : memref<4x2x16xf32, #tpu.memory_space<vmem>>, vector<4x2x16xf32>,
    } else {
    }
    %c0 = arith.constant 0 : index
    %c0_1 = arith.constant 0 : index
    %c0_2 = arith.constant 0 : index
    %3 = vector.load %arg2[%c0, %c0_1, %c0_2] : memref<1x2x192xbf16, #tpu.memory_space<vmem>>, vector<1x2x192xbf16>
    %4 = vector.shape_cast %3 : vector<1x2x192xbf16> to vector<2x192xbf16>
    %c0_3 = arith.constant 0 : index
    %c0_4 = arith.constant 0 : index
    %c0_5 = arith.constant 0 : index
    %5 = vector.load %arg3[%c0_3, %c0_4, %c0_5] : memref<1x2x192xbf16, #tpu.memory_space<vmem>>, vector<1x2x192xbf16>
    %6 = vector.shape_cast %5 : vector<1x2x192xbf16> to vector<2x192xbf16>
    %7 = vector.extract_strided_slice %4 {offsets = [0, 0], sizes = [2, 16], strides = [1, 1]} : vector<2x192xbf16> to vector<2x16xbf16>
    %8 = vector.extract_strided_slice %6 {offsets = [0, 64], sizes = [2, 16], strides = [1, 1]} : vector<2x192xbf16> to vector<2x16xbf16>
    %9 = vector.extract_strided_slice %6 {offsets = [0, 128], sizes = [2, 16], strides = [1, 1]} : vector<2x192xbf16> to vector<2x16xbf16>
    %cst = arith.constant dense<0.000000e+00> : vector<2x2xf32>
    %10 = tpu.matmul %7, %8, %cst {dimension_numbers = #tpu.dot_dimension_numbers<[1], [1], [0], [0], [0, 0, 1, 0], [], []>} : vector<2x16xbf16>, vector<2x16xbf16>, vector<2x2xf32> -> vector<2x2xf32>
    %c0_6 = arith.constant 0 : index
    %c0_7 = arith.constant 0 : index
    %c0_8 = arith.constant 0 : index
    %11 = vector.load %arg5[%c0_6, %c0_7, %c0_8] : memref<4x2x1xf32, #tpu.memory_space<vmem>>, vector<1x2x1xf32>
    %12 = vector.shape_cast %11 : vector<1x2x1xf32> to vector<2x1xf32>
    %cst_9 = arith.constant dense<0xFF800000> : vector<2xf32>
    %13 = vector.multi_reduction <maximumf>, %10, %cst_9 [1] : vector<2x2xf32> to vector<2xf32>
    %14 = vector.shape_cast %13 : vector<2xf32> to vector<2x1xf32>
    %15 = arith.maximumf %12, %14 : vector<2x1xf32>
    %16 = arith.subf %12, %15 : vector<2x1xf32>
    %17 = math.exp %16 : vector<2x1xf32>
    %18 = vector.broadcast %15 : vector<2x1xf32> to vector<2x2xf32>
    %19 = arith.subf %10, %18 : vector<2x2xf32>
    %20 = math.exp %19 : vector<2x2xf32>
    %c0_10 = arith.constant 0 : index
    %c0_11 = arith.constant 0 : index
    %c0_12 = arith.constant 0 : index
    %21 = vector.load %arg6[%c0_10, %c0_11, %c0_12] : memref<4x2x1xf32, #tpu.memory_space<vmem>>, vector<1x2x1xf32>
    %22 = vector.shape_cast %21 : vector<1x2x1xf32> to vector<2x1xf32>
    %23 = arith.mulf %17, %22 : vector<2x1xf32>
    %cst_13 = arith.constant dense<0.000000e+00> : vector<2xf32>
    %24 = vector.multi_reduction <add>, %20, %cst_13 [1] : vector<2x2xf32> to vector<2xf32>
    %25 = vector.shape_cast %24 : vector<2xf32> to vector<2x1xf32>
    %26 = arith.addf %23, %25 : vector<2x1xf32>
    %c0_14 = arith.constant 0 : index
    %c0_15 = arith.constant 0 : index
    %c0_16 = arith.constant 0 : index
    %27 = vector.load %arg6[%c0_14, %c0_15, %c0_16] : memref<4x2x1xf32, #tpu.memory_space<vmem>>, vector<1x2x1xf32>
    %28 = vector.shape_cast %27 : vector<1x2x1xf32> to vector<2x1xf32>
    %29 = vector.shape_cast %26 : vector<2x1xf32> to vector<1x2x1xf32>
    tpu.vector_store %arg6[%c0_14, %c0_15, %c0_16], %29 {strides = array<i32>} : memref<4x2x1xf32, #tpu.memory_space<vmem>>, vector<1x2x1xf32>,
    %c0_17 = arith.constant 0 : index
    %c0_18 = arith.constant 0 : index
    %c0_19 = arith.constant 0 : index
    %30 = vector.load %arg7[%c0_17, %c0_18, %c0_19] : memref<4x2x16xf32, #tpu.memory_space<vmem>>, vector<1x2x16xf32>
    %31 = vector.shape_cast %30 : vector<1x2x16xf32> to vector<2x16xf32>
    %32 = vector.broadcast %17 : vector<2x1xf32> to vector<2x16xf32>
    %33 = arith.mulf %32, %31 : vector<2x16xf32>
    %34 = arith.truncf %20 : vector<2x2xf32> to vector<2x2xbf16>
    %cst_20 = arith.constant dense<0.000000e+00> : vector<2x16xf32>
    %35 = tpu.matmul %34, %9, %cst_20 {dimension_numbers = #tpu.dot_dimension_numbers<[1], [0], [0], [1], [0, 0, 1, 1], [], []>} : vector<2x2xbf16>, vector<2x16xbf16>, vector<2x16xf32> -> vector<2x16xf32>
    %36 = arith.addf %33, %35 : vector<2x16xf32>
    %c0_21 = arith.constant 0 : index
    %c0_22 = arith.constant 0 : index
    %c0_23 = arith.constant 0 : index
    %37 = vector.load %arg7[%c0_21, %c0_22, %c0_23] : memref<4x2x16xf32, #tpu.memory_space<vmem>>, vector<1x2x16xf32>
    %38 = vector.shape_cast %37 : vector<1x2x16xf32> to vector<2x16xf32>
    %39 = vector.shape_cast %36 : vector<2x16xf32> to vector<1x2x16xf32>
    tpu.vector_store %arg7[%c0_21, %c0_22, %c0_23], %39 {strides = array<i32>} : memref<4x2x16xf32, #tpu.memory_space<vmem>>, vector<1x2x16xf32>,
    %c0_24 = arith.constant 0 : index
    %c0_25 = arith.constant 0 : index
    %c0_26 = arith.constant 0 : index
    %40 = vector.load %arg5[%c0_24, %c0_25, %c0_26] : memref<4x2x1xf32, #tpu.memory_space<vmem>>, vector<1x2x1xf32>
    %41 = vector.shape_cast %40 : vector<1x2x1xf32> to vector<2x1xf32>
    %42 = vector.shape_cast %15 : vector<2x1xf32> to vector<1x2x1xf32>
    tpu.vector_store %arg5[%c0_24, %c0_25, %c0_26], %42 {strides = array<i32>} : memref<4x2x1xf32, #tpu.memory_space<vmem>>, vector<1x2x1xf32>,
    %43 = vector.extract_strided_slice %4 {offsets = [0, 16], sizes = [2, 16], strides = [1, 1]} : vector<2x192xbf16> to vector<2x16xbf16>
    %44 = vector.extract_strided_slice %6 {offsets = [0, 80], sizes = [2, 16], strides = [1, 1]} : vector<2x192xbf16> to vector<2x16xbf16>
    %45 = vector.extract_strided_slice %6 {offsets = [0, 144], sizes = [2, 16], strides = [1, 1]} : vector<2x192xbf16> to vector<2x16xbf16>
    %cst_27 = arith.constant dense<0.000000e+00> : vector<2x2xf32>
    %46 = tpu.matmul %43, %44, %cst_27 {dimension_numbers = #tpu.dot_dimension_numbers<[1], [1], [0], [0], [0, 0, 1, 0], [], []>} : vector<2x16xbf16>, vector<2x16xbf16>, vector<2x2xf32> -> vector<2x2xf32>
    %c1 = arith.constant 1 : index
    %c0_28 = arith.constant 0 : index
    %c0_29 = arith.constant 0 : index
    %47 = vector.load %arg5[%c1, %c0_28, %c0_29] : memref<4x2x1xf32, #tpu.memory_space<vmem>>, vector<1x2x1xf32>
    %48 = vector.shape_cast %47 : vector<1x2x1xf32> to vector<2x1xf32>
    %cst_30 = arith.constant dense<0xFF800000> : vector<2xf32>
    %49 = vector.multi_reduction <maximumf>, %46, %cst_30 [1] : vector<2x2xf32> to vector<2xf32>
    %50 = vector.shape_cast %49 : vector<2xf32> to vector<2x1xf32>
    %51 = arith.maximumf %48, %50 : vector<2x1xf32>
    %52 = arith.subf %48, %51 : vector<2x1xf32>
    %53 = math.exp %52 : vector<2x1xf32>
    %54 = vector.broadcast %51 : vector<2x1xf32> to vector<2x2xf32>
    %55 = arith.subf %46, %54 : vector<2x2xf32>
    %56 = math.exp %55 : vector<2x2xf32>
    %c1_31 = arith.constant 1 : index
    %c0_32 = arith.constant 0 : index
    %c0_33 = arith.constant 0 : index
    %57 = vector.load %arg6[%c1_31, %c0_32, %c0_33] : memref<4x2x1xf32, #tpu.memory_space<vmem>>, vector<1x2x1xf32>
    %58 = vector.shape_cast %57 : vector<1x2x1xf32> to vector<2x1xf32>
    %59 = arith.mulf %53, %58 : vector<2x1xf32>
    %cst_34 = arith.constant dense<0.000000e+00> : vector<2xf32>
    %60 = vector.multi_reduction <add>, %56, %cst_34 [1] : vector<2x2xf32> to vector<2xf32>
    %61 = vector.shape_cast %60 : vector<2xf32> to vector<2x1xf32>
    %62 = arith.addf %59, %61 : vector<2x1xf32>
    %c1_35 = arith.constant 1 : index
    %c0_36 = arith.constant 0 : index
    %c0_37 = arith.constant 0 : index
    %63 = vector.load %arg6[%c1_35, %c0_36, %c0_37] : memref<4x2x1xf32, #tpu.memory_space<vmem>>, vector<1x2x1xf32>
    %64 = vector.shape_cast %63 : vector<1x2x1xf32> to vector<2x1xf32>
    %65 = vector.shape_cast %62 : vector<2x1xf32> to vector<1x2x1xf32>
    tpu.vector_store %arg6[%c1_35, %c0_36, %c0_37], %65 {strides = array<i32>} : memref<4x2x1xf32, #tpu.memory_space<vmem>>, vector<1x2x1xf32>,
    %c1_38 = arith.constant 1 : index
    %c0_39 = arith.constant 0 : index
    %c0_40 = arith.constant 0 : index
    %66 = vector.load %arg7[%c1_38, %c0_39, %c0_40] : memref<4x2x16xf32, #tpu.memory_space<vmem>>, vector<1x2x16xf32>
    %67 = vector.shape_cast %66 : vector<1x2x16xf32> to vector<2x16xf32>
    %68 = vector.broadcast %53 : vector<2x1xf32> to vector<2x16xf32>
    %69 = arith.mulf %68, %67 : vector<2x16xf32>
    %70 = arith.truncf %56 : vector<2x2xf32> to vector<2x2xbf16>
    %cst_41 = arith.constant dense<0.000000e+00> : vector<2x16xf32>
    %71 = tpu.matmul %70, %45, %cst_41 {dimension_numbers = #tpu.dot_dimension_numbers<[1], [0], [0], [1], [0, 0, 1, 1], [], []>} : vector<2x2xbf16>, vector<2x16xbf16>, vector<2x16xf32> -> vector<2x16xf32>
    %72 = arith.addf %69, %71 : vector<2x16xf32>
    %c1_42 = arith.constant 1 : index
    %c0_43 = arith.constant 0 : index
    %c0_44 = arith.constant 0 : index
    %73 = vector.load %arg7[%c1_42, %c0_43, %c0_44] : memref<4x2x16xf32, #tpu.memory_space<vmem>>, vector<1x2x16xf32>
    %74 = vector.shape_cast %73 : vector<1x2x16xf32> to vector<2x16xf32>
    %75 = vector.shape_cast %72 : vector<2x16xf32> to vector<1x2x16xf32>
    tpu.vector_store %arg7[%c1_42, %c0_43, %c0_44], %75 {strides = array<i32>} : memref<4x2x16xf32, #tpu.memory_space<vmem>>, vector<1x2x16xf32>,
    %c1_45 = arith.constant 1 : index
    %c0_46 = arith.constant 0 : index
    %c0_47 = arith.constant 0 : index
    %76 = vector.load %arg5[%c1_45, %c0_46, %c0_47] : memref<4x2x1xf32, #tpu.memory_space<vmem>>, vector<1x2x1xf32>
    %77 = vector.shape_cast %76 : vector<1x2x1xf32> to vector<2x1xf32>
    %78 = vector.shape_cast %51 : vector<2x1xf32> to vector<1x2x1xf32>
    tpu.vector_store %arg5[%c1_45, %c0_46, %c0_47], %78 {strides = array<i32>} : memref<4x2x1xf32, #tpu.memory_space<vmem>>, vector<1x2x1xf32>,
    %79 = vector.extract_strided_slice %4 {offsets = [0, 32], sizes = [2, 16], strides = [1, 1]} : vector<2x192xbf16> to vector<2x16xbf16>
    %80 = vector.extract_strided_slice %6 {offsets = [0, 96], sizes = [2, 16], strides = [1, 1]} : vector<2x192xbf16> to vector<2x16xbf16>
    %81 = vector.extract_strided_slice %6 {offsets = [0, 160], sizes = [2, 16], strides = [1, 1]} : vector<2x192xbf16> to vector<2x16xbf16>
    %cst_48 = arith.constant dense<0.000000e+00> : vector<2x2xf32>
    %82 = tpu.matmul %79, %80, %cst_48 {dimension_numbers = #tpu.dot_dimension_numbers<[1], [1], [0], [0], [0, 0, 1, 0], [], []>} : vector<2x16xbf16>, vector<2x16xbf16>, vector<2x2xf32> -> vector<2x2xf32>
    %c2 = arith.constant 2 : index
    %c0_49 = arith.constant 0 : index
    %c0_50 = arith.constant 0 : index
    %83 = vector.load %arg5[%c2, %c0_49, %c0_50] : memref<4x2x1xf32, #tpu.memory_space<vmem>>, vector<1x2x1xf32>
    %84 = vector.shape_cast %83 : vector<1x2x1xf32> to vector<2x1xf32>
    %cst_51 = arith.constant dense<0xFF800000> : vector<2xf32>
    %85 = vector.multi_reduction <maximumf>, %82, %cst_51 [1] : vector<2x2xf32> to vector<2xf32>
    %86 = vector.shape_cast %85 : vector<2xf32> to vector<2x1xf32>
    %87 = arith.maximumf %84, %86 : vector<2x1xf32>
    %88 = arith.subf %84, %87 : vector<2x1xf32>
    %89 = math.exp %88 : vector<2x1xf32>
    %90 = vector.broadcast %87 : vector<2x1xf32> to vector<2x2xf32>
    %91 = arith.subf %82, %90 : vector<2x2xf32>
    %92 = math.exp %91 : vector<2x2xf32>
    %c2_52 = arith.constant 2 : index
    %c0_53 = arith.constant 0 : index
    %c0_54 = arith.constant 0 : index
    %93 = vector.load %arg6[%c2_52, %c0_53, %c0_54] : memref<4x2x1xf32, #tpu.memory_space<vmem>>, vector<1x2x1xf32>
    %94 = vector.shape_cast %93 : vector<1x2x1xf32> to vector<2x1xf32>
    %95 = arith.mulf %89, %94 : vector<2x1xf32>
    %cst_55 = arith.constant dense<0.000000e+00> : vector<2xf32>
    %96 = vector.multi_reduction <add>, %92, %cst_55 [1] : vector<2x2xf32> to vector<2xf32>
    %97 = vector.shape_cast %96 : vector<2xf32> to vector<2x1xf32>
    %98 = arith.addf %95, %97 : vector<2x1xf32>
    %c2_56 = arith.constant 2 : index
    %c0_57 = arith.constant 0 : index
    %c0_58 = arith.constant 0 : index
    %99 = vector.load %arg6[%c2_56, %c0_57, %c0_58] : memref<4x2x1xf32, #tpu.memory_space<vmem>>, vector<1x2x1xf32>
    %100 = vector.shape_cast %99 : vector<1x2x1xf32> to vector<2x1xf32>
    %101 = vector.shape_cast %98 : vector<2x1xf32> to vector<1x2x1xf32>
    tpu.vector_store %arg6[%c2_56, %c0_57, %c0_58], %101 {strides = array<i32>} : memref<4x2x1xf32, #tpu.memory_space<vmem>>, vector<1x2x1xf32>,
    %c2_59 = arith.constant 2 : index
    %c0_60 = arith.constant 0 : index
    %c0_61 = arith.constant 0 : index
    %102 = vector.load %arg7[%c2_59, %c0_60, %c0_61] : memref<4x2x16xf32, #tpu.memory_space<vmem>>, vector<1x2x16xf32>
    %103 = vector.shape_cast %102 : vector<1x2x16xf32> to vector<2x16xf32>
    %104 = vector.broadcast %89 : vector<2x1xf32> to vector<2x16xf32>
    %105 = arith.mulf %104, %103 : vector<2x16xf32>
    %106 = arith.truncf %92 : vector<2x2xf32> to vector<2x2xbf16>
    %cst_62 = arith.constant dense<0.000000e+00> : vector<2x16xf32>
    %107 = tpu.matmul %106, %81, %cst_62 {dimension_numbers = #tpu.dot_dimension_numbers<[1], [0], [0], [1], [0, 0, 1, 1], [], []>} : vector<2x2xbf16>, vector<2x16xbf16>, vector<2x16xf32> -> vector<2x16xf32>
    %108 = arith.addf %105, %107 : vector<2x16xf32>
    %c2_63 = arith.constant 2 : index
    %c0_64 = arith.constant 0 : index
    %c0_65 = arith.constant 0 : index
    %109 = vector.load %arg7[%c2_63, %c0_64, %c0_65] : memref<4x2x16xf32, #tpu.memory_space<vmem>>, vector<1x2x16xf32>
    %110 = vector.shape_cast %109 : vector<1x2x16xf32> to vector<2x16xf32>
    %111 = vector.shape_cast %108 : vector<2x16xf32> to vector<1x2x16xf32>
    tpu.vector_store %arg7[%c2_63, %c0_64, %c0_65], %111 {strides = array<i32>} : memref<4x2x16xf32, #tpu.memory_space<vmem>>, vector<1x2x16xf32>,
    %c2_66 = arith.constant 2 : index
    %c0_67 = arith.constant 0 : index
    %c0_68 = arith.constant 0 : index
    %112 = vector.load %arg5[%c2_66, %c0_67, %c0_68] : memref<4x2x1xf32, #tpu.memory_space<vmem>>, vector<1x2x1xf32>
    %113 = vector.shape_cast %112 : vector<1x2x1xf32> to vector<2x1xf32>
    %114 = vector.shape_cast %87 : vector<2x1xf32> to vector<1x2x1xf32>
    tpu.vector_store %arg5[%c2_66, %c0_67, %c0_68], %114 {strides = array<i32>} : memref<4x2x1xf32, #tpu.memory_space<vmem>>, vector<1x2x1xf32>,
    %115 = vector.extract_strided_slice %4 {offsets = [0, 48], sizes = [2, 16], strides = [1, 1]} : vector<2x192xbf16> to vector<2x16xbf16>
    %116 = vector.extract_strided_slice %6 {offsets = [0, 112], sizes = [2, 16], strides = [1, 1]} : vector<2x192xbf16> to vector<2x16xbf16>
    %117 = vector.extract_strided_slice %6 {offsets = [0, 176], sizes = [2, 16], strides = [1, 1]} : vector<2x192xbf16> to vector<2x16xbf16>
    %cst_69 = arith.constant dense<0.000000e+00> : vector<2x2xf32>
    %118 = tpu.matmul %115, %116, %cst_69 {dimension_numbers = #tpu.dot_dimension_numbers<[1], [1], [0], [0], [0, 0, 1, 0], [], []>} : vector<2x16xbf16>, vector<2x16xbf16>, vector<2x2xf32> -> vector<2x2xf32>
    %c3 = arith.constant 3 : index
    %c0_70 = arith.constant 0 : index
    %c0_71 = arith.constant 0 : index
    %119 = vector.load %arg5[%c3, %c0_70, %c0_71] : memref<4x2x1xf32, #tpu.memory_space<vmem>>, vector<1x2x1xf32>
    %120 = vector.shape_cast %119 : vector<1x2x1xf32> to vector<2x1xf32>
    %cst_72 = arith.constant dense<0xFF800000> : vector<2xf32>
    %121 = vector.multi_reduction <maximumf>, %118, %cst_72 [1] : vector<2x2xf32> to vector<2xf32>
    %122 = vector.shape_cast %121 : vector<2xf32> to vector<2x1xf32>
    %123 = arith.maximumf %120, %122 : vector<2x1xf32>
    %124 = arith.subf %120, %123 : vector<2x1xf32>
    %125 = math.exp %124 : vector<2x1xf32>
    %126 = vector.broadcast %123 : vector<2x1xf32> to vector<2x2xf32>
    %127 = arith.subf %118, %126 : vector<2x2xf32>
    %128 = math.exp %127 : vector<2x2xf32>
    %c3_73 = arith.constant 3 : index
    %c0_74 = arith.constant 0 : index
    %c0_75 = arith.constant 0 : index
    %129 = vector.load %arg6[%c3_73, %c0_74, %c0_75] : memref<4x2x1xf32, #tpu.memory_space<vmem>>, vector<1x2x1xf32>
    %130 = vector.shape_cast %129 : vector<1x2x1xf32> to vector<2x1xf32>
    %131 = arith.mulf %125, %130 : vector<2x1xf32>
    %cst_76 = arith.constant dense<0.000000e+00> : vector<2xf32>
    %132 = vector.multi_reduction <add>, %128, %cst_76 [1] : vector<2x2xf32> to vector<2xf32>
    %133 = vector.shape_cast %132 : vector<2xf32> to vector<2x1xf32>
    %134 = arith.addf %131, %133 : vector<2x1xf32>
    %c3_77 = arith.constant 3 : index
    %c0_78 = arith.constant 0 : index
    %c0_79 = arith.constant 0 : index
    %135 = vector.load %arg6[%c3_77, %c0_78, %c0_79] : memref<4x2x1xf32, #tpu.memory_space<vmem>>, vector<1x2x1xf32>
    %136 = vector.shape_cast %135 : vector<1x2x1xf32> to vector<2x1xf32>
    %137 = vector.shape_cast %134 : vector<2x1xf32> to vector<1x2x1xf32>
    tpu.vector_store %arg6[%c3_77, %c0_78, %c0_79], %137 {strides = array<i32>} : memref<4x2x1xf32, #tpu.memory_space<vmem>>, vector<1x2x1xf32>,
    %c3_80 = arith.constant 3 : index
    %c0_81 = arith.constant 0 : index
    %c0_82 = arith.constant 0 : index
    %138 = vector.load %arg7[%c3_80, %c0_81, %c0_82] : memref<4x2x16xf32, #tpu.memory_space<vmem>>, vector<1x2x16xf32>
    %139 = vector.shape_cast %138 : vector<1x2x16xf32> to vector<2x16xf32>
    %140 = vector.broadcast %125 : vector<2x1xf32> to vector<2x16xf32>
    %141 = arith.mulf %140, %139 : vector<2x16xf32>
    %142 = arith.truncf %128 : vector<2x2xf32> to vector<2x2xbf16>
    %cst_83 = arith.constant dense<0.000000e+00> : vector<2x16xf32>
    %143 = tpu.matmul %142, %117, %cst_83 {dimension_numbers = #tpu.dot_dimension_numbers<[1], [0], [0], [1], [0, 0, 1, 1], [], []>} : vector<2x2xbf16>, vector<2x16xbf16>, vector<2x16xf32> -> vector<2x16xf32>
    %144 = arith.addf %141, %143 : vector<2x16xf32>
    %c3_84 = arith.constant 3 : index
    %c0_85 = arith.constant 0 : index
    %c0_86 = arith.constant 0 : index
    %145 = vector.load %arg7[%c3_84, %c0_85, %c0_86] : memref<4x2x16xf32, #tpu.memory_space<vmem>>, vector<1x2x16xf32>
    %146 = vector.shape_cast %145 : vector<1x2x16xf32> to vector<2x16xf32>
    %147 = vector.shape_cast %144 : vector<2x16xf32> to vector<1x2x16xf32>
    tpu.vector_store %arg7[%c3_84, %c0_85, %c0_86], %147 {strides = array<i32>} : memref<4x2x16xf32, #tpu.memory_space<vmem>>, vector<1x2x16xf32>,
    %c3_87 = arith.constant 3 : index
    %c0_88 = arith.constant 0 : index
    %c0_89 = arith.constant 0 : index
    %148 = vector.load %arg5[%c3_87, %c0_88, %c0_89] : memref<4x2x1xf32, #tpu.memory_space<vmem>>, vector<1x2x1xf32>
    %149 = vector.shape_cast %148 : vector<1x2x1xf32> to vector<2x1xf32>
    %150 = vector.shape_cast %123 : vector<2x1xf32> to vector<1x2x1xf32>
    tpu.vector_store %arg5[%c3_87, %c0_88, %c0_89], %150 {strides = array<i32>} : memref<4x2x1xf32, #tpu.memory_space<vmem>>, vector<1x2x1xf32>,
    %c0_i32_90 = arith.constant 0 : i32
    %151 = arith.cmpi eq, %arg1, %c0_i32_90 : i32
    %152 = arith.extui %151 : i1 to i32
    %c0_i32_91 = arith.constant 0 : i32
    %153 = arith.cmpi ne, %152, %c0_i32_91 : i32
    scf.if %153 {
      %c0_92 = arith.constant 0 : index
      %c0_93 = arith.constant 0 : index
      %c0_94 = arith.constant 0 : index
      %154 = vector.load %arg7[%c0_92, %c0_93, %c0_94] : memref<4x2x16xf32, #tpu.memory_space<vmem>>, vector<1x2x16xf32>
      %155 = vector.shape_cast %154 : vector<1x2x16xf32> to vector<2x16xf32>
      %c0_95 = arith.constant 0 : index
      %c0_96 = arith.constant 0 : index
      %c0_97 = arith.constant 0 : index
      %156 = vector.load %arg6[%c0_95, %c0_96, %c0_97] : memref<4x2x1xf32, #tpu.memory_space<vmem>>, vector<1x2x1xf32>
      %157 = vector.shape_cast %156 : vector<1x2x1xf32> to vector<2x1xf32>
      %158 = tpu.reciprocal %157 {approx = true} : vector<2x1xf32> -> vector<2x1xf32>
      %159 = vector.broadcast %158 : vector<2x1xf32> to vector<2x16xf32>
      %160 = arith.mulf %155, %159 : vector<2x16xf32>
      %c1_98 = arith.constant 1 : index
      %c0_99 = arith.constant 0 : index
      %c0_100 = arith.constant 0 : index
      %161 = vector.load %arg7[%c1_98, %c0_99, %c0_100] : memref<4x2x16xf32, #tpu.memory_space<vmem>>, vector<1x2x16xf32>
      %162 = vector.shape_cast %161 : vector<1x2x16xf32> to vector<2x16xf32>
      %c1_101 = arith.constant 1 : index
      %c0_102 = arith.constant 0 : index
      %c0_103 = arith.constant 0 : index
      %163 = vector.load %arg6[%c1_101, %c0_102, %c0_103] : memref<4x2x1xf32, #tpu.memory_space<vmem>>, vector<1x2x1xf32>
      %164 = vector.shape_cast %163 : vector<1x2x1xf32> to vector<2x1xf32>
      %165 = tpu.reciprocal %164 {approx = true} : vector<2x1xf32> -> vector<2x1xf32>
      %166 = vector.broadcast %165 : vector<2x1xf32> to vector<2x16xf32>
      %167 = arith.mulf %162, %166 : vector<2x16xf32>
      %c2_104 = arith.constant 2 : index
      %c0_105 = arith.constant 0 : index
      %c0_106 = arith.constant 0 : index
      %168 = vector.load %arg7[%c2_104, %c0_105, %c0_106] : memref<4x2x16xf32, #tpu.memory_space<vmem>>, vector<1x2x16xf32>
      %169 = vector.shape_cast %168 : vector<1x2x16xf32> to vector<2x16xf32>
      %c2_107 = arith.constant 2 : index
      %c0_108 = arith.constant 0 : index
      %c0_109 = arith.constant 0 : index
      %170 = vector.load %arg6[%c2_107, %c0_108, %c0_109] : memref<4x2x1xf32, #tpu.memory_space<vmem>>, vector<1x2x1xf32>
      %171 = vector.shape_cast %170 : vector<1x2x1xf32> to vector<2x1xf32>
      %172 = tpu.reciprocal %171 {approx = true} : vector<2x1xf32> -> vector<2x1xf32>
      %173 = vector.broadcast %172 : vector<2x1xf32> to vector<2x16xf32>
      %174 = arith.mulf %169, %173 : vector<2x16xf32>
      %c3_110 = arith.constant 3 : index
      %c0_111 = arith.constant 0 : index
      %c0_112 = arith.constant 0 : index
      %175 = vector.load %arg7[%c3_110, %c0_111, %c0_112] : memref<4x2x16xf32, #tpu.memory_space<vmem>>, vector<1x2x16xf32>
      %176 = vector.shape_cast %175 : vector<1x2x16xf32> to vector<2x16xf32>
      %c3_113 = arith.constant 3 : index
      %c0_114 = arith.constant 0 : index
      %c0_115 = arith.constant 0 : index
      %177 = vector.load %arg6[%c3_113, %c0_114, %c0_115] : memref<4x2x1xf32, #tpu.memory_space<vmem>>, vector<1x2x1xf32>
      %178 = vector.shape_cast %177 : vector<1x2x1xf32> to vector<2x1xf32>
      %179 = tpu.reciprocal %178 {approx = true} : vector<2x1xf32> -> vector<2x1xf32>
      %180 = vector.broadcast %179 : vector<2x1xf32> to vector<2x16xf32>
      %181 = arith.mulf %176, %180 : vector<2x16xf32>
      %182 = tpu.concatenate %160, %167, %174, %181 in 1 : vector<2x16xf32>, vector<2x16xf32>, vector<2x16xf32>, vector<2x16xf32> -> vector<2x64xf32>
      %183 = arith.truncf %182 : vector<2x64xf32> to vector<2x64xbf16>
      %c0_116 = arith.constant 0 : index
      %c0_117 = arith.constant 0 : index
      %c0_118 = arith.constant 0 : index
      %184 = vector.load %arg4[%c0_116, %c0_117, %c0_118] : memref<1x2x64xbf16, #tpu.memory_space<vmem>>, vector<1x2x64xbf16>
      %185 = vector.shape_cast %184 : vector<1x2x64xbf16> to vector<2x64xbf16>
      %186 = vector.shape_cast %183 : vector<2x64xbf16> to vector<1x2x64xbf16>
      tpu.vector_store %arg4[%c0_116, %c0_117, %c0_118], %186 {strides = array<i32>} : memref<1x2x64xbf16, #tpu.memory_space<vmem>>, vector<1x2x64xbf16>,
    } else {
    }
    return
  }
  func.func @transform_0(%arg0: i32, %arg1: i32) -> (i32, i32, i32) {
    %c0_i32 = arith.constant 0 : i32
    %c0_i32_0 = arith.constant 0 : i32
    %c0_i32_1 = arith.constant 0 : i32
    return %arg0, %c0_i32, %c0_i32_0 : i32, i32, i32
  }
  func.func @transform_1(%arg0: i32, %arg1: i32) -> (i32, i32, i32) {
    %c0_i32 = arith.constant 0 : i32
    %c0_i32_0 = arith.constant 0 : i32
    return %arg0, %arg1, %c0_i32 : i32, i32, i32
  }
  func.func @transform_2(%arg0: i32, %arg1: i32) -> (i32, i32, i32) {
    %c0_i32 = arith.constant 0 : i32
    %c0_i32_0 = arith.constant 0 : i32
    %c0_i32_1 = arith.constant 0 : i32
    return %arg0, %c0_i32, %c0_i32_0 : i32, i32, i32
  }
}

module attributes {stable_mosaic.version = 11 : i64} {
  func.func @_ffn_addnorm_kernel(%arg0: i32, %arg1: memref<4x64xbf16, #tpu.memory_space<vmem>>, %arg2: memref<64x128xbf16, #tpu.memory_space<vmem>>, %arg3: memref<1x128xf32, #tpu.memory_space<vmem>>, %arg4: memref<128x64xbf16, #tpu.memory_space<vmem>>, %arg5: memref<1x64xf32, #tpu.memory_space<vmem>>, %arg6: memref<1x64xf32, #tpu.memory_space<vmem>>, %arg7: memref<1x64xf32, #tpu.memory_space<vmem>>, %arg8: memref<4x64xbf16, #tpu.memory_space<vmem>>) attributes {dimension_semantics = [#tpu.dimension_semantics<parallel>], iteration_bounds = array<i64: 1>, scalar_prefetch = 0 : i64, scratch_operands = 0 : i64, tpu.core_type = #tpu.core_type<tc>, window_params = [{transform_indices = @transform_0, window_bounds = array<i64: 4, 64>}, {pipeline_mode = #tpu.pipeline_mode<synchronous>, transform_indices = @transform_1, window_bounds = array<i64: 64, 128>}, {pipeline_mode = #tpu.pipeline_mode<synchronous>, transform_indices = @transform_2, window_bounds = array<i64: 1, 128>}, {pipeline_mode = #tpu.pipeline_mode<synchronous>, transform_indices = @transform_3, window_bounds = array<i64: 128, 64>}, {pipeline_mode = #tpu.pipeline_mode<synchronous>, transform_indices = @transform_4, window_bounds = array<i64: 1, 64>}, {pipeline_mode = #tpu.pipeline_mode<synchronous>, transform_indices = @transform_5, window_bounds = array<i64: 1, 64>}, {pipeline_mode = #tpu.pipeline_mode<synchronous>, transform_indices = @transform_6, window_bounds = array<i64: 1, 64>}, {transform_indices = @transform_7, window_bounds = array<i64: 4, 64>}]} {
    %c0 = arith.constant 0 : index
    %c0_0 = arith.constant 0 : index
    %0 = vector.load %arg1[%c0, %c0_0] : memref<4x64xbf16, #tpu.memory_space<vmem>>, vector<4x64xbf16>
    %c0_1 = arith.constant 0 : index
    %c0_2 = arith.constant 0 : index
    %1 = vector.load %arg2[%c0_1, %c0_2] : memref<64x128xbf16, #tpu.memory_space<vmem>>, vector<64x128xbf16>
    %cst = arith.constant dense<0.000000e+00> : vector<4x128xf32>
    %2 = tpu.matmul %0, %1, %cst {dimension_numbers = #tpu.dot_dimension_numbers<[1], [0], [0], [1], [0, 0, 1, 1], [], []>} : vector<4x64xbf16>, vector<64x128xbf16>, vector<4x128xf32> -> vector<4x128xf32>
    %c0_3 = arith.constant 0 : index
    %c0_4 = arith.constant 0 : index
    %3 = vector.load %arg3[%c0_3, %c0_4] : memref<1x128xf32, #tpu.memory_space<vmem>>, vector<1x128xf32>
    %4 = vector.broadcast %3 : vector<1x128xf32> to vector<4x128xf32>
    %5 = arith.addf %2, %4 : vector<4x128xf32>
    %cst_5 = arith.constant 0.000000e+00 : f32
    %6 = vector.broadcast %cst_5 : f32 to vector<4x128xf32>
    %7 = arith.maximumf %5, %6 : vector<4x128xf32>
    %8 = arith.truncf %7 : vector<4x128xf32> to vector<4x128xbf16>
    %c0_6 = arith.constant 0 : index
    %c0_7 = arith.constant 0 : index
    %9 = vector.load %arg4[%c0_6, %c0_7] : memref<128x64xbf16, #tpu.memory_space<vmem>>, vector<128x64xbf16>
    %cst_8 = arith.constant dense<0.000000e+00> : vector<4x64xf32>
    %10 = tpu.matmul %8, %9, %cst_8 {dimension_numbers = #tpu.dot_dimension_numbers<[1], [0], [0], [1], [0, 0, 1, 1], [], []>} : vector<4x128xbf16>, vector<128x64xbf16>, vector<4x64xf32> -> vector<4x64xf32>
    %c0_9 = arith.constant 0 : index
    %c0_10 = arith.constant 0 : index
    %11 = vector.load %arg5[%c0_9, %c0_10] : memref<1x64xf32, #tpu.memory_space<vmem>>, vector<1x64xf32>
    %12 = vector.broadcast %11 : vector<1x64xf32> to vector<4x64xf32>
    %13 = arith.addf %10, %12 : vector<4x64xf32>
    %14 = arith.extf %0 : vector<4x64xbf16> to vector<4x64xf32>
    %15 = arith.addf %13, %14 : vector<4x64xf32>
    %cst_11 = arith.constant dense<0.000000e+00> : vector<4xf32>
    %16 = vector.multi_reduction <add>, %15, %cst_11 [1] : vector<4x64xf32> to vector<4xf32>
    %17 = vector.shape_cast %16 : vector<4xf32> to vector<4x1xf32>
    %cst_12 = arith.constant 6.400000e+01 : f32
    %18 = vector.broadcast %cst_12 : f32 to vector<4x1xf32>
    %19 = arith.divf %17, %18 : vector<4x1xf32>
    %20 = vector.broadcast %19 : vector<4x1xf32> to vector<4x64xf32>
    %21 = arith.subf %15, %20 : vector<4x64xf32>
    %22 = arith.mulf %21, %21 : vector<4x64xf32>
    %cst_13 = arith.constant dense<0.000000e+00> : vector<4xf32>
    %23 = vector.multi_reduction <add>, %22, %cst_13 [1] : vector<4x64xf32> to vector<4xf32>
    %24 = vector.shape_cast %23 : vector<4xf32> to vector<4x1xf32>
    %cst_14 = arith.constant 6.400000e+01 : f32
    %25 = vector.broadcast %cst_14 : f32 to vector<4x1xf32>
    %26 = arith.divf %24, %25 : vector<4x1xf32>
    %27 = vector.broadcast %19 : vector<4x1xf32> to vector<4x64xf32>
    %28 = arith.subf %15, %27 : vector<4x64xf32>
    %cst_15 = arith.constant 9.99999974E-6 : f32
    %29 = vector.broadcast %cst_15 : f32 to vector<4x1xf32>
    %30 = arith.addf %26, %29 : vector<4x1xf32>
    %31 = math.rsqrt %30 : vector<4x1xf32>
    %32 = vector.broadcast %31 : vector<4x1xf32> to vector<4x64xf32>
    %33 = arith.mulf %28, %32 : vector<4x64xf32>
    %c0_16 = arith.constant 0 : index
    %c0_17 = arith.constant 0 : index
    %34 = vector.load %arg6[%c0_16, %c0_17] : memref<1x64xf32, #tpu.memory_space<vmem>>, vector<1x64xf32>
    %35 = vector.broadcast %34 : vector<1x64xf32> to vector<4x64xf32>
    %36 = arith.mulf %33, %35 : vector<4x64xf32>
    %c0_18 = arith.constant 0 : index
    %c0_19 = arith.constant 0 : index
    %37 = vector.load %arg7[%c0_18, %c0_19] : memref<1x64xf32, #tpu.memory_space<vmem>>, vector<1x64xf32>
    %38 = vector.broadcast %37 : vector<1x64xf32> to vector<4x64xf32>
    %39 = arith.addf %36, %38 : vector<4x64xf32>
    %40 = arith.truncf %39 : vector<4x64xf32> to vector<4x64xbf16>
    %c0_20 = arith.constant 0 : index
    %c0_21 = arith.constant 0 : index
    %41 = vector.load %arg8[%c0_20, %c0_21] : memref<4x64xbf16, #tpu.memory_space<vmem>>, vector<4x64xbf16>
    tpu.vector_store %arg8[%c0_20, %c0_21], %40 {strides = array<i32>} : memref<4x64xbf16, #tpu.memory_space<vmem>>, vector<4x64xbf16>,
    return
  }
  func.func @transform_0(%arg0: i32) -> (i32, i32) {
    %c0_i32 = arith.constant 0 : i32
    %c0_i32_0 = arith.constant 0 : i32
    return %arg0, %c0_i32 : i32, i32
  }
  func.func @transform_1(%arg0: i32) -> (i32, i32) {
    %c0_i32 = arith.constant 0 : i32
    %c0_i32_0 = arith.constant 0 : i32
    %c0_i32_1 = arith.constant 0 : i32
    return %c0_i32, %c0_i32_0 : i32, i32
  }
  func.func @transform_2(%arg0: i32) -> (i32, i32) {
    %c0_i32 = arith.constant 0 : i32
    %c0_i32_0 = arith.constant 0 : i32
    %c0_i32_1 = arith.constant 0 : i32
    return %c0_i32, %c0_i32_0 : i32, i32
  }
  func.func @transform_3(%arg0: i32) -> (i32, i32) {
    %c0_i32 = arith.constant 0 : i32
    %c0_i32_0 = arith.constant 0 : i32
    %c0_i32_1 = arith.constant 0 : i32
    return %c0_i32, %c0_i32_0 : i32, i32
  }
  func.func @transform_4(%arg0: i32) -> (i32, i32) {
    %c0_i32 = arith.constant 0 : i32
    %c0_i32_0 = arith.constant 0 : i32
    %c0_i32_1 = arith.constant 0 : i32
    return %c0_i32, %c0_i32_0 : i32, i32
  }
  func.func @transform_5(%arg0: i32) -> (i32, i32) {
    %c0_i32 = arith.constant 0 : i32
    %c0_i32_0 = arith.constant 0 : i32
    %c0_i32_1 = arith.constant 0 : i32
    return %c0_i32, %c0_i32_0 : i32, i32
  }
  func.func @transform_6(%arg0: i32) -> (i32, i32) {
    %c0_i32 = arith.constant 0 : i32
    %c0_i32_0 = arith.constant 0 : i32
    %c0_i32_1 = arith.constant 0 : i32
    return %c0_i32, %c0_i32_0 : i32, i32
  }
  func.func @transform_7(%arg0: i32) -> (i32, i32) {
    %c0_i32 = arith.constant 0 : i32
    %c0_i32_0 = arith.constant 0 : i32
    return %arg0, %c0_i32 : i32, i32
  }
}

module attributes {stable_mosaic.version = 11 : i64} {
  func.func @_linear_kernel(%arg0: i32, %arg1: memref<4x64xbf16, #tpu.memory_space<vmem>>, %arg2: memref<64x128xbf16, #tpu.memory_space<vmem>>, %arg3: memref<1x128xf32, #tpu.memory_space<vmem>>, %arg4: memref<4x128xbf16, #tpu.memory_space<vmem>>) attributes {dimension_semantics = [#tpu.dimension_semantics<parallel>], iteration_bounds = array<i64: 1>, scalar_prefetch = 0 : i64, scratch_operands = 0 : i64, tpu.core_type = #tpu.core_type<tc>, window_params = [{transform_indices = @transform_0, window_bounds = array<i64: 4, 64>}, {pipeline_mode = #tpu.pipeline_mode<synchronous>, transform_indices = @transform_1, window_bounds = array<i64: 64, 128>}, {pipeline_mode = #tpu.pipeline_mode<synchronous>, transform_indices = @transform_2, window_bounds = array<i64: 1, 128>}, {transform_indices = @transform_3, window_bounds = array<i64: 4, 128>}]} {
    %c0 = arith.constant 0 : index
    %c0_0 = arith.constant 0 : index
    %0 = vector.load %arg1[%c0, %c0_0] : memref<4x64xbf16, #tpu.memory_space<vmem>>, vector<4x64xbf16>
    %c0_1 = arith.constant 0 : index
    %c0_2 = arith.constant 0 : index
    %1 = vector.load %arg2[%c0_1, %c0_2] : memref<64x128xbf16, #tpu.memory_space<vmem>>, vector<64x128xbf16>
    %cst = arith.constant dense<0.000000e+00> : vector<4x128xf32>
    %2 = tpu.matmul %0, %1, %cst {dimension_numbers = #tpu.dot_dimension_numbers<[1], [0], [0], [1], [0, 0, 1, 1], [], []>} : vector<4x64xbf16>, vector<64x128xbf16>, vector<4x128xf32> -> vector<4x128xf32>
    %c0_3 = arith.constant 0 : index
    %c0_4 = arith.constant 0 : index
    %3 = vector.load %arg3[%c0_3, %c0_4] : memref<1x128xf32, #tpu.memory_space<vmem>>, vector<1x128xf32>
    %4 = vector.broadcast %3 : vector<1x128xf32> to vector<4x128xf32>
    %5 = arith.addf %2, %4 : vector<4x128xf32>
    %6 = arith.truncf %5 : vector<4x128xf32> to vector<4x128xbf16>
    %c0_5 = arith.constant 0 : index
    %c0_6 = arith.constant 0 : index
    %7 = vector.load %arg4[%c0_5, %c0_6] : memref<4x128xbf16, #tpu.memory_space<vmem>>, vector<4x128xbf16>
    tpu.vector_store %arg4[%c0_5, %c0_6], %6 {strides = array<i32>} : memref<4x128xbf16, #tpu.memory_space<vmem>>, vector<4x128xbf16>,
    return
  }
  func.func @transform_0(%arg0: i32) -> (i32, i32) {
    %c0_i32 = arith.constant 0 : i32
    %c0_i32_0 = arith.constant 0 : i32
    return %arg0, %c0_i32 : i32, i32
  }
  func.func @transform_1(%arg0: i32) -> (i32, i32) {
    %c0_i32 = arith.constant 0 : i32
    %c0_i32_0 = arith.constant 0 : i32
    %c0_i32_1 = arith.constant 0 : i32
    return %c0_i32, %c0_i32_0 : i32, i32
  }
  func.func @transform_2(%arg0: i32) -> (i32, i32) {
    %c0_i32 = arith.constant 0 : i32
    %c0_i32_0 = arith.constant 0 : i32
    %c0_i32_1 = arith.constant 0 : i32
    return %c0_i32, %c0_i32_0 : i32, i32
  }
  func.func @transform_3(%arg0: i32) -> (i32, i32) {
    %c0_i32 = arith.constant 0 : i32
    %c0_i32_0 = arith.constant 0 : i32
    return %arg0, %c0_i32 : i32, i32
  }
}

module attributes {stable_mosaic.version = 11 : i64} {
  func.func @_linear_kernel(%arg0: i32, %arg1: memref<4x64xbf16, #tpu.memory_space<vmem>>, %arg2: memref<64x64xbf16, #tpu.memory_space<vmem>>, %arg3: memref<1x64xf32, #tpu.memory_space<vmem>>, %arg4: memref<4x64xbf16, #tpu.memory_space<vmem>>) attributes {dimension_semantics = [#tpu.dimension_semantics<parallel>], iteration_bounds = array<i64: 1>, scalar_prefetch = 0 : i64, scratch_operands = 0 : i64, tpu.core_type = #tpu.core_type<tc>, window_params = [{transform_indices = @transform_0, window_bounds = array<i64: 4, 64>}, {pipeline_mode = #tpu.pipeline_mode<synchronous>, transform_indices = @transform_1, window_bounds = array<i64: 64, 64>}, {pipeline_mode = #tpu.pipeline_mode<synchronous>, transform_indices = @transform_2, window_bounds = array<i64: 1, 64>}, {transform_indices = @transform_3, window_bounds = array<i64: 4, 64>}]} {
    %c0 = arith.constant 0 : index
    %c0_0 = arith.constant 0 : index
    %0 = vector.load %arg1[%c0, %c0_0] : memref<4x64xbf16, #tpu.memory_space<vmem>>, vector<4x64xbf16>
    %c0_1 = arith.constant 0 : index
    %c0_2 = arith.constant 0 : index
    %1 = vector.load %arg2[%c0_1, %c0_2] : memref<64x64xbf16, #tpu.memory_space<vmem>>, vector<64x64xbf16>
    %cst = arith.constant dense<0.000000e+00> : vector<4x64xf32>
    %2 = tpu.matmul %0, %1, %cst {dimension_numbers = #tpu.dot_dimension_numbers<[1], [0], [0], [1], [0, 0, 1, 1], [], []>} : vector<4x64xbf16>, vector<64x64xbf16>, vector<4x64xf32> -> vector<4x64xf32>
    %c0_3 = arith.constant 0 : index
    %c0_4 = arith.constant 0 : index
    %3 = vector.load %arg3[%c0_3, %c0_4] : memref<1x64xf32, #tpu.memory_space<vmem>>, vector<1x64xf32>
    %4 = vector.broadcast %3 : vector<1x64xf32> to vector<4x64xf32>
    %5 = arith.addf %2, %4 : vector<4x64xf32>
    %6 = arith.truncf %5 : vector<4x64xf32> to vector<4x64xbf16>
    %c0_5 = arith.constant 0 : index
    %c0_6 = arith.constant 0 : index
    %7 = vector.load %arg4[%c0_5, %c0_6] : memref<4x64xbf16, #tpu.memory_space<vmem>>, vector<4x64xbf16>
    tpu.vector_store %arg4[%c0_5, %c0_6], %6 {strides = array<i32>} : memref<4x64xbf16, #tpu.memory_space<vmem>>, vector<4x64xbf16>,
    return
  }
  func.func @transform_0(%arg0: i32) -> (i32, i32) {
    %c0_i32 = arith.constant 0 : i32
    %c0_i32_0 = arith.constant 0 : i32
    return %arg0, %c0_i32 : i32, i32
  }
  func.func @transform_1(%arg0: i32) -> (i32, i32) {
    %c0_i32 = arith.constant 0 : i32
    %c0_i32_0 = arith.constant 0 : i32
    %c0_i32_1 = arith.constant 0 : i32
    return %c0_i32, %c0_i32_0 : i32, i32
  }
  func.func @transform_2(%arg0: i32) -> (i32, i32) {
    %c0_i32 = arith.constant 0 : i32
    %c0_i32_0 = arith.constant 0 : i32
    %c0_i32_1 = arith.constant 0 : i32
    return %c0_i32, %c0_i32_0 : i32, i32
  }
  func.func @transform_3(%arg0: i32) -> (i32, i32) {
    %c0_i32 = arith.constant 0 : i32
    %c0_i32_0 = arith.constant 0 : i32
    return %arg0, %c0_i32 : i32, i32
  }
}

module attributes {stable_mosaic.version = 11 : i64} {
  func.func @_flash_mha_kernel(%arg0: i32, %arg1: i32, %arg2: memref<1x2x64xbf16, #tpu.memory_space<vmem>>, %arg3: memref<1x2x128xbf16, #tpu.memory_space<vmem>>, %arg4: memref<1x2x64xbf16, #tpu.memory_space<vmem>>, %arg5: memref<4x2x1xf32, #tpu.memory_space<vmem>>, %arg6: memref<4x2x1xf32, #tpu.memory_space<vmem>>, %arg7: memref<4x2x16xf32, #tpu.memory_space<vmem>>) attributes {dimension_semantics = [#tpu.dimension_semantics<parallel>, #tpu.dimension_semantics<arbitrary>], iteration_bounds = array<i64: 2, 1>, scalar_prefetch = 0 : i64, scratch_operands = 3 : i64, tpu.core_type = #tpu.core_type<tc>, window_params = [{transform_indices = @transform_0, window_bounds = array<i64: 1, 2, 64>}, {transform_indices = @transform_1, window_bounds = array<i64: 1, 2, 128>}, {transform_indices = @transform_2, window_bounds = array<i64: 1, 2, 64>}]} {
    %c0_i32 = arith.constant 0 : i32
    %0 = arith.cmpi eq, %arg1, %c0_i32 : i32
    %1 = arith.extui %0 : i1 to i32
    %c0_i32_0 = arith.constant 0 : i32
    %2 = arith.cmpi ne, %1, %c0_i32_0 : i32
    scf.if %2 {
      %cst_92 = arith.constant 0xFF800000 : f32
      %154 = vector.broadcast %cst_92 : f32 to vector<4x2x1xf32>
      %c0_93 = arith.constant 0 : index
      %c0_94 = arith.constant 0 : index
      %c0_95 = arith.constant 0 : index
      %155 = vector.load %arg5[%c0_93, %c0_94, %c0_95] : memref<4x2x1xf32, #tpu.memory_space<vmem>>, vector<4x2x1xf32>
      tpu.vector_store %arg5[%c0_93, %c0_94, %c0_95], %154 {strides = array<i32>} : memref<4x2x1xf32, #tpu.memory_space<vmem>>, vector<4x2x1xf32>,
      %cst_96 = arith.constant 0.000000e+00 : f32
      %156 = vector.broadcast %cst_96 : f32 to vector<4x2x1xf32>
      %c0_97 = arith.constant 0 : index
      %c0_98 = arith.constant 0 : index
      %c0_99 = arith.constant 0 : index
      %157 = vector.load %arg6[%c0_97, %c0_98, %c0_99] : memref<4x2x1xf32, #tpu.memory_space<vmem>>, vector<4x2x1xf32>
      tpu.vector_store %arg6[%c0_97, %c0_98, %c0_99], %156 {strides = array<i32>} : memref<4x2x1xf32, #tpu.memory_space<vmem>>, vector<4x2x1xf32>,
      %cst_100 = arith.constant 0.000000e+00 : f32
      %158 = vector.broadcast %cst_100 : f32 to vector<4x2x16xf32>
      %c0_101 = arith.constant 0 : index
      %c0_102 = arith.constant 0 : index
      %c0_103 = arith.constant 0 : index
      %159 = vector.load %arg7[%c0_101, %c0_102, %c0_103] : memref<4x2x16xf32, #tpu.memory_space<vmem>>, vector<4x2x16xf32>
      tpu.vector_store %arg7[%c0_101, %c0_102, %c0_103], %158 {strides = array<i32>} : memref<4x2x16xf32, #tpu.memory_space<vmem>>, vector<4x2x16xf32>,
    } else {
    }
    %c0 = arith.constant 0 : index
    %c0_1 = arith.constant 0 : index
    %c0_2 = arith.constant 0 : index
    %3 = vector.load %arg2[%c0, %c0_1, %c0_2] : memref<1x2x64xbf16, #tpu.memory_space<vmem>>, vector<1x2x64xbf16>
    %4 = vector.shape_cast %3 : vector<1x2x64xbf16> to vector<2x64xbf16>
    %c0_3 = arith.constant 0 : index
    %c0_4 = arith.constant 0 : index
    %c0_5 = arith.constant 0 : index
    %5 = vector.load %arg3[%c0_3, %c0_4, %c0_5] : memref<1x2x128xbf16, #tpu.memory_space<vmem>>, vector<1x2x128xbf16>
    %6 = vector.shape_cast %5 : vector<1x2x128xbf16> to vector<2x128xbf16>
    %7 = vector.extract_strided_slice %4 {offsets = [0, 0], sizes = [2, 16], strides = [1, 1]} : vector<2x64xbf16> to vector<2x16xbf16>
    %8 = vector.extract_strided_slice %6 {offsets = [0, 0], sizes = [2, 16], strides = [1, 1]} : vector<2x128xbf16> to vector<2x16xbf16>
    %9 = vector.extract_strided_slice %6 {offsets = [0, 64], sizes = [2, 16], strides = [1, 1]} : vector<2x128xbf16> to vector<2x16xbf16>
    %cst = arith.constant dense<0.000000e+00> : vector<2x2xf32>
    %10 = tpu.matmul %7, %8, %cst {dimension_numbers = #tpu.dot_dimension_numbers<[1], [1], [0], [0], [0, 0, 1, 0], [], []>} : vector<2x16xbf16>, vector<2x16xbf16>, vector<2x2xf32> -> vector<2x2xf32>
    %c0_6 = arith.constant 0 : index
    %c0_7 = arith.constant 0 : index
    %c0_8 = arith.constant 0 : index
    %11 = vector.load %arg5[%c0_6, %c0_7, %c0_8] : memref<4x2x1xf32, #tpu.memory_space<vmem>>, vector<1x2x1xf32>
    %12 = vector.shape_cast %11 : vector<1x2x1xf32> to vector<2x1xf32>
    %cst_9 = arith.constant dense<0xFF800000> : vector<2xf32>
    %13 = vector.multi_reduction <maximumf>, %10, %cst_9 [1] : vector<2x2xf32> to vector<2xf32>
    %14 = vector.shape_cast %13 : vector<2xf32> to vector<2x1xf32>
    %15 = arith.maximumf %12, %14 : vector<2x1xf32>
    %16 = arith.subf %12, %15 : vector<2x1xf32>
    %17 = math.exp %16 : vector<2x1xf32>
    %18 = vector.broadcast %15 : vector<2x1xf32> to vector<2x2xf32>
    %19 = arith.subf %10, %18 : vector<2x2xf32>
    %20 = math.exp %19 : vector<2x2xf32>
    %c0_10 = arith.constant 0 : index
    %c0_11 = arith.constant 0 : index
    %c0_12 = arith.constant 0 : index
    %21 = vector.load %arg6[%c0_10, %c0_11, %c0_12] : memref<4x2x1xf32, #tpu.memory_space<vmem>>, vector<1x2x1xf32>
    %22 = vector.shape_cast %21 : vector<1x2x1xf32> to vector<2x1xf32>
    %23 = arith.mulf %17, %22 : vector<2x1xf32>
    %cst_13 = arith.constant dense<0.000000e+00> : vector<2xf32>
    %24 = vector.multi_reduction <add>, %20, %cst_13 [1] : vector<2x2xf32> to vector<2xf32>
    %25 = vector.shape_cast %24 : vector<2xf32> to vector<2x1xf32>
    %26 = arith.addf %23, %25 : vector<2x1xf32>
    %c0_14 = arith.constant 0 : index
    %c0_15 = arith.constant 0 : index
    %c0_16 = arith.constant 0 : index
    %27 = vector.load %arg6[%c0_14, %c0_15, %c0_16] : memref<4x2x1xf32, #tpu.memory_space<vmem>>, vector<1x2x1xf32>
    %28 = vector.shape_cast %27 : vector<1x2x1xf32> to vector<2x1xf32>
    %29 = vector.shape_cast %26 : vector<2x1xf32> to vector<1x2x1xf32>
    tpu.vector_store %arg6[%c0_14, %c0_15, %c0_16], %29 {strides = array<i32>} : memref<4x2x1xf32, #tpu.memory_space<vmem>>, vector<1x2x1xf32>,
    %c0_17 = arith.constant 0 : index
    %c0_18 = arith.constant 0 : index
    %c0_19 = arith.constant 0 : index
    %30 = vector.load %arg7[%c0_17, %c0_18, %c0_19] : memref<4x2x16xf32, #tpu.memory_space<vmem>>, vector<1x2x16xf32>
    %31 = vector.shape_cast %30 : vector<1x2x16xf32> to vector<2x16xf32>
    %32 = vector.broadcast %17 : vector<2x1xf32> to vector<2x16xf32>
    %33 = arith.mulf %32, %31 : vector<2x16xf32>
    %34 = arith.truncf %20 : vector<2x2xf32> to vector<2x2xbf16>
    %cst_20 = arith.constant dense<0.000000e+00> : vector<2x16xf32>
    %35 = tpu.matmul %34, %9, %cst_20 {dimension_numbers = #tpu.dot_dimension_numbers<[1], [0], [0], [1], [0, 0, 1, 1], [], []>} : vector<2x2xbf16>, vector<2x16xbf16>, vector<2x16xf32> -> vector<2x16xf32>
    %36 = arith.addf %33, %35 : vector<2x16xf32>
    %c0_21 = arith.constant 0 : index
    %c0_22 = arith.constant 0 : index
    %c0_23 = arith.constant 0 : index
    %37 = vector.load %arg7[%c0_21, %c0_22, %c0_23] : memref<4x2x16xf32, #tpu.memory_space<vmem>>, vector<1x2x16xf32>
    %38 = vector.shape_cast %37 : vector<1x2x16xf32> to vector<2x16xf32>
    %39 = vector.shape_cast %36 : vector<2x16xf32> to vector<1x2x16xf32>
    tpu.vector_store %arg7[%c0_21, %c0_22, %c0_23], %39 {strides = array<i32>} : memref<4x2x16xf32, #tpu.memory_space<vmem>>, vector<1x2x16xf32>,
    %c0_24 = arith.constant 0 : index
    %c0_25 = arith.constant 0 : index
    %c0_26 = arith.constant 0 : index
    %40 = vector.load %arg5[%c0_24, %c0_25, %c0_26] : memref<4x2x1xf32, #tpu.memory_space<vmem>>, vector<1x2x1xf32>
    %41 = vector.shape_cast %40 : vector<1x2x1xf32> to vector<2x1xf32>
    %42 = vector.shape_cast %15 : vector<2x1xf32> to vector<1x2x1xf32>
    tpu.vector_store %arg5[%c0_24, %c0_25, %c0_26], %42 {strides = array<i32>} : memref<4x2x1xf32, #tpu.memory_space<vmem>>, vector<1x2x1xf32>,
    %43 = vector.extract_strided_slice %4 {offsets = [0, 16], sizes = [2, 16], strides = [1, 1]} : vector<2x64xbf16> to vector<2x16xbf16>
    %44 = vector.extract_strided_slice %6 {offsets = [0, 16], sizes = [2, 16], strides = [1, 1]} : vector<2x128xbf16> to vector<2x16xbf16>
    %45 = vector.extract_strided_slice %6 {offsets = [0, 80], sizes = [2, 16], strides = [1, 1]} : vector<2x128xbf16> to vector<2x16xbf16>
    %cst_27 = arith.constant dense<0.000000e+00> : vector<2x2xf32>
    %46 = tpu.matmul %43, %44, %cst_27 {dimension_numbers = #tpu.dot_dimension_numbers<[1], [1], [0], [0], [0, 0, 1, 0], [], []>} : vector<2x16xbf16>, vector<2x16xbf16>, vector<2x2xf32> -> vector<2x2xf32>
    %c1 = arith.constant 1 : index
    %c0_28 = arith.constant 0 : index
    %c0_29 = arith.constant 0 : index
    %47 = vector.load %arg5[%c1, %c0_28, %c0_29] : memref<4x2x1xf32, #tpu.memory_space<vmem>>, vector<1x2x1xf32>
    %48 = vector.shape_cast %47 : vector<1x2x1xf32> to vector<2x1xf32>
    %cst_30 = arith.constant dense<0xFF800000> : vector<2xf32>
    %49 = vector.multi_reduction <maximumf>, %46, %cst_30 [1] : vector<2x2xf32> to vector<2xf32>
    %50 = vector.shape_cast %49 : vector<2xf32> to vector<2x1xf32>
    %51 = arith.maximumf %48, %50 : vector<2x1xf32>
    %52 = arith.subf %48, %51 : vector<2x1xf32>
    %53 = math.exp %52 : vector<2x1xf32>
    %54 = vector.broadcast %51 : vector<2x1xf32> to vector<2x2xf32>
    %55 = arith.subf %46, %54 : vector<2x2xf32>
    %56 = math.exp %55 : vector<2x2xf32>
    %c1_31 = arith.constant 1 : index
    %c0_32 = arith.constant 0 : index
    %c0_33 = arith.constant 0 : index
    %57 = vector.load %arg6[%c1_31, %c0_32, %c0_33] : memref<4x2x1xf32, #tpu.memory_space<vmem>>, vector<1x2x1xf32>
    %58 = vector.shape_cast %57 : vector<1x2x1xf32> to vector<2x1xf32>
    %59 = arith.mulf %53, %58 : vector<2x1xf32>
    %cst_34 = arith.constant dense<0.000000e+00> : vector<2xf32>
    %60 = vector.multi_reduction <add>, %56, %cst_34 [1] : vector<2x2xf32> to vector<2xf32>
    %61 = vector.shape_cast %60 : vector<2xf32> to vector<2x1xf32>
    %62 = arith.addf %59, %61 : vector<2x1xf32>
    %c1_35 = arith.constant 1 : index
    %c0_36 = arith.constant 0 : index
    %c0_37 = arith.constant 0 : index
    %63 = vector.load %arg6[%c1_35, %c0_36, %c0_37] : memref<4x2x1xf32, #tpu.memory_space<vmem>>, vector<1x2x1xf32>
    %64 = vector.shape_cast %63 : vector<1x2x1xf32> to vector<2x1xf32>
    %65 = vector.shape_cast %62 : vector<2x1xf32> to vector<1x2x1xf32>
    tpu.vector_store %arg6[%c1_35, %c0_36, %c0_37], %65 {strides = array<i32>} : memref<4x2x1xf32, #tpu.memory_space<vmem>>, vector<1x2x1xf32>,
    %c1_38 = arith.constant 1 : index
    %c0_39 = arith.constant 0 : index
    %c0_40 = arith.constant 0 : index
    %66 = vector.load %arg7[%c1_38, %c0_39, %c0_40] : memref<4x2x16xf32, #tpu.memory_space<vmem>>, vector<1x2x16xf32>
    %67 = vector.shape_cast %66 : vector<1x2x16xf32> to vector<2x16xf32>
    %68 = vector.broadcast %53 : vector<2x1xf32> to vector<2x16xf32>
    %69 = arith.mulf %68, %67 : vector<2x16xf32>
    %70 = arith.truncf %56 : vector<2x2xf32> to vector<2x2xbf16>
    %cst_41 = arith.constant dense<0.000000e+00> : vector<2x16xf32>
    %71 = tpu.matmul %70, %45, %cst_41 {dimension_numbers = #tpu.dot_dimension_numbers<[1], [0], [0], [1], [0, 0, 1, 1], [], []>} : vector<2x2xbf16>, vector<2x16xbf16>, vector<2x16xf32> -> vector<2x16xf32>
    %72 = arith.addf %69, %71 : vector<2x16xf32>
    %c1_42 = arith.constant 1 : index
    %c0_43 = arith.constant 0 : index
    %c0_44 = arith.constant 0 : index
    %73 = vector.load %arg7[%c1_42, %c0_43, %c0_44] : memref<4x2x16xf32, #tpu.memory_space<vmem>>, vector<1x2x16xf32>
    %74 = vector.shape_cast %73 : vector<1x2x16xf32> to vector<2x16xf32>
    %75 = vector.shape_cast %72 : vector<2x16xf32> to vector<1x2x16xf32>
    tpu.vector_store %arg7[%c1_42, %c0_43, %c0_44], %75 {strides = array<i32>} : memref<4x2x16xf32, #tpu.memory_space<vmem>>, vector<1x2x16xf32>,
    %c1_45 = arith.constant 1 : index
    %c0_46 = arith.constant 0 : index
    %c0_47 = arith.constant 0 : index
    %76 = vector.load %arg5[%c1_45, %c0_46, %c0_47] : memref<4x2x1xf32, #tpu.memory_space<vmem>>, vector<1x2x1xf32>
    %77 = vector.shape_cast %76 : vector<1x2x1xf32> to vector<2x1xf32>
    %78 = vector.shape_cast %51 : vector<2x1xf32> to vector<1x2x1xf32>
    tpu.vector_store %arg5[%c1_45, %c0_46, %c0_47], %78 {strides = array<i32>} : memref<4x2x1xf32, #tpu.memory_space<vmem>>, vector<1x2x1xf32>,
    %79 = vector.extract_strided_slice %4 {offsets = [0, 32], sizes = [2, 16], strides = [1, 1]} : vector<2x64xbf16> to vector<2x16xbf16>
    %80 = vector.extract_strided_slice %6 {offsets = [0, 32], sizes = [2, 16], strides = [1, 1]} : vector<2x128xbf16> to vector<2x16xbf16>
    %81 = vector.extract_strided_slice %6 {offsets = [0, 96], sizes = [2, 16], strides = [1, 1]} : vector<2x128xbf16> to vector<2x16xbf16>
    %cst_48 = arith.constant dense<0.000000e+00> : vector<2x2xf32>
    %82 = tpu.matmul %79, %80, %cst_48 {dimension_numbers = #tpu.dot_dimension_numbers<[1], [1], [0], [0], [0, 0, 1, 0], [], []>} : vector<2x16xbf16>, vector<2x16xbf16>, vector<2x2xf32> -> vector<2x2xf32>
    %c2 = arith.constant 2 : index
    %c0_49 = arith.constant 0 : index
    %c0_50 = arith.constant 0 : index
    %83 = vector.load %arg5[%c2, %c0_49, %c0_50] : memref<4x2x1xf32, #tpu.memory_space<vmem>>, vector<1x2x1xf32>
    %84 = vector.shape_cast %83 : vector<1x2x1xf32> to vector<2x1xf32>
    %cst_51 = arith.constant dense<0xFF800000> : vector<2xf32>
    %85 = vector.multi_reduction <maximumf>, %82, %cst_51 [1] : vector<2x2xf32> to vector<2xf32>
    %86 = vector.shape_cast %85 : vector<2xf32> to vector<2x1xf32>
    %87 = arith.maximumf %84, %86 : vector<2x1xf32>
    %88 = arith.subf %84, %87 : vector<2x1xf32>
    %89 = math.exp %88 : vector<2x1xf32>
    %90 = vector.broadcast %87 : vector<2x1xf32> to vector<2x2xf32>
    %91 = arith.subf %82, %90 : vector<2x2xf32>
    %92 = math.exp %91 : vector<2x2xf32>
    %c2_52 = arith.constant 2 : index
    %c0_53 = arith.constant 0 : index
    %c0_54 = arith.constant 0 : index
    %93 = vector.load %arg6[%c2_52, %c0_53, %c0_54] : memref<4x2x1xf32, #tpu.memory_space<vmem>>, vector<1x2x1xf32>
    %94 = vector.shape_cast %93 : vector<1x2x1xf32> to vector<2x1xf32>
    %95 = arith.mulf %89, %94 : vector<2x1xf32>
    %cst_55 = arith.constant dense<0.000000e+00> : vector<2xf32>
    %96 = vector.multi_reduction <add>, %92, %cst_55 [1] : vector<2x2xf32> to vector<2xf32>
    %97 = vector.shape_cast %96 : vector<2xf32> to vector<2x1xf32>
    %98 = arith.addf %95, %97 : vector<2x1xf32>
    %c2_56 = arith.constant 2 : index
    %c0_57 = arith.constant 0 : index
    %c0_58 = arith.constant 0 : index
    %99 = vector.load %arg6[%c2_56, %c0_57, %c0_58] : memref<4x2x1xf32, #tpu.memory_space<vmem>>, vector<1x2x1xf32>
    %100 = vector.shape_cast %99 : vector<1x2x1xf32> to vector<2x1xf32>
    %101 = vector.shape_cast %98 : vector<2x1xf32> to vector<1x2x1xf32>
    tpu.vector_store %arg6[%c2_56, %c0_57, %c0_58], %101 {strides = array<i32>} : memref<4x2x1xf32, #tpu.memory_space<vmem>>, vector<1x2x1xf32>,
    %c2_59 = arith.constant 2 : index
    %c0_60 = arith.constant 0 : index
    %c0_61 = arith.constant 0 : index
    %102 = vector.load %arg7[%c2_59, %c0_60, %c0_61] : memref<4x2x16xf32, #tpu.memory_space<vmem>>, vector<1x2x16xf32>
    %103 = vector.shape_cast %102 : vector<1x2x16xf32> to vector<2x16xf32>
    %104 = vector.broadcast %89 : vector<2x1xf32> to vector<2x16xf32>
    %105 = arith.mulf %104, %103 : vector<2x16xf32>
    %106 = arith.truncf %92 : vector<2x2xf32> to vector<2x2xbf16>
    %cst_62 = arith.constant dense<0.000000e+00> : vector<2x16xf32>
    %107 = tpu.matmul %106, %81, %cst_62 {dimension_numbers = #tpu.dot_dimension_numbers<[1], [0], [0], [1], [0, 0, 1, 1], [], []>} : vector<2x2xbf16>, vector<2x16xbf16>, vector<2x16xf32> -> vector<2x16xf32>
    %108 = arith.addf %105, %107 : vector<2x16xf32>
    %c2_63 = arith.constant 2 : index
    %c0_64 = arith.constant 0 : index
    %c0_65 = arith.constant 0 : index
    %109 = vector.load %arg7[%c2_63, %c0_64, %c0_65] : memref<4x2x16xf32, #tpu.memory_space<vmem>>, vector<1x2x16xf32>
    %110 = vector.shape_cast %109 : vector<1x2x16xf32> to vector<2x16xf32>
    %111 = vector.shape_cast %108 : vector<2x16xf32> to vector<1x2x16xf32>
    tpu.vector_store %arg7[%c2_63, %c0_64, %c0_65], %111 {strides = array<i32>} : memref<4x2x16xf32, #tpu.memory_space<vmem>>, vector<1x2x16xf32>,
    %c2_66 = arith.constant 2 : index
    %c0_67 = arith.constant 0 : index
    %c0_68 = arith.constant 0 : index
    %112 = vector.load %arg5[%c2_66, %c0_67, %c0_68] : memref<4x2x1xf32, #tpu.memory_space<vmem>>, vector<1x2x1xf32>
    %113 = vector.shape_cast %112 : vector<1x2x1xf32> to vector<2x1xf32>
    %114 = vector.shape_cast %87 : vector<2x1xf32> to vector<1x2x1xf32>
    tpu.vector_store %arg5[%c2_66, %c0_67, %c0_68], %114 {strides = array<i32>} : memref<4x2x1xf32, #tpu.memory_space<vmem>>, vector<1x2x1xf32>,
    %115 = vector.extract_strided_slice %4 {offsets = [0, 48], sizes = [2, 16], strides = [1, 1]} : vector<2x64xbf16> to vector<2x16xbf16>
    %116 = vector.extract_strided_slice %6 {offsets = [0, 48], sizes = [2, 16], strides = [1, 1]} : vector<2x128xbf16> to vector<2x16xbf16>
    %117 = vector.extract_strided_slice %6 {offsets = [0, 112], sizes = [2, 16], strides = [1, 1]} : vector<2x128xbf16> to vector<2x16xbf16>
    %cst_69 = arith.constant dense<0.000000e+00> : vector<2x2xf32>
    %118 = tpu.matmul %115, %116, %cst_69 {dimension_numbers = #tpu.dot_dimension_numbers<[1], [1], [0], [0], [0, 0, 1, 0], [], []>} : vector<2x16xbf16>, vector<2x16xbf16>, vector<2x2xf32> -> vector<2x2xf32>
    %c3 = arith.constant 3 : index
    %c0_70 = arith.constant 0 : index
    %c0_71 = arith.constant 0 : index
    %119 = vector.load %arg5[%c3, %c0_70, %c0_71] : memref<4x2x1xf32, #tpu.memory_space<vmem>>, vector<1x2x1xf32>
    %120 = vector.shape_cast %119 : vector<1x2x1xf32> to vector<2x1xf32>
    %cst_72 = arith.constant dense<0xFF800000> : vector<2xf32>
    %121 = vector.multi_reduction <maximumf>, %118, %cst_72 [1] : vector<2x2xf32> to vector<2xf32>
    %122 = vector.shape_cast %121 : vector<2xf32> to vector<2x1xf32>
    %123 = arith.maximumf %120, %122 : vector<2x1xf32>
    %124 = arith.subf %120, %123 : vector<2x1xf32>
    %125 = math.exp %124 : vector<2x1xf32>
    %126 = vector.broadcast %123 : vector<2x1xf32> to vector<2x2xf32>
    %127 = arith.subf %118, %126 : vector<2x2xf32>
    %128 = math.exp %127 : vector<2x2xf32>
    %c3_73 = arith.constant 3 : index
    %c0_74 = arith.constant 0 : index
    %c0_75 = arith.constant 0 : index
    %129 = vector.load %arg6[%c3_73, %c0_74, %c0_75] : memref<4x2x1xf32, #tpu.memory_space<vmem>>, vector<1x2x1xf32>
    %130 = vector.shape_cast %129 : vector<1x2x1xf32> to vector<2x1xf32>
    %131 = arith.mulf %125, %130 : vector<2x1xf32>
    %cst_76 = arith.constant dense<0.000000e+00> : vector<2xf32>
    %132 = vector.multi_reduction <add>, %128, %cst_76 [1] : vector<2x2xf32> to vector<2xf32>
    %133 = vector.shape_cast %132 : vector<2xf32> to vector<2x1xf32>
    %134 = arith.addf %131, %133 : vector<2x1xf32>
    %c3_77 = arith.constant 3 : index
    %c0_78 = arith.constant 0 : index
    %c0_79 = arith.constant 0 : index
    %135 = vector.load %arg6[%c3_77, %c0_78, %c0_79] : memref<4x2x1xf32, #tpu.memory_space<vmem>>, vector<1x2x1xf32>
    %136 = vector.shape_cast %135 : vector<1x2x1xf32> to vector<2x1xf32>
    %137 = vector.shape_cast %134 : vector<2x1xf32> to vector<1x2x1xf32>
    tpu.vector_store %arg6[%c3_77, %c0_78, %c0_79], %137 {strides = array<i32>} : memref<4x2x1xf32, #tpu.memory_space<vmem>>, vector<1x2x1xf32>,
    %c3_80 = arith.constant 3 : index
    %c0_81 = arith.constant 0 : index
    %c0_82 = arith.constant 0 : index
    %138 = vector.load %arg7[%c3_80, %c0_81, %c0_82] : memref<4x2x16xf32, #tpu.memory_space<vmem>>, vector<1x2x16xf32>
    %139 = vector.shape_cast %138 : vector<1x2x16xf32> to vector<2x16xf32>
    %140 = vector.broadcast %125 : vector<2x1xf32> to vector<2x16xf32>
    %141 = arith.mulf %140, %139 : vector<2x16xf32>
    %142 = arith.truncf %128 : vector<2x2xf32> to vector<2x2xbf16>
    %cst_83 = arith.constant dense<0.000000e+00> : vector<2x16xf32>
    %143 = tpu.matmul %142, %117, %cst_83 {dimension_numbers = #tpu.dot_dimension_numbers<[1], [0], [0], [1], [0, 0, 1, 1], [], []>} : vector<2x2xbf16>, vector<2x16xbf16>, vector<2x16xf32> -> vector<2x16xf32>
    %144 = arith.addf %141, %143 : vector<2x16xf32>
    %c3_84 = arith.constant 3 : index
    %c0_85 = arith.constant 0 : index
    %c0_86 = arith.constant 0 : index
    %145 = vector.load %arg7[%c3_84, %c0_85, %c0_86] : memref<4x2x16xf32, #tpu.memory_space<vmem>>, vector<1x2x16xf32>
    %146 = vector.shape_cast %145 : vector<1x2x16xf32> to vector<2x16xf32>
    %147 = vector.shape_cast %144 : vector<2x16xf32> to vector<1x2x16xf32>
    tpu.vector_store %arg7[%c3_84, %c0_85, %c0_86], %147 {strides = array<i32>} : memref<4x2x16xf32, #tpu.memory_space<vmem>>, vector<1x2x16xf32>,
    %c3_87 = arith.constant 3 : index
    %c0_88 = arith.constant 0 : index
    %c0_89 = arith.constant 0 : index
    %148 = vector.load %arg5[%c3_87, %c0_88, %c0_89] : memref<4x2x1xf32, #tpu.memory_space<vmem>>, vector<1x2x1xf32>
    %149 = vector.shape_cast %148 : vector<1x2x1xf32> to vector<2x1xf32>
    %150 = vector.shape_cast %123 : vector<2x1xf32> to vector<1x2x1xf32>
    tpu.vector_store %arg5[%c3_87, %c0_88, %c0_89], %150 {strides = array<i32>} : memref<4x2x1xf32, #tpu.memory_space<vmem>>, vector<1x2x1xf32>,
    %c0_i32_90 = arith.constant 0 : i32
    %151 = arith.cmpi eq, %arg1, %c0_i32_90 : i32
    %152 = arith.extui %151 : i1 to i32
    %c0_i32_91 = arith.constant 0 : i32
    %153 = arith.cmpi ne, %152, %c0_i32_91 : i32
    scf.if %153 {
      %c0_92 = arith.constant 0 : index
      %c0_93 = arith.constant 0 : index
      %c0_94 = arith.constant 0 : index
      %154 = vector.load %arg7[%c0_92, %c0_93, %c0_94] : memref<4x2x16xf32, #tpu.memory_space<vmem>>, vector<1x2x16xf32>
      %155 = vector.shape_cast %154 : vector<1x2x16xf32> to vector<2x16xf32>
      %c0_95 = arith.constant 0 : index
      %c0_96 = arith.constant 0 : index
      %c0_97 = arith.constant 0 : index
      %156 = vector.load %arg6[%c0_95, %c0_96, %c0_97] : memref<4x2x1xf32, #tpu.memory_space<vmem>>, vector<1x2x1xf32>
      %157 = vector.shape_cast %156 : vector<1x2x1xf32> to vector<2x1xf32>
      %158 = tpu.reciprocal %157 {approx = true} : vector<2x1xf32> -> vector<2x1xf32>
      %159 = vector.broadcast %158 : vector<2x1xf32> to vector<2x16xf32>
      %160 = arith.mulf %155, %159 : vector<2x16xf32>
      %c1_98 = arith.constant 1 : index
      %c0_99 = arith.constant 0 : index
      %c0_100 = arith.constant 0 : index
      %161 = vector.load %arg7[%c1_98, %c0_99, %c0_100] : memref<4x2x16xf32, #tpu.memory_space<vmem>>, vector<1x2x16xf32>
      %162 = vector.shape_cast %161 : vector<1x2x16xf32> to vector<2x16xf32>
      %c1_101 = arith.constant 1 : index
      %c0_102 = arith.constant 0 : index
      %c0_103 = arith.constant 0 : index
      %163 = vector.load %arg6[%c1_101, %c0_102, %c0_103] : memref<4x2x1xf32, #tpu.memory_space<vmem>>, vector<1x2x1xf32>
      %164 = vector.shape_cast %163 : vector<1x2x1xf32> to vector<2x1xf32>
      %165 = tpu.reciprocal %164 {approx = true} : vector<2x1xf32> -> vector<2x1xf32>
      %166 = vector.broadcast %165 : vector<2x1xf32> to vector<2x16xf32>
      %167 = arith.mulf %162, %166 : vector<2x16xf32>
      %c2_104 = arith.constant 2 : index
      %c0_105 = arith.constant 0 : index
      %c0_106 = arith.constant 0 : index
      %168 = vector.load %arg7[%c2_104, %c0_105, %c0_106] : memref<4x2x16xf32, #tpu.memory_space<vmem>>, vector<1x2x16xf32>
      %169 = vector.shape_cast %168 : vector<1x2x16xf32> to vector<2x16xf32>
      %c2_107 = arith.constant 2 : index
      %c0_108 = arith.constant 0 : index
      %c0_109 = arith.constant 0 : index
      %170 = vector.load %arg6[%c2_107, %c0_108, %c0_109] : memref<4x2x1xf32, #tpu.memory_space<vmem>>, vector<1x2x1xf32>
      %171 = vector.shape_cast %170 : vector<1x2x1xf32> to vector<2x1xf32>
      %172 = tpu.reciprocal %171 {approx = true} : vector<2x1xf32> -> vector<2x1xf32>
      %173 = vector.broadcast %172 : vector<2x1xf32> to vector<2x16xf32>
      %174 = arith.mulf %169, %173 : vector<2x16xf32>
      %c3_110 = arith.constant 3 : index
      %c0_111 = arith.constant 0 : index
      %c0_112 = arith.constant 0 : index
      %175 = vector.load %arg7[%c3_110, %c0_111, %c0_112] : memref<4x2x16xf32, #tpu.memory_space<vmem>>, vector<1x2x16xf32>
      %176 = vector.shape_cast %175 : vector<1x2x16xf32> to vector<2x16xf32>
      %c3_113 = arith.constant 3 : index
      %c0_114 = arith.constant 0 : index
      %c0_115 = arith.constant 0 : index
      %177 = vector.load %arg6[%c3_113, %c0_114, %c0_115] : memref<4x2x1xf32, #tpu.memory_space<vmem>>, vector<1x2x1xf32>
      %178 = vector.shape_cast %177 : vector<1x2x1xf32> to vector<2x1xf32>
      %179 = tpu.reciprocal %178 {approx = true} : vector<2x1xf32> -> vector<2x1xf32>
      %180 = vector.broadcast %179 : vector<2x1xf32> to vector<2x16xf32>
      %181 = arith.mulf %176, %180 : vector<2x16xf32>
      %182 = tpu.concatenate %160, %167, %174, %181 in 1 : vector<2x16xf32>, vector<2x16xf32>, vector<2x16xf32>, vector<2x16xf32> -> vector<2x64xf32>
      %183 = arith.truncf %182 : vector<2x64xf32> to vector<2x64xbf16>
      %c0_116 = arith.constant 0 : index
      %c0_117 = arith.constant 0 : index
      %c0_118 = arith.constant 0 : index
      %184 = vector.load %arg4[%c0_116, %c0_117, %c0_118] : memref<1x2x64xbf16, #tpu.memory_space<vmem>>, vector<1x2x64xbf16>
      %185 = vector.shape_cast %184 : vector<1x2x64xbf16> to vector<2x64xbf16>
      %186 = vector.shape_cast %183 : vector<2x64xbf16> to vector<1x2x64xbf16>
      tpu.vector_store %arg4[%c0_116, %c0_117, %c0_118], %186 {strides = array<i32>} : memref<1x2x64xbf16, #tpu.memory_space<vmem>>, vector<1x2x64xbf16>,
    } else {
    }
    return
  }
  func.func @transform_0(%arg0: i32, %arg1: i32) -> (i32, i32, i32) {
    %c0_i32 = arith.constant 0 : i32
    %c0_i32_0 = arith.constant 0 : i32
    %c0_i32_1 = arith.constant 0 : i32
    return %arg0, %c0_i32, %c0_i32_0 : i32, i32, i32
  }
  func.func @transform_1(%arg0: i32, %arg1: i32) -> (i32, i32, i32) {
    %c0_i32 = arith.constant 0 : i32
    %c0_i32_0 = arith.constant 0 : i32
    return %arg0, %arg1, %c0_i32 : i32, i32, i32
  }
  func.func @transform_2(%arg0: i32, %arg1: i32) -> (i32, i32, i32) {
    %c0_i32 = arith.constant 0 : i32
    %c0_i32_0 = arith.constant 0 : i32
    %c0_i32_1 = arith.constant 0 : i32
    return %arg0, %c0_i32, %c0_i32_0 : i32, i32, i32
  }
}

module attributes {stable_mosaic.version = 11 : i64} {
  func.func @_linear_kernel(%arg0: i32, %arg1: memref<4x64xbf16, #tpu.memory_space<vmem>>, %arg2: memref<64x16xbf16, #tpu.memory_space<vmem>>, %arg3: memref<1x16xf32, #tpu.memory_space<vmem>>, %arg4: memref<4x16xf32, #tpu.memory_space<vmem>>) attributes {dimension_semantics = [#tpu.dimension_semantics<parallel>], iteration_bounds = array<i64: 1>, scalar_prefetch = 0 : i64, scratch_operands = 0 : i64, tpu.core_type = #tpu.core_type<tc>, window_params = [{transform_indices = @transform_0, window_bounds = array<i64: 4, 64>}, {pipeline_mode = #tpu.pipeline_mode<synchronous>, transform_indices = @transform_1, window_bounds = array<i64: 64, 16>}, {pipeline_mode = #tpu.pipeline_mode<synchronous>, transform_indices = @transform_2, window_bounds = array<i64: 1, 16>}, {transform_indices = @transform_3, window_bounds = array<i64: 4, 16>}]} {
    %c0 = arith.constant 0 : index
    %c0_0 = arith.constant 0 : index
    %0 = vector.load %arg1[%c0, %c0_0] : memref<4x64xbf16, #tpu.memory_space<vmem>>, vector<4x64xbf16>
    %c0_1 = arith.constant 0 : index
    %c0_2 = arith.constant 0 : index
    %1 = vector.load %arg2[%c0_1, %c0_2] : memref<64x16xbf16, #tpu.memory_space<vmem>>, vector<64x16xbf16>
    %cst = arith.constant dense<0.000000e+00> : vector<4x16xf32>
    %2 = tpu.matmul %0, %1, %cst {dimension_numbers = #tpu.dot_dimension_numbers<[1], [0], [0], [1], [0, 0, 1, 1], [], []>} : vector<4x64xbf16>, vector<64x16xbf16>, vector<4x16xf32> -> vector<4x16xf32>
    %c0_3 = arith.constant 0 : index
    %c0_4 = arith.constant 0 : index
    %3 = vector.load %arg3[%c0_3, %c0_4] : memref<1x16xf32, #tpu.memory_space<vmem>>, vector<1x16xf32>
    %4 = vector.broadcast %3 : vector<1x16xf32> to vector<4x16xf32>
    %5 = arith.addf %2, %4 : vector<4x16xf32>
    %c0_5 = arith.constant 0 : index
    %c0_6 = arith.constant 0 : index
    %6 = vector.load %arg4[%c0_5, %c0_6] : memref<4x16xf32, #tpu.memory_space<vmem>>, vector<4x16xf32>
    tpu.vector_store %arg4[%c0_5, %c0_6], %5 {strides = array<i32>} : memref<4x16xf32, #tpu.memory_space<vmem>>, vector<4x16xf32>,
    return
  }
  func.func @transform_0(%arg0: i32) -> (i32, i32) {
    %c0_i32 = arith.constant 0 : i32
    %c0_i32_0 = arith.constant 0 : i32
    return %arg0, %c0_i32 : i32, i32
  }
  func.func @transform_1(%arg0: i32) -> (i32, i32) {
    %c0_i32 = arith.constant 0 : i32
    %c0_i32_0 = arith.constant 0 : i32
    %c0_i32_1 = arith.constant 0 : i32
    return %c0_i32, %c0_i32_0 : i32, i32
  }
  func.func @transform_2(%arg0: i32) -> (i32, i32) {
    %c0_i32 = arith.constant 0 : i32
    %c0_i32_0 = arith.constant 0 : i32
    %c0_i32_1 = arith.constant 0 : i32
    return %c0_i32, %c0_i32_0 : i32, i32
  }
  func.func @transform_3(%arg0: i32) -> (i32, i32) {
    %c0_i32 = arith.constant 0 : i32
    %c0_i32_0 = arith.constant 0 : i32
    return %arg0, %c0_i32 : i32, i32
  }
}

</mosaic_0001>

<bundles_post_ra>
// kernel: tpu_custom_call.1
= control target key start
LH: loop header
LB: loop body
LE: loop exit
PB: predicated region body
PF: predicated region fallthrough
CT: control target
= control target key end

     0   :  { %7 = vsyncpa [#allocation3], 0  ;;  %s649_s0 = inlined_call_operand.hbm [shape: f32[16,128], index: 0, kind: input, shape index: {}]   ;;  %s650_s1 = inlined_call_operand.hbm [shape: f32[8,128], index: 1, kind: input, shape index: {}]   ;;  %s651_s2 = inlined_call_operand.hbm [shape: f32[16,128], index: 2, kind: output, shape index: {}]  }
   0x1   :  { %9 = vsyncpa [#allocation3 + $0x1], 0 }
   0x2   :  { %10 = vsyncpa [#allocation6], 0 }
   0x3   :  { %11 = vsyncpa [#allocation4], 0 }
   0x4   :  { %13 = vsyncpa [#allocation4 + $0x1], 0  ;;  %s483_s9 = smov 0   ;;  %s485_s10 = smov 0  }
   0x5   :  { %s487_s11 = smov 0   ;;  %s489_s12 = smov 0  }
   0x6 LB: > { %s504_s13 = sadd.s32 4294967295, %s463_s12   ;;  %s270_s14 = sadd.s32 4294967294, %s463_s12   ;;  %s463_s12 = sphi %s489_s12, %s674_s12   ;;  %s459_s11 = sphi %s487_s11, %s673_s11   ;;  %s455_s10 = sphi %s485_s10, %s672_s10   ;;  %s451_s9 = sphi %s483_s9, %s671_s9  }
   0x7   : > { %p39_p0 = scmp.ne.s32.totalorder %s455_s10, %s451_s9  ;;  %p652_p1 = scmp.eq.s32.totalorder %s504_s13, 0 }
   0x8   : > { %p90_p3 = scmp.eq.s32.totalorder %s270_s14, 1  ;;  %p271_p5 = scmp.ge.s32.totalorder %s463_s12, 1 }
   0x9   : > { %p513_p4 = por %p652_p1, %p39_p0  ;;  %p97_p7 = scmp.lt.s32.totalorder %s463_s12, 3 }
   0xa   : > { %p518_p6 = por %p90_p3, %p39_p0  ;;  %s465_s18 = smov [#allocation5]  }
   0xb   : > { %s656_s15 = scalar_select %p513_p4, 1, 0 }
   0xc   : > { %s657_s16 = scalar_select %p518_p6, 1, 0 }
   0xd   : > { %p523_p8 = pnand %p271_p5, %p97_p7  ;;  %s110_s19 = sshll.u32 %s465_s18, 4  ;;  %s111_s19 = int_to_ptr.vmem [resolvable:$true] %s110_s19 }
   0xe   : > { %s531_s20 = sadd.s32 1, %s463_s12   ;;  %s26_s24 = sadd.s32 1, %s459_s11 }
   0xf   : > { %s658_s17 = scalar_select %p523_p8, 1, 0 }
  0x10   : > { %p292_p10 = pneg %p523_p8  ;;  %s23_s22 = ssub.s32 %s463_s12, %s531_s20 }
  0x11   : > { %p541_p12 = scmp.eq.s32.totalorder %s23_s22, 0  ;;  %p33_p13 = scmp.ne.s32.totalorder %s459_s11, %s455_s10 }
  0x12   : > { %p535_p11 = pnand %p292_p10, %p652_p1  ;;  %s352_s25 = scalar_lea.vmem %s111_s19, 128 }
  0x13   : > { %p353_p3 = scmp.ne.s32.totalorder %s111_s19, %s352_s25  ;;  %p360_p9 = scmp.lt.s32.totalorder %s111_s19, %s111_s19 }
  0x14   : > { %p343_p0 = pneg %p535_p11  ;;  %p361_p2 = scmp.lt.s32.totalorder %s352_s25, %s352_s25 }
  0x16   : > { %p355_p5 = pnand %p353_p3, %p343_p0  ;;  %p362_p10 = por %p361_p2, %p360_p9 }
  0x18   : > { %p356_p7 = pneg %p355_p5 }
  0x1a   : > { %p363_p1 = pnand %p362_p10, %p356_p7 }
  0x1c   : > { %366 = shalt.err (!%p363_p1)
}
  0x1d   : > { %295 = dma.hbm_to_vmem [thread:$0]  (!%p535_p11), %s650_s1, 128, %s111_s19, [#allocation6]  }
  0x1e   : > { %s558_s28 = scalar_select %p541_p12, %s459_s11, %s26_s24  }
  0x1f   : > { %p34_p1 = scmp.eq.s32.totalorder %s463_s12, 0  ;;  %p661_p2 = scmp.eq.s32.totalorder %s504_s13, 1 }
  0x20   : > { %p305_p0 = scmp.lt.s32.totalorder %s463_s12, 2  ;;  %s121_s30 = sand.u32 1, %s459_s11  }
  0x21   : > { %p566_p9 = por %p661_p2, %p33_p13  ;;  %p35_p3 = por %p34_p1, %p33_p13 }
  0x22   : > { %s274_s3 = sshll.u32 %s121_s30, 3  ;;  %s275_s4 = sshll.u32 %s463_s12, 7 }
  0x23   : > { %s662_s29 = scalar_select %p566_p9, 1, 0 }
  0x24   : > { %s579_s7 = scalar_lea.hbm %s649_s0, %s275_s4  ;;  %s125_s8 = scalar_lea.vmem [#allocation2], %s274_s3 }
  0x25   : > { %s132_s14 = sshll.u32 %s125_s8, 4  ;;  %p581_p11 = pnand %p305_p0, %p35_p3  ;;  %s133_s14 = int_to_ptr.vmem [resolvable:$true] %s132_s14 }
  0x26   : > { %s122_s19 = scalar_lea.sflag [#allocation3], %s121_s30  ;;  %s367_s21 = scalar_lea.hbm %s579_s7, 128 }
  0x27   : > { %p368_p12 = scmp.ne.s32.totalorder %s579_s7, %s367_s21  ;;  %p369_p13 = pneg %p581_p11 }
  0x28   : > { %s372_s24 = scalar_lea.hbm %s649_s0, 256  ;;  %p373_p10 = scmp.lt.s32.totalorder %s579_s7, %s649_s0 }
  0x29   : > { %p370_p5 = pnand %p369_p13, %p368_p12  ;;  %p374_p1 = scmp.lt.s32.totalorder %s372_s24, %s367_s21 }
  0x2b   : > { %p371_p7 = pneg %p370_p5  ;;  %p375_p2 = por %p374_p1, %p373_p10 }
  0x2d   : > { %p376_p0 = pnand %p375_p2, %p371_p7 }
  0x2f   : > { %379 = shalt.err (!%p376_p0)
}
  0x30   : > { %s380_s27 = scalar_lea.vmem %s133_s14, 128  ;;  %s466_s30 = smov [#allocation2]  }
  0x31   : > { %p381_p3 = scmp.ne.s32.totalorder %s133_s14, %s380_s27  ;;  %s385_s3 = sshll.u32 %s466_s30, 4  ;;  %s386_s3 = int_to_ptr.vmem [resolvable:$false] %s385_s3 }
  0x32   : > { %s387_s4 = scalar_lea.vmem %s386_s3, 256  ;;  %p388_p12 = scmp.lt.s32.totalorder %s133_s14, %s386_s3 }
  0x33   : > { %p383_p6 = pnand %p381_p3, %p369_p13  ;;  %p389_p5 = scmp.lt.s32.totalorder %s387_s4, %s380_s27 }
  0x35   : > { %p384_p9 = pneg %p383_p6  ;;  %p390_p4 = por %p389_p5, %p388_p12 }
  0x37   : > { %p391_p8 = pnand %p390_p4, %p384_p9 }
  0x39   : > { %394 = shalt.err (!%p391_p8)
}
  0x3a   : > { %299 = dma.hbm_to_vmem [thread:$0]  (!%p581_p11), %s579_s7, 128, %s133_s14, %s122_s19  }
  0x3b   : > { %p664_p7 = scmp.ne.s32.totalorder %s658_s17, 0 }
  0x3c   : > { %s602_s5 = sand.u32 (!%p664_p7), 1, %s455_s10   ;;  %p665_p6 = scmp.ne.s32.totalorder (!%p664_p7), %s656_s15, 0 }
  0x3d   : > { %141 = sbr.rel (%p664_p7) target bundleno = 95 (0x5f), region = 28  ;;  %s277_s6 = sshll.u32 (!%p664_p7), %s602_s5, 3 }
  0x3e   : > { %s144_s8 = scalar_lea.sflag (!%p664_p7), [#allocation3], %s602_s5  ;;  %s147_s21 = scalar_lea.vmem (!%p664_p7), [#allocation2], %s277_s6 }
  0x42   : > { %438 = dma.done.wait (%p665_p6), %s144_s8, 128  }
  0x43   : > { %440 = vsyncadd (%p665_p6), %s144_s8, 4294967168  ;;  %p666_p4 = scmp.eq.s32.totalorder %s504_s13, 0 }
  0x45   : > { %442 = dma.done.wait (%p666_p4), [#allocation6], 128   ;;  %p667_p8 = pmov %p666_p4 }
  0x46   : > { %s171_s17 = scalar_lea.vmem [#allocation7], %s277_s6  ;;  %s281_s14 = sshll.u32 %s504_s13, 7  ;;  %v172_v0 = vld [vmem:[%s147_s21] sm:$0xff]  ;;  %v173_v1 = vld [vmem:[#allocation5] sm:$0xff] }
  0x47   : > { %444 = vsyncadd (%p667_p8), [#allocation6], 4294967168  ;;  %s190_s7 = sshll.u32 %s171_s17, 4  ;;  %v174_v2 = vadd.f32 %v173_v1, %v172_v0  ;;  %s188_s15 = scalar_lea.hbm %s651_s2, %s281_s14  ;;  %s191_s7 = int_to_ptr.vmem [resolvable:$true] %s190_s7 }
  0x48   : > { %s177_s22 = scalar_lea.sflag [#allocation4], %s602_s5  ;;  %s395_s23 = scalar_lea.vmem %s191_s7, 128 }
  0x49   : > { %175 = vst [vmem:[%s171_s17] sm:$0xff] %v174_v2  ;;  %p396_p9 = scmp.ne.s32.totalorder %s191_s7, %s395_s23  ;;  %p668_p11 = scmp.ne.s32.totalorder %s662_s29, 0 }
  0x4a   : > { %s467_s24 = smov [#allocation7]  }
  0x4b   : > { %p397_p13 = pnand %p396_p9, %p668_p11  ;;  %s399_s25 = sshll.u32 %s467_s24, 4  ;;  %s400_s25 = int_to_ptr.vmem [resolvable:$false] %s399_s25 }
  0x4c   : > { %s401_s26 = scalar_lea.vmem %s400_s25, 256  ;;  %p402_p1 = scmp.lt.s32.totalorder %s191_s7, %s400_s25 }
  0x4d   : > { %p398_p10 = pneg %p397_p13  ;;  %p403_p2 = scmp.lt.s32.totalorder %s401_s26, %s395_s23 }
  0x4f   : > { %p404_p0 = por %p403_p2, %p402_p1 }
  0x51   : > { %p405_p3 = pnand %p404_p0, %p398_p10 }
  0x53   : > { %408 = shalt.err (!%p405_p3)
}
  0x54   : > { %s409_s13 = scalar_lea.hbm %s188_s15, 128  ;;  %s413_s3 = scalar_lea.hbm %s651_s2, 256 }
  0x55   : > { %p410_p12 = scmp.ne.s32.totalorder %s188_s15, %s409_s13  ;;  %p414_p6 = scmp.lt.s32.totalorder %s188_s15, %s651_s2 }
  0x56   : > { %p415_p4 = scmp.lt.s32.totalorder %s413_s3, %s409_s13 }
  0x57   : > { %p411_p5 = pnand %p410_p12, %p668_p11 }
  0x58   : > { %p416_p8 = por %p415_p4, %p414_p6 }
  0x59   : > { %p412_p7 = pneg %p411_p5 }
  0x5b   : > { %p417_p9 = pnand %p416_p8, %p412_p7 }
  0x5d   : > { %420 = shalt.err (!%p417_p9)
}
  0x5e   : > { %290 = dma.vmem_to_hbm [thread:$0]  (%p668_p11), %s191_s7, 128, %s188_s15, %s177_s22  }
  0x5f PF: > { %s202_s6 = sand.u32 1, %s451_s9   ;;  %p669_p13 = scmp.ne.s32.totalorder %s657_s16, 0 }
  0x60   : > { %p670_p10 = scmp.ge.s32.totalorder %s463_s12, 2  ;;  %s203_s8 = scalar_lea.sflag [#allocation4], %s202_s6 }
  0x62   : > { %p301_p1 = pnand %p670_p10, %p669_p13 }
  0x64   : > { %p302_p2 = pneg %p301_p1 }
  0x66   : > { %446 = dma.done.wait (%p302_p2), %s203_s8, 128  }
  0x67   : > { %448 = vsyncadd (%p302_p2), %s203_s8, 4294967168  ;;  %p16_p0 = scmp.ge.s32.totalorder %s531_s20, 4   ;;  %s671_s9 = smov %s455_s10 }
  0x68   : > { %s672_s10 = smov %s459_s11  ;;  %s673_s11 = smov %s558_s28 }
  0x69   : > { %s674_s12 = smov %s531_s20  ;;  %18 = sbr.rel (!%p16_p0) target bundleno = 6 (0x6), region = 77 }
  0x6e   :  { %208 = vsyncpa [#allocation3], 1 }
  0x6f   :  { %210 = vsyncpa [#allocation3 + $0x1], 1 }
  0x70   :  { %211 = vsyncpa [#allocation6], 1 }
  0x71   :  { %212 = vsyncpa [#allocation4], 1 }
  0x72   :  { %214 = vsyncpa [#allocation4 + $0x1], 1 }

// kernel: speech_transformer_forward.42
= control target key start
LH: loop header
LB: loop body
LE: loop exit
PB: predicated region body
PF: predicated region fallthrough
CT: control target
= control target key end

     0   :  { %vm190_vm0 = vcmask 1043456   ;;  %vm191_vm1 = vcmask 1044480   ;;  %vm141_vm2 = vcmask 72704   ;;  %v724_v1 = vmov 65535   ;;  %s977_s1 = inlined_call_operand.vmem [shape: bf16[9,64], index: 1, kind: input, shape index: {}]   ;;  %s978_s0 = inlined_call_operand.vmem [shape: bf16[256,9], index: 0, kind: input, shape index: {}]   ;;  %s979_s2 = inlined_call_operand.vmem [shape: f32[1,64], index: 2, kind: input, shape index: {}]   ;;  %s980_s3 = inlined_call_operand.vmem [shape: bf16[256,64], index: 3, kind: output, shape index: {}]  }
   0x1   :  { %v707_v0 = vld [vmem:[%s977_s1] sm:$0x1f]   ;;  %v192_v2 = vsel %vm190_vm0, 4294967295, %v724_v1  ;;  %v710_v7 = vld [vmem:[%s978_s0 + $0x8] sm:$0xff]   ;;  %v712_v9 = vld [vmem:[%s978_s0 + $0x10] sm:$0xff]   ;;  %vm518_vm3 = vcmask 519168  }
   0x2   :  { %v708_v3 = vld [vmem:[%s978_s0] sm:$0xff]   ;;  %v193_v4 = vsel %vm191_vm1, %v192_v2, 0  ;;  %v711_v8 = vld [vmem:[%s978_s0 + $0x48] sm:$0xff]   ;;  %v713_v10 = vld [vmem:[%s978_s0 + $0x50] sm:$0xff]  }
   0x3   :  { %v709_v5 = vld [vmem:[%s978_s0 + $0x40] sm:$0xff]   ;;  %v195_v6 = vand.u32 %v707_v0, %v193_v4  ;;  %672 = vmatprep.mubr.msk.bf16.mxu0 %vm141_vm2, %v708_v3  ;;  %v714_v11 = vld [vmem:[%s978_s0 + $0x18] sm:$0xff]   ;;  %v718_v15 = vld [vmem:[%s978_s0 + $0x28] sm:$0xff]  }
   0x4   :  { %688 = vmatprep.mubr.msk.bf16.mxu1 %vm141_vm2, %v709_v5  ;;  %v715_v12 = vld [vmem:[%s978_s0 + $0x58] sm:$0xff]   ;;  %v716_v13 = vld [vmem:[%s978_s0 + $0x20] sm:$0xff]   ;;  %v719_v16 = vld [vmem:[%s978_s0 + $0x68] sm:$0xff]  }
   0x5   :  { %670 = vmatprep.subr.bf16.mxu0 %v195_v6  ;;  %704 = vmatprep.subr.bf16.mxu1 %v195_v6  ;;  %v717_v14 = vld [vmem:[%s978_s0 + $0x60] sm:$0xff]   ;;  %v720_v17 = vld [vmem:[%s978_s0 + $0x30] sm:$0xff]   ;;  %v722_v19 = vld [vmem:[%s978_s0 + $0x38] sm:$0xff]  }
   0x6   :  { %671 = vmatpush3.bf16.msra.mxu0 %v195_v6  ;;  %705 = vmatpush3.bf16.msra.mxu1 %v195_v6  ;;  %v721_v18 = vld [vmem:[%s978_s0 + $0x70] sm:$0xff]   ;;  %v723_v20 = vld [vmem:[%s978_s0 + $0x78] sm:$0xff]   ;;  %v815_v21 = vld [vmem:[%s979_s2] ss:$0 sm:$0xff] }
   0x9   :  { %673 = vmatmul.mubr.msk.bf16.vlgmr.msra.gmra.mxu0 %vm141_vm2, %v710_v7  ;;  %689 = vmatmul.mubr.msk.bf16.vlgmr.msra.gmra.mxu1 %vm141_vm2, %v711_v8 }
   0xa   :  { %676 = vmatprep.mubr.msk.bf16.mxu0 %vm141_vm2, %v712_v9  ;;  %692 = vmatprep.mubr.msk.bf16.mxu1 %vm141_vm2, %v713_v10 }
  0x11   :  { %677 = vmatmul.mubr.msk.bf16.gmra.mxu0 %vm141_vm2, %v714_v11  ;;  %693 = vmatmul.mubr.msk.bf16.gmra.mxu1 %vm141_vm2, %v715_v12 }
  0x12   :  { %680 = vmatprep.mubr.msk.bf16.mxu0 %vm141_vm2, %v716_v13  ;;  %696 = vmatprep.mubr.msk.bf16.mxu1 %vm141_vm2, %v717_v14 }
  0x19   :  { %681 = vmatmul.mubr.msk.bf16.gmra.mxu0 %vm141_vm2, %v718_v15  ;;  %697 = vmatmul.mubr.msk.bf16.gmra.mxu1 %vm141_vm2, %v719_v16 }
  0x1a   :  { %684 = vmatprep.mubr.msk.bf16.mxu0 %vm141_vm2, %v720_v17  ;;  %700 = vmatprep.mubr.msk.bf16.mxu1 %vm141_vm2, %v721_v18 }
  0x21   :  { %685 = vmatmul.mubr.msk.bf16.gmra.mxu0 %vm141_vm2, %v722_v19  ;;  %701 = vmatmul.mubr.msk.bf16.gmra.mxu1 %vm141_vm2, %v723_v20 }
  0xc9   :  { %v674_v22 = vpop.f32.mrf.mxu0  ;;  %v690_v23 = vpop.f32.mrf.mxu1 }
  0xca   :  { %v240_v24 = vadd.f32 %v674_v22, %v815_v21  ;;  %v304_v25 = vadd.f32 %v690_v23, %v815_v21 }
  0xcb   :  { %v231_v26 = vpop.f32.mrf.mxu0  ;;  %v295_v27 = vpop.f32.mrf.mxu1 }
  0xcc   :  { %v360_v28 = vmax.f32 %v240_v24, 0.0  ;;  %v376_v29 = vmax.f32 %v304_v25, 0.0  ;;  %v232_v30 = vadd.f32 %v815_v21, %v231_v26  ;;  %v296_v31 = vadd.f32 %v815_v21, %v295_v27 }
  0xcd   :  { %v675_v32 = vpop.f32.mrf.mxu0  ;;  %v691_v33 = vpop.f32.mrf.mxu1 }
  0xce   :  { %v623_v34 = vpack.c.bf16 %v360_v28, %v360_v28  ;;  %v639_v35 = vpack.c.bf16 %v376_v29, %v376_v29  ;;  %v358_v36 = vmax.f32 %v232_v30, 0.0  ;;  %v374_v37 = vmax.f32 %v296_v31, 0.0 }
  0xcf   :  { %v243_v38 = vadd.f32 %v675_v32, %v815_v21  ;;  %v307_v39 = vadd.f32 %v691_v33, %v815_v21  ;;  %v234_v40 = vpop.f32.mrf.mxu0  ;;  %v298_v41 = vpop.f32.mrf.mxu1 }
  0xd0   :  { %521 = vst.msk [vmem:[%s980_s3 + $0x8] sm:$0xf] %vm518_vm3, %v623_v34  ;;  %537 = vst.msk [vmem:[%s980_s3 + $0x48] sm:$0xf] %vm518_vm3, %v639_v35  ;;  %v621_v42 = vpack.c.bf16 %v358_v36, %v358_v36  ;;  %v637_v43 = vpack.c.bf16 %v374_v37, %v374_v37  ;;  %v235_v44 = vadd.f32 %v815_v21, %v234_v40 }
  0xd1   :  { %v299_v45 = vadd.f32 %v815_v21, %v298_v41  ;;  %v361_v46 = vmax.f32 %v243_v38, 0.0  ;;  %v377_v47 = vmax.f32 %v307_v39, 0.0  ;;  %v678_v48 = vpop.f32.mrf.mxu0  ;;  %v694_v49 = vpop.f32.mrf.mxu1 }
  0xd2   :  { %519 = vst.msk [vmem:[%s980_s3] sm:$0xf] %vm518_vm3, %v621_v42  ;;  %535 = vst.msk [vmem:[%s980_s3 + $0x40] sm:$0xf] %vm518_vm3, %v637_v43  ;;  %v359_v50 = vmax.f32 %v235_v44, 0.0  ;;  %v256_v52 = vadd.f32 %v678_v48, %v815_v21  ;;  %v320_v53 = vadd.f32 %v694_v49, %v815_v21 }
  0xd3   :  { %v375_v51 = vmax.f32 %v299_v45, 0.0  ;;  %v624_v54 = vpack.c.bf16 %v361_v46, %v361_v46  ;;  %v640_v55 = vpack.c.bf16 %v377_v47, %v377_v47  ;;  %v247_v56 = vpop.f32.mrf.mxu0  ;;  %v311_v57 = vpop.f32.mrf.mxu1 }
  0xd4   :  { %v622_v58 = vpack.c.bf16 %v359_v50, %v359_v50  ;;  %v364_v60 = vmax.f32 %v256_v52, 0.0  ;;  %v380_v61 = vmax.f32 %v320_v53, 0.0  ;;  %v248_v62 = vadd.f32 %v815_v21, %v247_v56 }
  0xd5   :  { %v638_v59 = vpack.c.bf16 %v375_v51, %v375_v51  ;;  %522 = vst.msk [vmem:[%s980_s3 + $0xc] sm:$0xf] %vm518_vm3, %v624_v54  ;;  %538 = vst.msk [vmem:[%s980_s3 + $0x4c] sm:$0xf] %vm518_vm3, %v640_v55  ;;  %v312_v63 = vadd.f32 %v815_v21, %v311_v57  ;;  %v679_v0 = vpop.f32.mrf.mxu0  ;;  %v695_v1 = vpop.f32.mrf.mxu1 }
  0xd6   :  { %520 = vst.msk [vmem:[%s980_s3 + $0x4] sm:$0xf] %vm518_vm3, %v622_v58  ;;  %v627_v2 = vpack.c.bf16 %v364_v60, %v364_v60  ;;  %v643_v3 = vpack.c.bf16 %v380_v61, %v380_v61  ;;  %v259_v4 = vadd.f32 %v679_v0, %v815_v21  ;;  %v323_v5 = vadd.f32 %v695_v1, %v815_v21 }
  0xd7   :  { %536 = vst.msk [vmem:[%s980_s3 + $0x44] sm:$0xf] %vm518_vm3, %v638_v59  ;;  %v362_v6 = vmax.f32 %v248_v62, 0.0  ;;  %v378_v7 = vmax.f32 %v312_v63, 0.0  ;;  %v250_v8 = vpop.f32.mrf.mxu0  ;;  %v314_v9 = vpop.f32.mrf.mxu1 }
  0xd8   :  { %525 = vst.msk [vmem:[%s980_s3 + $0x18] sm:$0xf] %vm518_vm3, %v627_v2  ;;  %541 = vst.msk [vmem:[%s980_s3 + $0x58] sm:$0xf] %vm518_vm3, %v643_v3  ;;  %v365_v10 = vmax.f32 %v259_v4, 0.0  ;;  %v381_v11 = vmax.f32 %v323_v5, 0.0  ;;  %v251_v12 = vadd.f32 %v815_v21, %v250_v8  ;;  %v315_v13 = vadd.f32 %v815_v21, %v314_v9 }
  0xd9   :  { %v625_v14 = vpack.c.bf16 %v362_v6, %v362_v6  ;;  %v641_v15 = vpack.c.bf16 %v378_v7, %v378_v7  ;;  %v682_v16 = vpop.f32.mrf.mxu0  ;;  %v698_v17 = vpop.f32.mrf.mxu1 }
  0xda   :  { %v628_v18 = vpack.c.bf16 %v365_v10, %v365_v10  ;;  %v644_v19 = vpack.c.bf16 %v381_v11, %v381_v11  ;;  %v363_v20 = vmax.f32 %v251_v12, 0.0  ;;  %v379_v22 = vmax.f32 %v315_v13, 0.0 }
  0xdb   :  { %523 = vst.msk [vmem:[%s980_s3 + $0x10] sm:$0xf] %vm518_vm3, %v625_v14  ;;  %539 = vst.msk [vmem:[%s980_s3 + $0x50] sm:$0xf] %vm518_vm3, %v641_v15  ;;  %v272_v23 = vadd.f32 %v682_v16, %v815_v21  ;;  %v336_v24 = vadd.f32 %v698_v17, %v815_v21  ;;  %v263_v25 = vpop.f32.mrf.mxu0  ;;  %v327_v26 = vpop.f32.mrf.mxu1 }
  0xdc   :  { %526 = vst.msk [vmem:[%s980_s3 + $0x1c] sm:$0xf] %vm518_vm3, %v628_v18  ;;  %542 = vst.msk [vmem:[%s980_s3 + $0x5c] sm:$0xf] %vm518_vm3, %v644_v19  ;;  %v626_v27 = vpack.c.bf16 %v363_v20, %v363_v20  ;;  %v642_v28 = vpack.c.bf16 %v379_v22, %v379_v22  ;;  %v264_v29 = vadd.f32 %v815_v21, %v263_v25 }
  0xdd   :  { %v328_v30 = vadd.f32 %v815_v21, %v327_v26  ;;  %v368_v31 = vmax.f32 %v272_v23, 0.0  ;;  %v384_v32 = vmax.f32 %v336_v24, 0.0  ;;  %v683_v33 = vpop.f32.mrf.mxu0  ;;  %v699_v34 = vpop.f32.mrf.mxu1 }
  0xde   :  { %524 = vst.msk [vmem:[%s980_s3 + $0x14] sm:$0xf] %vm518_vm3, %v626_v27  ;;  %540 = vst.msk [vmem:[%s980_s3 + $0x54] sm:$0xf] %vm518_vm3, %v642_v28  ;;  %v366_v35 = vmax.f32 %v264_v29, 0.0  ;;  %v275_v37 = vadd.f32 %v683_v33, %v815_v21  ;;  %v339_v38 = vadd.f32 %v699_v34, %v815_v21 }
  0xdf   :  { %v382_v36 = vmax.f32 %v328_v30, 0.0  ;;  %v631_v39 = vpack.c.bf16 %v368_v31, %v368_v31  ;;  %v647_v40 = vpack.c.bf16 %v384_v32, %v384_v32  ;;  %v266_v41 = vpop.f32.mrf.mxu0  ;;  %v330_v42 = vpop.f32.mrf.mxu1 }
  0xe0   :  { %v629_v43 = vpack.c.bf16 %v366_v35, %v366_v35  ;;  %v369_v45 = vmax.f32 %v275_v37, 0.0  ;;  %v385_v46 = vmax.f32 %v339_v38, 0.0  ;;  %v267_v47 = vadd.f32 %v815_v21, %v266_v41 }
  0xe1   :  { %v645_v44 = vpack.c.bf16 %v382_v36, %v382_v36  ;;  %529 = vst.msk [vmem:[%s980_s3 + $0x28] sm:$0xf] %vm518_vm3, %v631_v39  ;;  %545 = vst.msk [vmem:[%s980_s3 + $0x68] sm:$0xf] %vm518_vm3, %v647_v40  ;;  %v331_v48 = vadd.f32 %v815_v21, %v330_v42  ;;  %v686_v49 = vpop.f32.mrf.mxu0  ;;  %v702_v50 = vpop.f32.mrf.mxu1 }
  0xe2   :  { %527 = vst.msk [vmem:[%s980_s3 + $0x20] sm:$0xf] %vm518_vm3, %v629_v43  ;;  %v632_v51 = vpack.c.bf16 %v369_v45, %v369_v45  ;;  %v648_v52 = vpack.c.bf16 %v385_v46, %v385_v46  ;;  %v288_v53 = vadd.f32 %v686_v49, %v815_v21  ;;  %v352_v54 = vadd.f32 %v702_v50, %v815_v21 }
  0xe3   :  { %543 = vst.msk [vmem:[%s980_s3 + $0x60] sm:$0xf] %vm518_vm3, %v645_v44  ;;  %v367_v55 = vmax.f32 %v267_v47, 0.0  ;;  %v383_v56 = vmax.f32 %v331_v48, 0.0  ;;  %v279_v57 = vpop.f32.mrf.mxu0  ;;  %v343_v58 = vpop.f32.mrf.mxu1 }
  0xe4   :  { %530 = vst.msk [vmem:[%s980_s3 + $0x2c] sm:$0xf] %vm518_vm3, %v632_v51  ;;  %546 = vst.msk [vmem:[%s980_s3 + $0x6c] sm:$0xf] %vm518_vm3, %v648_v52  ;;  %v372_v59 = vmax.f32 %v288_v53, 0.0  ;;  %v388_v60 = vmax.f32 %v352_v54, 0.0  ;;  %v280_v61 = vadd.f32 %v815_v21, %v279_v57  ;;  %v344_v62 = vadd.f32 %v815_v21, %v343_v58 }
  0xe5   :  { %v630_v63 = vpack.c.bf16 %v367_v55, %v367_v55  ;;  %v646_v0 = vpack.c.bf16 %v383_v56, %v383_v56  ;;  %v687_v1 = vpop.f32.mrf.mxu0  ;;  %v703_v2 = vpop.f32.mrf.mxu1 }
  0xe6   :  { %v635_v3 = vpack.c.bf16 %v372_v59, %v372_v59  ;;  %v651_v4 = vpack.c.bf16 %v388_v60, %v388_v60  ;;  %v370_v5 = vmax.f32 %v280_v61, 0.0  ;;  %v386_v6 = vmax.f32 %v344_v62, 0.0 }
  0xe7   :  { %528 = vst.msk [vmem:[%s980_s3 + $0x24] sm:$0xf] %vm518_vm3, %v630_v63  ;;  %544 = vst.msk [vmem:[%s980_s3 + $0x64] sm:$0xf] %vm518_vm3, %v646_v0  ;;  %v291_v7 = vadd.f32 %v687_v1, %v815_v21  ;;  %v355_v8 = vadd.f32 %v703_v2, %v815_v21  ;;  %v282_v9 = vpop.f32.mrf.mxu0  ;;  %v346_v10 = vpop.f32.mrf.mxu1 }
  0xe8   :  { %533 = vst.msk [vmem:[%s980_s3 + $0x38] sm:$0xf] %vm518_vm3, %v635_v3  ;;  %549 = vst.msk [vmem:[%s980_s3 + $0x78] sm:$0xf] %vm518_vm3, %v651_v4  ;;  %v633_v11 = vpack.c.bf16 %v370_v5, %v370_v5  ;;  %v649_v12 = vpack.c.bf16 %v386_v6, %v386_v6  ;;  %v283_v13 = vadd.f32 %v815_v21, %v282_v9 }
  0xe9   :  { %v347_v14 = vadd.f32 %v815_v21, %v346_v10  ;;  %v373_v15 = vmax.f32 %v291_v7, 0.0  ;;  %v389_v16 = vmax.f32 %v355_v8, 0.0 }
  0xea   :  { %531 = vst.msk [vmem:[%s980_s3 + $0x30] sm:$0xf] %vm518_vm3, %v633_v11  ;;  %547 = vst.msk [vmem:[%s980_s3 + $0x70] sm:$0xf] %vm518_vm3, %v649_v12  ;;  %v371_v17 = vmax.f32 %v283_v13, 0.0 }
  0xeb   :  { %v387_v18 = vmax.f32 %v347_v14, 0.0  ;;  %v636_v19 = vpack.c.bf16 %v373_v15, %v373_v15  ;;  %v652_v20 = vpack.c.bf16 %v389_v16, %v389_v16 }
  0xec   :  { %v634_v22 = vpack.c.bf16 %v371_v17, %v371_v17 }
  0xed   :  { %v650_v23 = vpack.c.bf16 %v387_v18, %v387_v18  ;;  %534 = vst.msk [vmem:[%s980_s3 + $0x3c] sm:$0xf] %vm518_vm3, %v636_v19  ;;  %550 = vst.msk [vmem:[%s980_s3 + $0x7c] sm:$0xf] %vm518_vm3, %v652_v20 }
  0xee   :  { %532 = vst.msk [vmem:[%s980_s3 + $0x34] sm:$0xf] %vm518_vm3, %v634_v22 }
  0xef   :  { %548 = vst.msk [vmem:[%s980_s3 + $0x74] sm:$0xf] %vm518_vm3, %v650_v23 }

// kernel: speech_transformer_forward.43
= control target key start
LH: loop header
LB: loop body
LE: loop exit
PB: predicated region body
PF: predicated region fallthrough
CT: control target
= control target key end

     0   :  { %vm434_vm0 = vcmask 523264   ;;  %vm682_vm1 = vcmask 519168   ;;  %s1171_s1 = inlined_call_operand.vmem [shape: bf16[576,64], index: 1, kind: input, shape index: {}]   ;;  %s1172_s0 = inlined_call_operand.vmem [shape: bf16[64,576], index: 0, kind: input, shape index: {}]   ;;  %s1173_s2 = inlined_call_operand.vmem [shape: f32[1,64], index: 2, kind: input, shape index: {}]   ;;  %s1174_s3 = inlined_call_operand.vmem [shape: bf16[64,64], index: 3, kind: output, shape index: {}]  }
   0x1   :  { %v884_v0 = vld [vmem:[%s1171_s1 + $0x78] sm:$0xff]   ;;  %v888_v4 = vld [vmem:[%s1171_s1 + $0x70] sm:$0xff]   ;;  %v892_v8 = vld [vmem:[%s1171_s1 + $0x68] sm:$0xff]  }
   0x2   :  { %v885_v1 = vld [vmem:[%s1171_s1 + $0xf8] sm:$0xff]   ;;  %772 = vmatprep.subr.bf16.mxu0 %v884_v0  ;;  %v889_v5 = vld [vmem:[%s1171_s1 + $0xf0] sm:$0xff]   ;;  %v893_v9 = vld [vmem:[%s1171_s1 + $0xe8] sm:$0xff]  }
   0x3   :  { %v886_v2 = vld [vmem:[%s1171_s1 + $0x38] sm:$0xff]   ;;  %812 = vmatprep.subr.bf16.mxu1 %v885_v1  ;;  %v890_v6 = vld [vmem:[%s1171_s1 + $0x30] sm:$0xff]   ;;  %v894_v10 = vld [vmem:[%s1171_s1 + $0x28] sm:$0xff]  }
   0x4   :  { %v887_v3 = vld [vmem:[%s1171_s1 + $0xb8] sm:$0xff]   ;;  %773 = vmatpush3.bf16.msra.mxu0 %v886_v2  ;;  %v891_v7 = vld [vmem:[%s1171_s1 + $0xb0] sm:$0xff]   ;;  %v895_v11 = vld [vmem:[%s1171_s1 + $0xa8] sm:$0xff]  }
   0x5   :  { %813 = vmatpush3.bf16.msra.mxu1 %v887_v3  ;;  %774 = vmatprep.subr.bf16.mxu0 %v888_v4  ;;  %v896_v12 = vld [vmem:[%s1171_s1 + $0x60] sm:$0xff]   ;;  %v900_v16 = vld [vmem:[%s1171_s1 + $0x58] sm:$0xff]   ;;  %v904_v20 = vld [vmem:[%s1171_s1 + $0x50] sm:$0xff]  }
   0x6   :  { %814 = vmatprep.subr.bf16.mxu1 %v889_v5  ;;  %v897_v13 = vld [vmem:[%s1171_s1 + $0xe0] sm:$0xff]   ;;  %v901_v17 = vld [vmem:[%s1171_s1 + $0xd8] sm:$0xff]   ;;  %v905_v21 = vld [vmem:[%s1171_s1 + $0xd0] sm:$0xff]  }
   0x7   :  { %v898_v14 = vld [vmem:[%s1171_s1 + $0x20] sm:$0xff]   ;;  %v902_v18 = vld [vmem:[%s1171_s1 + $0x18] sm:$0xff]   ;;  %v906_v22 = vld [vmem:[%s1171_s1 + $0x10] sm:$0xff]  }
   0x8   :  { %775 = vmatpush3.bf16.msra.mxu0 %v890_v6  ;;  %v899_v15 = vld [vmem:[%s1171_s1 + $0xa0] sm:$0xff]   ;;  %v903_v19 = vld [vmem:[%s1171_s1 + $0x98] sm:$0xff]   ;;  %v907_v23 = vld [vmem:[%s1171_s1 + $0x90] sm:$0xff]  }
   0x9   :  { %815 = vmatpush3.bf16.msra.mxu1 %v891_v7  ;;  %776 = vmatprep.subr.bf16.mxu0 %v892_v8  ;;  %v908_v24 = vld [vmem:[%s1171_s1 + $0x48] sm:$0xff]   ;;  %v912_v28 = vld [vmem:[%s1171_s1 + $0x40] sm:$0xff]   ;;  %v922_v36 = vld [vmem:[%s1171_s1 + $0x118] sm:$0xff]  }
   0xa   :  { %816 = vmatprep.subr.bf16.mxu1 %v893_v9  ;;  %v909_v25 = vld [vmem:[%s1171_s1 + $0xc8] sm:$0xff]   ;;  %v913_v29 = vld [vmem:[%s1171_s1 + $0xc0] sm:$0xff]   ;;  %v929_v39 = vld [vmem:[%s1171_s1 + $0x110] sm:$0xff]  }
   0xb   :  { %v910_v26 = vld [vmem:[%s1171_s1 + $0x8] sm:$0xff]   ;;  %v914_v30 = vld [vmem:[%s1171_s1] sm:$0xff]   ;;  %v932_v43 = vld [vmem:[%s1172_s0 + $0x5c] ss:$20 sps:$4 sm:$0xff]  }
   0xc   :  { %777 = vmatpush3.bf16.msra.mxu0 %v894_v10  ;;  %v911_v27 = vld [vmem:[%s1171_s1 + $0x88] sm:$0xff]   ;;  %v915_v31 = vld [vmem:[%s1171_s1 + $0x80] sm:$0xff]   ;;  %v937_v48 = vld [vmem:[%s1172_s0 + $0x7c] ss:$20 sps:$4 sm:$0xff]  }
   0xd   :  { %817 = vmatpush3.bf16.msra.mxu1 %v895_v11  ;;  %778 = vmatprep.subr.bf16.mxu0 %v896_v12  ;;  %v916_v32 = vld [vmem:[%s1172_s0] ss:$20 sps:$4 sm:$0xff]   ;;  %v918_v33 = vld [vmem:[%s1172_s0 + $0x4] ss:$20 sps:$4 sm:$0xff]   ;;  %v919_v34 = vld [vmem:[%s1172_s0 + $0x8] ss:$20 sps:$4 sm:$0xff]  }
   0xe   :  { %818 = vmatprep.subr.bf16.mxu1 %v897_v13  ;;  %v921_v35 = vld [vmem:[%s1172_s0 + $0xc] ss:$20 sps:$4 sm:$0xff]   ;;  %479 = vmatprep.mubr.bf16.mxu0 %v918_v33  ;;  %v925_v38 = vld [vmem:[%s1172_s0 + $0x34] ss:$20 sps:$4 sm:$0xff]   ;;  %v928_v41 = vld [vmem:[%s1172_s0 + $0x30] ss:$20 sps:$4 sm:$0xff]  }
   0xf   :  { %544 = vmatprep.mubr.bf16.mxu1 %v921_v35  ;;  %v923_v37 = vld [vmem:[%s1172_s0 + $0x2c] ss:$20 sps:$4 sm:$0xff]   ;;  %v927_v40 = vld [vmem:[%s1172_s0 + $0x28] ss:$20 sps:$4 sm:$0xff]   ;;  %v934_v46 = vld [vmem:[%s1172_s0 + $0x50] ss:$20 sps:$4 sm:$0xff]  }
  0x10   :  { %779 = vmatpush3.bf16.msra.mxu0 %v898_v14  ;;  %v930_v42 = vld [vmem:[%s1172_s0 + $0x54] ss:$20 sps:$4 sm:$0xff]   ;;  %v943_v45 = vld [vmem:[%s1171_s1 + $0x100] sm:$0xff]   ;;  %v935_v47 = vld [vmem:[%s1172_s0 + $0x58] ss:$20 sps:$4 sm:$0xff]  }
  0x11   :  { %819 = vmatpush3.bf16.msra.mxu1 %v899_v15  ;;  %780 = vmatprep.subr.bf16.mxu0 %v900_v16  ;;  %v936_v44 = vld [vmem:[%s1171_s1 + $0x108] sm:$0xff]   ;;  %v939_v49 = vld [vmem:[%s1172_s0 + $0x84] ss:$20 sps:$4 sm:$0xff]   ;;  %v942_v51 = vld [vmem:[%s1172_s0 + $0x80] ss:$20 sps:$4 sm:$0xff]  }
  0x12   :  { %820 = vmatprep.subr.bf16.mxu1 %v901_v17  ;;  %v941_v50 = vld [vmem:[%s1172_s0 + $0x78] ss:$20 sps:$4 sm:$0xff]   ;;  %v944_v52 = vld [vmem:[%s1172_s0 + $0x10] ss:$20 sps:$4 sm:$0xff]   ;;  %v945_v53 = vld [vmem:[%s1172_s0 + $0x60] ss:$20 sps:$4 sm:$0xff]  }
  0x13   :  { %v946_v54 = vld [vmem:[%s1172_s0 + $0x38] ss:$20 sps:$4 sm:$0xff]   ;;  %v947_v55 = vld [vmem:[%s1172_s0 + $0x88] ss:$20 sps:$4 sm:$0xff]  }
  0x14   :  { %781 = vmatpush3.bf16.msra.mxu0 %v902_v18 }
  0x15   :  { %821 = vmatpush3.bf16.msra.mxu1 %v903_v19  ;;  %782 = vmatprep.subr.bf16.mxu0 %v904_v20  ;;  %v695_v19 = vld [vmem:[%s1173_s2] ss:$0 sm:$0xff] }
  0x16   :  { %822 = vmatprep.subr.bf16.mxu1 %v905_v21 }
  0x18   :  { %783 = vmatpush3.bf16.msra.mxu0 %v906_v22 }
  0x19   :  { %823 = vmatpush3.bf16.msra.mxu1 %v907_v23  ;;  %784 = vmatprep.subr.bf16.mxu0 %v908_v24 }
  0x1a   :  { %824 = vmatprep.subr.bf16.mxu1 %v909_v25 }
  0x1c   :  { %785 = vmatpush3.bf16.msra.mxu0 %v910_v26 }
  0x1d   :  { %825 = vmatpush3.bf16.msra.mxu1 %v911_v27  ;;  %786 = vmatprep.subr.bf16.mxu0 %v912_v28 }
  0x1e   :  { %826 = vmatprep.subr.bf16.mxu1 %v913_v29 }
  0x20   :  { %787 = vmatpush3.bf16.msra.mxu0 %v914_v30 }
  0x21   :  { %827 = vmatpush3.bf16.msra.mxu1 %v915_v31  ;;  %860 = vmatprep.subr.bf16.mxu0 %v922_v36 }
  0x22   :  { %876 = vmatprep.subr.bf16.mxu1 %v922_v36 }
  0x23   :  { %480 = vmatmul.mubr.bf16.vlgmr.msra.gmra.mxu0 %v916_v32 }
  0x24   :  { %545 = vmatmul.mubr.bf16.vlgmr.msra.gmra.mxu1 %v919_v34  ;;  %861 = vmatpush3.bf16.msra.mxu0 %v922_v36 }
  0x25   :  { %880 = vmatpush3.bf16.msra.mxu1 %v922_v36  ;;  %487 = vmatprep.mubr.bf16.mxu0 %v923_v37 }
  0x26   :  { %552 = vmatprep.mubr.bf16.mxu1 %v925_v38  ;;  %862 = vmatprep.subr.bf16.mxu0 %v929_v39 }
  0x27   :  { %877 = vmatprep.subr.bf16.mxu1 %v929_v39 }
  0x28   :  { %863 = vmatpush3.bf16.msra.mxu0 %v929_v39 }
  0x29   :  { %881 = vmatpush3.bf16.msra.mxu1 %v929_v39  ;;  %864 = vmatprep.subr.bf16.mxu0 %v936_v44 }
  0x2a   :  { %878 = vmatprep.subr.bf16.mxu1 %v936_v44 }
  0x2b   :  { %488 = vmatmul.mubr.bf16.gmra.mxu0 %v927_v40 }
  0x2c   :  { %553 = vmatmul.mubr.bf16.gmra.mxu1 %v928_v41  ;;  %495 = vmatprep.mubr.bf16.mxu0 %v930_v42 }
  0x2d   :  { %560 = vmatprep.mubr.bf16.mxu1 %v932_v43  ;;  %865 = vmatpush3.bf16.msra.mxu0 %v936_v44 }
  0x2e   :  { %882 = vmatpush3.bf16.msra.mxu1 %v936_v44  ;;  %866 = vmatprep.subr.bf16.mxu0 %v943_v45 }
  0x2f   :  { %879 = vmatprep.subr.bf16.mxu1 %v943_v45 }
  0x31   :  { %867 = vmatpush3.bf16.msra.mxu0 %v943_v45 }
  0x32   :  { %883 = vmatpush3.bf16.msra.mxu1 %v943_v45 }
  0x33   :  { %496 = vmatmul.mubr.bf16.gmra.mxu0 %v934_v46 }
  0x34   :  { %561 = vmatmul.mubr.bf16.gmra.mxu1 %v935_v47  ;;  %503 = vmatprep.mubr.bf16.mxu0 %v937_v48 }
  0x35   :  { %568 = vmatprep.mubr.bf16.mxu1 %v939_v49 }
  0x3b   :  { %504 = vmatmul.mubr.bf16.gmra.mxu0 %v941_v50 }
  0x3c   :  { %569 = vmatmul.mubr.bf16.gmra.mxu1 %v942_v51  ;;  %868 = vmatprep.mubr.msk.bf16.mxu0 %vm434_vm0, %v944_v52 }
  0x3d   :  { %872 = vmatprep.mubr.msk.bf16.mxu1 %vm434_vm0, %v945_v53 }
  0x43   :  { %869 = vmatmul.mubr.msk.bf16.vlgmr.msra.gmra.mxu0 %vm434_vm0, %v946_v54 }
  0x44   :  { %873 = vmatmul.mubr.msk.bf16.vlgmr.msra.gmra.mxu1 %vm434_vm0, %v947_v55 }
  0xe3   :  { %v788_v56 = vpop.f32.mrf.mxu0 }
  0xe4   :  { %v828_v57 = vpop.f32.mrf.mxu1 }
  0xe5   :  { %v789_v58 = vpop.f32.mrf.mxu0 }
  0xe6   :  { %v829_v59 = vpop.f32.mrf.mxu1  ;;  %v790_v17 = vadd.f32 %v789_v58, %v788_v56 }
  0xe7   :  { %v791_v60 = vpop.f32.mrf.mxu0  ;;  %v830_v34 = vadd.f32 %v829_v59, %v828_v57 }
  0xe8   :  { %v831_v61 = vpop.f32.mrf.mxu1  ;;  %v482_v27 = vadd.f32 %v790_v17, %v695_v19 }
  0xe9   :  { %v792_v62 = vpop.f32.mrf.mxu0 }
  0xea   :  { %v832_v63 = vpop.f32.mrf.mxu1  ;;  %v793_v28 = vadd.f32 %v792_v62, %v791_v60  ;;  %v547_v46 = vadd.f32 %v830_v34, %v482_v27 }
  0xeb   :  { %v794_v0 = vpop.f32.mrf.mxu0  ;;  %v833_v52 = vadd.f32 %v832_v63, %v831_v61 }
  0xec   :  { %v834_v1 = vpop.f32.mrf.mxu1  ;;  %v485_v43 = vadd.f32 %v793_v28, %v695_v19 }
  0xed   :  { %v795_v2 = vpop.f32.mrf.mxu0 }
  0xee   :  { %v835_v3 = vpop.f32.mrf.mxu1  ;;  %v796_v15 = vadd.f32 %v795_v2, %v794_v0 }
  0xef   :  { %v797_v4 = vpop.f32.mrf.mxu0  ;;  %v836_v30 = vadd.f32 %v835_v3, %v834_v1 }
  0xf0   :  { %v837_v5 = vpop.f32.mrf.mxu1  ;;  %v490_v23 = vadd.f32 %v796_v15, %v695_v19 }
  0xf1   :  { %v798_v6 = vpop.f32.mrf.mxu0 }
  0xf2   :  { %v838_v7 = vpop.f32.mrf.mxu1  ;;  %v799_v24 = vadd.f32 %v798_v6, %v797_v4  ;;  %v555_v41 = vadd.f32 %v836_v30, %v490_v23 }
  0xf3   :  { %v800_v8 = vpop.f32.mrf.mxu0  ;;  %v839_v47 = vadd.f32 %v838_v7, %v837_v5 }
  0xf4   :  { %v840_v9 = vpop.f32.mrf.mxu1  ;;  %v493_v38 = vadd.f32 %v799_v24, %v695_v19 }
  0xf5   :  { %v801_v10 = vpop.f32.mrf.mxu0 }
  0xf6   :  { %v841_v11 = vpop.f32.mrf.mxu1  ;;  %v802_v21 = vadd.f32 %v801_v10, %v800_v8  ;;  %v558_v60 = vadd.f32 %v839_v47, %v493_v38  ;;  %v550_v8 = vadd.f32 %v833_v52, %v485_v43 }
  0xf7   :  { %v803_v12 = vpop.f32.mrf.mxu0  ;;  %v842_v44 = vadd.f32 %v841_v11, %v840_v9 }
  0xf8   :  { %v843_v13 = vpop.f32.mrf.mxu1  ;;  %v498_v35 = vadd.f32 %v802_v21, %v695_v19 }
  0xf9   :  { %v804_v14 = vpop.f32.mrf.mxu0 }
  0xfa   :  { %v844_v16 = vpop.f32.mrf.mxu1  ;;  %v805_v36 = vadd.f32 %v804_v14, %v803_v12  ;;  %v563_v56 = vadd.f32 %v842_v44, %v498_v35 }
  0xfb   :  { %v806_v18 = vpop.f32.mrf.mxu0  ;;  %v845_v0 = vadd.f32 %v844_v16, %v843_v13 }
  0xfc   :  { %v846_v20 = vpop.f32.mrf.mxu1  ;;  %v501_v53 = vadd.f32 %v805_v36, %v695_v19 }
  0xfd   :  { %v807_v22 = vpop.f32.mrf.mxu0 }
  0xfe   :  { %v808_v25 = vadd.f32 %v807_v22, %v806_v18  ;;  %v847_v26 = vpop.f32.mrf.mxu1  ;;  %v566_v11 = vadd.f32 %v845_v0, %v501_v53 }
  0xff   :  { %v809_v29 = vpop.f32.mrf.mxu0  ;;  %v848_v32 = vadd.f32 %v847_v26, %v846_v20 }
 0x100   :  { %v506_v31 = vadd.f32 %v808_v25, %v695_v19  ;;  %v849_v33 = vpop.f32.mrf.mxu1 }
 0x101   :  { %v810_v37 = vpop.f32.mrf.mxu0 }
 0x102   :  { %v811_v39 = vadd.f32 %v810_v37, %v809_v29  ;;  %v850_v40 = vpop.f32.mrf.mxu1  ;;  %v571_v42 = vadd.f32 %v848_v32, %v506_v31 }
 0x103   :  { %v870_v45 = vpop.f32.mrf.mxu0  ;;  %v851_v49 = vadd.f32 %v850_v40, %v849_v33 }
 0x104   :  { %v509_v48 = vadd.f32 %v811_v39, %v695_v19  ;;  %v620_v50 = vadd.f32 %v870_v45, %v555_v41  ;;  %v874_v51 = vpop.f32.mrf.mxu1 }
 0x105   :  { %v636_v54 = vadd.f32 %v874_v51, %v571_v42  ;;  %v611_v55 = vpop.f32.mrf.mxu0 }
 0x106   :  { %v644_v57 = vmax.f32 %v620_v50, 0.0  ;;  %v612_v58 = vadd.f32 %v611_v55, %v547_v46  ;;  %v627_v59 = vpop.f32.mrf.mxu1  ;;  %v574_v62 = vadd.f32 %v851_v49, %v509_v48 }
 0x107   :  { %v648_v1 = vmax.f32 %v636_v54, 0.0  ;;  %v628_v2 = vadd.f32 %v627_v59, %v563_v56  ;;  %v871_v3 = vpop.f32.mrf.mxu0 }
 0x108   :  { %v766_v4 = vpack.c.bf16 %v644_v57, %v644_v57  ;;  %v642_v5 = vmax.f32 %v612_v58, 0.0  ;;  %v623_v6 = vadd.f32 %v871_v3, %v558_v60  ;;  %v875_v7 = vpop.f32.mrf.mxu1 }
 0x109   :  { %v770_v61 = vpack.c.bf16 %v648_v1, %v648_v1  ;;  %v646_v63 = vmax.f32 %v628_v2, 0.0  ;;  %v639_v9 = vadd.f32 %v875_v7, %v574_v62  ;;  %v614_v10 = vpop.f32.mrf.mxu0 }
 0x10a   :  { %685 = vst.msk [vmem:[%s1174_s3 + $0x8] sm:$0xf] %vm682_vm1, %v766_v4  ;;  %v764_v12 = vpack.c.bf16 %v642_v5, %v642_v5  ;;  %v645_v13 = vmax.f32 %v623_v6, 0.0  ;;  %v615_v14 = vadd.f32 %v614_v10, %v550_v8  ;;  %v630_v15 = vpop.f32.mrf.mxu1 }
 0x10b   :  { %689 = vst.msk [vmem:[%s1174_s3 + $0x18] sm:$0xf] %vm682_vm1, %v770_v61  ;;  %v768_v16 = vpack.c.bf16 %v646_v63, %v646_v63  ;;  %v649_v17 = vmax.f32 %v639_v9, 0.0  ;;  %v631_v18 = vadd.f32 %v630_v15, %v566_v11 }
 0x10c   :  { %683 = vst.msk [vmem:[%s1174_s3] sm:$0xf] %vm682_vm1, %v764_v12  ;;  %v767_v19 = vpack.c.bf16 %v645_v13, %v645_v13  ;;  %v643_v20 = vmax.f32 %v615_v14, 0.0 }
 0x10d   :  { %687 = vst.msk [vmem:[%s1174_s3 + $0x10] sm:$0xf] %vm682_vm1, %v768_v16  ;;  %v771_v21 = vpack.c.bf16 %v649_v17, %v649_v17  ;;  %v647_v22 = vmax.f32 %v631_v18, 0.0 }
 0x10e   :  { %686 = vst.msk [vmem:[%s1174_s3 + $0xc] sm:$0xf] %vm682_vm1, %v767_v19  ;;  %v765_v23 = vpack.c.bf16 %v643_v20, %v643_v20 }
 0x10f   :  { %690 = vst.msk [vmem:[%s1174_s3 + $0x1c] sm:$0xf] %vm682_vm1, %v771_v21  ;;  %v769_v24 = vpack.c.bf16 %v647_v22, %v647_v22 }
 0x110   :  { %684 = vst.msk [vmem:[%s1174_s3 + $0x4] sm:$0xf] %vm682_vm1, %v765_v23 }
 0x111   :  { %688 = vst.msk [vmem:[%s1174_s3 + $0x14] sm:$0xf] %vm682_vm1, %v769_v24 }

// kernel: speech_transformer_forward.34
= control target key start
LH: loop header
LB: loop body
LE: loop exit
PB: predicated region body
PF: predicated region fallthrough
CT: control target
= control target key end

     0   :  { %v166_v1 = vmov 0   ;;  %vm76_vm0 = vcmask 523264   ;;  %v26_v10 = vlaneseq  ;;  %v167_v12 = vmov 1983009808   ;;  %s221_s1 = inlined_call_operand.vmem [shape: bf16[64,192], index: 1, kind: input, shape index: {}]   ;;  %s222_s0 = inlined_call_operand.vmem [shape: bf16[4,64], index: 0, kind: input, shape index: {}]   ;;  %s223_s2 = inlined_call_operand.vmem [shape: f32[1,192], index: 2, kind: input, shape index: {}]   ;;  %s224_s3 = inlined_call_operand.vmem [shape: bf16[4,192], index: 3, kind: output, shape index: {}]  }
   0x1   :  { %v154_v0 = vld [vmem:[%s221_s1 + $0x34] ss:$8 sps:$4 sm:$0xff]   ;;  %112 = vmatprep.mubr.bf16.mxu0 %v166_v1  ;;  %v156_v2 = vld [vmem:[%s221_s1 + $0x30] ss:$8 sps:$4 sm:$0xff]   ;;  %v157_v3 = vld [vmem:[%s221_s1 + $0x24] ss:$8 sps:$4 sm:$0xff]   ;;  %v127_v13 = vunpack.c.l.s4 %v167_v12 }
   0x2   :  { %88 = vmatprep.subr.bf16.mxu0 %v154_v0  ;;  %v159_v4 = vld [vmem:[%s221_s1 + $0x20] ss:$8 sps:$4 sm:$0xff]   ;;  %v160_v5 = vld [vmem:[%s221_s1 + $0x14] ss:$8 sps:$4 sm:$0xff]   ;;  %v162_v6 = vld [vmem:[%s221_s1 + $0x10] ss:$8 sps:$4 sm:$0xff]  }
   0x3   :  { %89 = vmatpush1.bf16.msra.mxu0 %v156_v2  ;;  %v163_v7 = vld [vmem:[%s221_s1 + $0x4] ss:$8 sps:$4 sm:$0xff]   ;;  %v165_v8 = vld [vmem:[%s221_s1] ss:$8 sps:$4 sm:$0xff]   ;;  %v27_v11 = vshrl.u32 %v26_v10, 7  ;;  %v128_v17 = vunpack.c.0.s8 %v127_v13  ;;  %vm134_vm1 = vcmask 1041408  }
   0x4   :  { %90 = vmatprep.subr.bf16.mxu0 %v157_v3  ;;  %v15_v9 = vld [vmem:[%s222_s0] sm:$0x3]  ;;  %vm135_vm2 = vcmask 519170  }
   0x5   :  { %v28_v14 = vsub.s32 0, %v27_v11  ;;  %v32_v15 = vsub.s32 1, %v27_v11  ;;  %v24_v16 = vld [vmem:[%s223_s2] sm:$0x3]  ;;  %v131_v22 = vsub.s32 %v128_v17, %v27_v11  ;;  %vm136_vm3 = vmor %vm135_vm2, %vm134_vm1 }
   0x7   :  { %91 = vmatpush1.bf16.msra.mxu0 %v159_v4  ;;  %v29_v18 = vrot.slane %v24_v16, %v28_v14  ;;  %v33_v19 = vrot.slane %v24_v16, %v32_v15 }
   0x8   :  { %92 = vmatprep.subr.bf16.mxu0 %v160_v5 }
   0xb   :  { %93 = vmatpush1.bf16.msra.mxu0 %v162_v6 }
   0xc   :  { %94 = vmatprep.subr.bf16.mxu0 %v163_v7 }
   0xf   :  { %95 = vmatpush1.bf16.msra.mxu0 %v165_v8 }
  0x12   :  { %150 = vmatmul.mubr.msk.bf16.vlgmr.msra.gmra.mxu0 %vm76_vm0, %v15_v9 }
  0xd2   :  { %v114_v20 = vpop.f32.mrf.mxu0 }
  0xd3   :  { %v115_v23 = vadd.f32 %v114_v20, %v29_v18 }
  0xd4   :  { %v116_v21 = vpop.f32.mrf.mxu0 }
  0xd5   :  { %v117_v24 = vadd.f32 %v116_v21, %v33_v19 }
  0xd6   :  { %v118_v25 = vpop.f32.mrf.mxu0 }
  0xd7   :  { %v151_v26 = vpack.c.bf16 %v117_v24, %v115_v23 }
  0xd8   :  { %v119_v27 = vpop.f32.mrf.mxu0 }
  0xd9   :  { %v132_v28 = vrot.slane %v151_v26, %v131_v22 }
  0xdb   :  { %137 = vst.msk [vmem:[%s224_s3] sm:$0xf] %vm136_vm3, %v132_v28 }

// kernel: speech_transformer_forward.44
= control target key start
LH: loop header
LB: loop body
LE: loop exit
PB: predicated region body
PF: predicated region fallthrough
CT: control target
= control target key end

     0   :  { %vm203_vm0 = vcmask 517120   ;;  %s342_s1 = inlined_call_operand.vmem [shape: bf16[256,64], index: 1, kind: input, shape index: {}]   ;;  %s343_s0 = inlined_call_operand.vmem [shape: bf16[4,256], index: 0, kind: input, shape index: {}]   ;;  %s344_s2 = inlined_call_operand.vmem [shape: f32[1,64], index: 2, kind: input, shape index: {}]   ;;  %s345_s3 = inlined_call_operand.vmem [shape: bf16[4,64], index: 3, kind: output, shape index: {}]  }
   0x1   :  { %v249_v0 = vld [vmem:[%s342_s1 + $0x78] sm:$0xff]   ;;  %v251_v2 = vld [vmem:[%s342_s1 + $0x70] sm:$0xff]   ;;  %v253_v4 = vld [vmem:[%s342_s1 + $0x68] sm:$0xff]  }
   0x2   :  { %v250_v1 = vld [vmem:[%s342_s1 + $0x38] sm:$0xff]   ;;  %227 = vmatprep.subr.bf16.mxu0 %v249_v0  ;;  %v252_v3 = vld [vmem:[%s342_s1 + $0x30] sm:$0xff]   ;;  %v254_v5 = vld [vmem:[%s342_s1 + $0x28] sm:$0xff]  }
   0x3   :  { %228 = vmatpush3.bf16.msra.mxu0 %v250_v1  ;;  %v255_v6 = vld [vmem:[%s342_s1 + $0x60] sm:$0xff]   ;;  %v257_v8 = vld [vmem:[%s342_s1 + $0x58] sm:$0xff]   ;;  %v259_v10 = vld [vmem:[%s342_s1 + $0x50] sm:$0xff]  }
   0x4   :  { %229 = vmatprep.subr.bf16.mxu0 %v251_v2  ;;  %v256_v7 = vld [vmem:[%s342_s1 + $0x20] sm:$0xff]   ;;  %v258_v9 = vld [vmem:[%s342_s1 + $0x18] sm:$0xff]   ;;  %v260_v13 = vld [vmem:[%s342_s1 + $0x10] sm:$0xff]  }
   0x5   :  { %v210_v11 = vld.sshfl [vmem:[%s343_s0] sm:$0x33 pattern:$0x76325410]  ;;  %v261_v14 = vld [vmem:[%s342_s1 + $0x48] sm:$0xff]  }
   0x6   :  { %v63_v12 = vcombine.high %v210_v11, %v210_v11  ;;  %v262_v15 = vld [vmem:[%s342_s1 + $0x8] sm:$0xff]   ;;  %v263_v16 = vld [vmem:[%s342_s1 + $0x40] sm:$0xff]  }
   0x7   :  { %230 = vmatpush3.bf16.msra.mxu0 %v252_v3  ;;  %v264_v17 = vld [vmem:[%s342_s1] sm:$0xff]  }
   0x8   :  { %231 = vmatprep.subr.bf16.mxu0 %v253_v4  ;;  %194 = vmatprep.mubr.bf16.mxu0 %v63_v12  ;;  %v209_v19 = vld [vmem:[%s344_s2] ss:$0 sm:$0xff] }
   0xb   :  { %232 = vmatpush3.bf16.msra.mxu0 %v254_v5 }
   0xc   :  { %233 = vmatprep.subr.bf16.mxu0 %v255_v6 }
   0xf   :  { %234 = vmatpush3.bf16.msra.mxu0 %v256_v7 }
  0x10   :  { %235 = vmatprep.subr.bf16.mxu0 %v257_v8 }
  0x13   :  { %236 = vmatpush3.bf16.msra.mxu0 %v258_v9 }
  0x14   :  { %237 = vmatprep.subr.bf16.mxu0 %v259_v10 }
  0x17   :  { %238 = vmatpush3.bf16.msra.mxu0 %v260_v13 }
  0x18   :  { %239 = vmatprep.subr.bf16.mxu0 %v261_v14 }
  0x1b   :  { %240 = vmatpush3.bf16.msra.mxu0 %v262_v15 }
  0x1c   :  { %241 = vmatprep.subr.bf16.mxu0 %v263_v16 }
  0x1f   :  { %242 = vmatpush3.bf16.msra.mxu0 %v264_v17 }
  0x22   :  { %195 = vmatmul.mubr.bf16.vlgmr.msra.gmra.mxu0 %v210_v11 }
  0xe2   :  { %v243_v18 = vpop.f32.mrf.mxu0 }
  0xe4   :  { %v244_v20 = vpop.f32.mrf.mxu0 }
  0xe5   :  { %v245_v21 = vadd.f32 %v244_v20, %v243_v18 }
  0xe6   :  { %v246_v22 = vpop.f32.mrf.mxu0 }
  0xe7   :  { %v197_v23 = vadd.f32 %v245_v21, %v209_v19 }
  0xe8   :  { %v247_v24 = vpop.f32.mrf.mxu0 }
  0xe9   :  { %v202_v25 = vpack.c.bf16 %v197_v23, %v197_v23 }
  0xeb   :  { %204 = vst.msk [vmem:[%s345_s3] sm:$0x3] %vm203_vm0, %v202_v25 }

// kernel: speech_transformer_forward.49
= control target key start
LH: loop header
LB: loop body
LE: loop exit
PB: predicated region body
PF: predicated region fallthrough
CT: control target
= control target key end

     0   :  { %v134_v0 = vmov 0.0   ;;  %vm135_vm0 = vmmov 0   ;;  %vm55_vm1 = vcmask 523264   ;;  %s177_s1 = inlined_call_operand.vmem [shape: bf16[64,128], index: 1, kind: input, shape index: {}]   ;;  %s178_s0 = inlined_call_operand.vmem [shape: bf16[4,64], index: 0, kind: input, shape index: {}]   ;;  %s179_s2 = inlined_call_operand.vmem [shape: f32[1,128], index: 2, kind: input, shape index: {}]   ;;  %s180_s3 = inlined_call_operand.vmem [shape: bf16[4,128], index: 3, kind: output, shape index: {}]  }
   0x1   :  { %116 = vmatprep.subr.bf16.mxu0 %v134_v0  ;;  %v130_v1 = vld [vmem:[%s177_s1 + $0x18] sm:$0xff]   ;;  %124 = vmatprep.mubr.msk.bf16.mxu0 %vm135_vm0, %v134_v0  ;;  %v131_v2 = vld [vmem:[%s177_s1 + $0x10] sm:$0xff]   ;;  %v132_v3 = vld [vmem:[%s177_s1 + $0x8] sm:$0xff]  }
   0x2   :  { %117 = vmatpush3.bf16.msra.mxu0 %v130_v1  ;;  %v133_v4 = vld [vmem:[%s177_s1] sm:$0xff]  }
   0x3   :  { %118 = vmatprep.subr.bf16.mxu0 %v134_v0  ;;  %v15_v5 = vld [vmem:[%s178_s0] sm:$0x3] }
   0x4   :  { %v105_v6 = vld [vmem:[%s179_s2] ss:$0 sm:$0xff] }
   0x6   :  { %119 = vmatpush3.bf16.msra.mxu0 %v131_v2 }
   0x7   :  { %120 = vmatprep.subr.bf16.mxu0 %v134_v0 }
   0xa   :  { %121 = vmatpush3.bf16.msra.mxu0 %v132_v3 }
   0xb   :  { %122 = vmatprep.subr.bf16.mxu0 %v134_v0 }
   0xe   :  { %123 = vmatpush3.bf16.msra.mxu0 %v133_v4 }
  0x11   :  { %125 = vmatmul.mubr.msk.bf16.vlgmr.msra.gmra.mxu0 %vm55_vm1, %v15_v5 }
  0xd1   :  { %v93_v7 = vpop.f32.mrf.mxu0 }
  0xd2   :  { %v94_v8 = vadd.f32 %v105_v6, %v93_v7 }
  0xd3   :  { %v126_v9 = vpop.f32.mrf.mxu0 }
  0xd4   :  { %v99_v10 = vpack.c.bf16 %v94_v8, %v94_v8 }
  0xd5   :  { %v96_v11 = vpop.f32.mrf.mxu0 }
  0xd6   :  { %100 = vst [vmem:[%s180_s3] sm:$0x3] %v99_v10 }
  0xd7   :  { %v127_v12 = vpop.f32.mrf.mxu0 }

// kernel: speech_transformer_forward.36
= control target key start
LH: loop header
LB: loop body
LE: loop exit
PB: predicated region body
PF: predicated region fallthrough
CT: control target
= control target key end

     0   :  { %v182_v0 = vmov 0.0   ;;  %vm183_vm0 = vmmov 0   ;;  %vm64_vm1 = vcmask 523264   ;;  %vm111_vm2 = vcmask 519168   ;;  %s249_s1 = inlined_call_operand.vmem [shape: bf16[64,64], index: 1, kind: input, shape index: {}]   ;;  %s250_s0 = inlined_call_operand.vmem [shape: bf16[4,64], index: 0, kind: input, shape index: {}]   ;;  %s251_s3 = inlined_call_operand.vmem [shape: bf16[4,64], index: 3, kind: input, shape index: {}]   ;;  %s252_s2 = inlined_call_operand.vmem [shape: f32[1,64], index: 2, kind: input, shape index: {}]   ;;  %s253_s4 = inlined_call_operand.vmem [shape: f32[1,64], index: 4, kind: input, shape index: {}]   ;;  %s254_s5 = inlined_call_operand.vmem [shape: f32[1,64], index: 5, kind: input, shape index: {}]   ;;  %s255_s6 = inlined_call_operand.vmem [shape: bf16[4,64], index: 6, kind: output, shape index: {}]  }
   0x1   :  { %162 = vmatprep.subr.bf16.mxu0 %v182_v0  ;;  %v176_v1 = vld [vmem:[%s249_s1 + $0x18] sm:$0xff]   ;;  %170 = vmatprep.mubr.msk.bf16.mxu0 %vm183_vm0, %v182_v0  ;;  %v177_v2 = vld [vmem:[%s249_s1 + $0x10] sm:$0xff]   ;;  %v178_v3 = vld [vmem:[%s249_s1 + $0x8] sm:$0xff]   ;;  %vm143_vm3 = vcmask 517120  }
   0x2   :  { %163 = vmatpush3.bf16.msra.mxu0 %v176_v1  ;;  %v179_v4 = vld [vmem:[%s249_s1] sm:$0xff]  }
   0x3   :  { %164 = vmatprep.subr.bf16.mxu0 %v182_v0  ;;  %v24_v5 = vld [vmem:[%s250_s0] sm:$0x3] }
   0x4   :  { %v108_v6 = vld [vmem:[%s251_s3] sm:$0x3] }
   0x5   :  { %v149_v7 = vld [vmem:[%s252_s2] ss:$0 sm:$0xff]  ;;  %v109_v8 = vunpack.c.l.bf16 %v108_v6 }
   0x6   :  { %165 = vmatpush3.bf16.msra.mxu0 %v177_v2  ;;  %v155_v25 = vld [vmem:[%s253_s4] ss:$0 sm:$0xff] }
   0x7   :  { %166 = vmatprep.subr.bf16.mxu0 %v182_v0  ;;  %v156_v27 = vld [vmem:[%s254_s5] ss:$0 sm:$0xff] }
   0xa   :  { %167 = vmatpush3.bf16.msra.mxu0 %v178_v3 }
   0xb   :  { %168 = vmatprep.subr.bf16.mxu0 %v182_v0 }
   0xe   :  { %169 = vmatpush3.bf16.msra.mxu0 %v179_v4 }
  0x11   :  { %171 = vmatmul.mubr.msk.bf16.vlgmr.msra.gmra.mxu0 %vm64_vm1, %v24_v5 }
  0xd1   :  { %v102_v9 = vpop.f32.mrf.mxu0 }
  0xd2   :  { %v103_v10 = vadd.f32 %v149_v7, %v102_v9 }
  0xd3   :  { %v172_v11 = vpop.f32.mrf.mxu0 }
  0xd4   :  { %v110_v12 = vadd.f32 %v109_v8, %v103_v10 }
  0xd5   :  { %v105_v13 = vpop.f32.mrf.mxu0 }
  0xd6   :  { %v112_v14 = vsel %vm111_vm2, %v110_v12, 0.0 }
  0xd7   :  { %113 = vadd.xlane.f32.xlu0 %v112_v14  ;;  %v173_v15 = vpop.f32.mrf.mxu0 }
 0x160   :  { %v114_v16 = vpop.xlane.xlu0 %113 }
 0x161   :  { %v116_v17 = vmul.f32 0.015625, %v114_v16 }
 0x163   :  { %v117_v18 = vsub.f32 %v110_v12, %v116_v17 }
 0x165   :  { %v118_v19 = vmul.f32 %v117_v18, %v117_v18 }
 0x167   :  { %v119_v20 = vsel %vm111_vm2, %v118_v19, 0.0 }
 0x168   :  { %120 = vadd.xlane.f32.xlu0 %v119_v20 }
 0x1f1   :  { %v121_v21 = vpop.xlane.xlu0 %120 }
 0x1f2   :  { %v122_v22 = vmul.f32 0.015625, %v121_v21 }
 0x1f4   :  { %v123_v23 = vadd.f32 1e-05, %v122_v22 }
 0x1f6   :  { %180 = vrsqrt.f32 %v123_v23 }
 0x203   :  { %v181_v24 = vpop.eup %180 }
 0x204   :  { %v125_v26 = vmul.f32 %v181_v24, %v117_v18 }
 0x206   :  { %v133_v28 = vmul.f32 %v155_v25, %v125_v26 }
 0x208   :  { %v141_v29 = vadd.f32 %v156_v27, %v133_v28 }
 0x20a   :  { %v142_v30 = vpack.c.bf16 %v141_v29, %v141_v29 }
 0x20c   :  { %144 = vst.msk [vmem:[%s255_s6] sm:$0x3] %vm143_vm3, %v142_v30 }

// kernel: speech_transformer_forward.37
= control target key start
LH: loop header
LB: loop body
LE: loop exit
PB: predicated region body
PF: predicated region fallthrough
CT: control target
= control target key end

     0   :  { %v343_v0 = vmov 0.0   ;;  %vm344_vm0 = vmmov 0   ;;  %vm67_vm1 = vcmask 523264   ;;  %vm226_vm2 = vcmask 519168   ;;  %s439_s1 = inlined_call_operand.vmem [shape: bf16[64,128], index: 1, kind: input, shape index: {}]   ;;  %s440_s3 = inlined_call_operand.vmem [shape: bf16[128,64], index: 3, kind: input, shape index: {}]   ;;  %s441_s0 = inlined_call_operand.vmem [shape: bf16[4,64], index: 0, kind: input, shape index: {}]   ;;  %s442_s2 = inlined_call_operand.vmem [shape: f32[1,128], index: 2, kind: input, shape index: {}]   ;;  %s443_s4 = inlined_call_operand.vmem [shape: f32[1,64], index: 4, kind: input, shape index: {}]   ;;  %s444_s5 = inlined_call_operand.vmem [shape: f32[1,64], index: 5, kind: input, shape index: {}]   ;;  %s445_s6 = inlined_call_operand.vmem [shape: f32[1,64], index: 6, kind: input, shape index: {}]   ;;  %s446_s7 = inlined_call_operand.vmem [shape: bf16[4,64], index: 7, kind: output, shape index: {}]  }
   0x1   :  { %295 = vmatprep.subr.bf16.mxu0 %v343_v0  ;;  %v329_v1 = vld [vmem:[%s439_s1 + $0x18] sm:$0xff]   ;;  %303 = vmatprep.mubr.msk.bf16.mxu0 %vm344_vm0, %v343_v0  ;;  %v330_v2 = vld [vmem:[%s439_s1 + $0x10] sm:$0xff]   ;;  %v331_v4 = vld [vmem:[%s439_s1 + $0x8] sm:$0xff]   ;;  %vm258_vm3 = vcmask 517120  }
   0x2   :  { %307 = vmatprep.subr.bf16.mxu1 %v343_v0  ;;  %323 = vmatprep.mubr.msk.bf16.mxu1 %vm344_vm0, %v343_v0  ;;  %v333_v3 = vld [vmem:[%s440_s3 + $0x38] sm:$0xff]   ;;  %v334_v5 = vld [vmem:[%s440_s3 + $0x30] sm:$0xff]   ;;  %v332_v6 = vld [vmem:[%s439_s1] sm:$0xff]  }
   0x3   :  { %296 = vmatpush3.bf16.msra.mxu0 %v329_v1  ;;  %308 = vmatpush3.bf16.msra.mxu1 %v333_v3  ;;  %v335_v7 = vld [vmem:[%s440_s3 + $0x28] sm:$0xff]   ;;  %v27_v8 = vld [vmem:[%s441_s0] sm:$0x3]  ;;  %v337_v10 = vld [vmem:[%s440_s3 + $0x18] sm:$0xff]  }
   0x4   :  { %297 = vmatprep.subr.bf16.mxu0 %v343_v0  ;;  %309 = vmatprep.subr.bf16.mxu1 %v343_v0  ;;  %v336_v9 = vld [vmem:[%s440_s3 + $0x20] sm:$0xff]   ;;  %v338_v11 = vld [vmem:[%s440_s3 + $0x10] sm:$0xff]   ;;  %v339_v12 = vld [vmem:[%s440_s3 + $0x8] sm:$0xff]   ;;  %v224_v23 = vunpack.c.l.bf16 %v27_v8 }
   0x5   :  { %v340_v13 = vld [vmem:[%s440_s3] sm:$0xff]  }
   0x6   :  { %v264_v14 = vld [vmem:[%s442_s2] ss:$0 sm:$0xff] }
   0x7   :  { %298 = vmatpush3.bf16.msra.mxu0 %v330_v2  ;;  %310 = vmatpush3.bf16.msra.mxu1 %v334_v5  ;;  %v270_v22 = vld [vmem:[%s443_s4] ss:$0 sm:$0xff] }
   0x8   :  { %299 = vmatprep.subr.bf16.mxu0 %v343_v0  ;;  %311 = vmatprep.subr.bf16.mxu1 %v343_v0  ;;  %v279_v40 = vld [vmem:[%s444_s5] ss:$0 sm:$0xff] }
   0x9   :  { %v280_v42 = vld [vmem:[%s445_s6] ss:$0 sm:$0xff] }
   0xb   :  { %300 = vmatpush3.bf16.msra.mxu0 %v331_v4  ;;  %312 = vmatpush3.bf16.msra.mxu1 %v335_v7 }
   0xc   :  { %301 = vmatprep.subr.bf16.mxu0 %v343_v0  ;;  %313 = vmatprep.subr.bf16.mxu1 %v343_v0 }
   0xf   :  { %302 = vmatpush3.bf16.msra.mxu0 %v332_v6  ;;  %314 = vmatpush3.bf16.msra.mxu1 %v336_v9 }
  0x10   :  { %315 = vmatprep.subr.bf16.mxu1 %v343_v0 }
  0x12   :  { %304 = vmatmul.mubr.msk.bf16.vlgmr.msra.gmra.mxu0 %vm67_vm1, %v27_v8 }
  0x13   :  { %316 = vmatpush3.bf16.msra.mxu1 %v337_v10 }
  0x14   :  { %317 = vmatprep.subr.bf16.mxu1 %v343_v0 }
  0x17   :  { %318 = vmatpush3.bf16.msra.mxu1 %v338_v11 }
  0x18   :  { %319 = vmatprep.subr.bf16.mxu1 %v343_v0 }
  0x1b   :  { %320 = vmatpush3.bf16.msra.mxu1 %v339_v12 }
  0x1c   :  { %321 = vmatprep.subr.bf16.mxu1 %v343_v0 }
  0x1f   :  { %322 = vmatpush3.bf16.msra.mxu1 %v340_v13 }
  0xd2   :  { %v105_v15 = vpop.f32.mrf.mxu0 }
  0xd3   :  { %v106_v16 = vadd.f32 %v264_v14, %v105_v15 }
  0xd4   :  { %v305_v17 = vpop.f32.mrf.mxu0 }
  0xd5   :  { %v111_v18 = vmax.f32 %v106_v16, 0.0 }
  0xd6   :  { %v108_v19 = vpop.f32.mrf.mxu0 }
  0xd7   :  { %v112_v20 = vpack.c.bf16 %v111_v18, %v111_v18 }
  0xd8   :  { %v306_v21 = vpop.f32.mrf.mxu0 }
  0xd9   :  { %324 = vmatmul.mubr.bf16.vlgmr.msra.gmra.mxu1 %v112_v20 }
 0x199   :  { %v218_v24 = vpop.f32.mrf.mxu1 }
 0x19a   :  { %v219_v25 = vadd.f32 %v270_v22, %v218_v24 }
 0x19b   :  { %v325_v26 = vpop.f32.mrf.mxu1 }
 0x19c   :  { %v225_v27 = vadd.f32 %v224_v23, %v219_v25 }
 0x19d   :  { %v221_v28 = vpop.f32.mrf.mxu1 }
 0x19e   :  { %v227_v29 = vsel %vm226_vm2, %v225_v27, 0.0 }
 0x19f   :  { %228 = vadd.xlane.f32.xlu0 %v227_v29  ;;  %v326_v30 = vpop.f32.mrf.mxu1 }
 0x228   :  { %v229_v31 = vpop.xlane.xlu0 %228 }
 0x229   :  { %v231_v32 = vmul.f32 0.015625, %v229_v31 }
 0x22b   :  { %v232_v33 = vsub.f32 %v225_v27, %v231_v32 }
 0x22d   :  { %v233_v34 = vmul.f32 %v232_v33, %v232_v33 }
 0x22f   :  { %v234_v35 = vsel %vm226_vm2, %v233_v34, 0.0 }
 0x230   :  { %235 = vadd.xlane.f32.xlu0 %v234_v35 }
 0x2b9   :  { %v236_v36 = vpop.xlane.xlu0 %235 }
 0x2ba   :  { %v237_v37 = vmul.f32 0.015625, %v236_v36 }
 0x2bc   :  { %v238_v38 = vadd.f32 1e-05, %v237_v37 }
 0x2be   :  { %341 = vrsqrt.f32 %v238_v38 }
 0x2cb   :  { %v342_v39 = vpop.eup %341 }
 0x2cc   :  { %v240_v41 = vmul.f32 %v342_v39, %v232_v33 }
 0x2ce   :  { %v248_v43 = vmul.f32 %v279_v40, %v240_v41 }
 0x2d0   :  { %v256_v44 = vadd.f32 %v280_v42, %v248_v43 }
 0x2d2   :  { %v257_v45 = vpack.c.bf16 %v256_v44, %v256_v44 }
 0x2d4   :  { %259 = vst.msk [vmem:[%s446_s7] sm:$0x3] %vm258_vm3, %v257_v45 }

// kernel: speech_transformer_forward.35
= control target key start
LH: loop header
LB: loop body
LE: loop exit
PB: predicated region body
PF: predicated region fallthrough
CT: control target
= control target key end

     0   :  { %s1105_s9 = smov 0   ;;  %s1107_s10 = smov 0   ;;  %s1276_s0 = inlined_call_operand.vmem [shape: bf16[2,2,192], index: 0, kind: input, shape index: {}, may-alias: {0,1}]   ;;  %s1277_s1 = inlined_call_operand.vmem [shape: bf16[2,2,192], index: 1, kind: input, shape index: {}, may-alias: {0,1}]   ;;  %s1278_s2 = inlined_call_operand.vmem [shape: bf16[2,2,64], index: 2, kind: output, shape index: {}]  }
   0x1   :  { %s1109_s11 = smov 0  }
   0x2 LB: > { %s24_s12 = sadd.s32 1, %s1072_s10  ;;  %p914_p0 = scmp.ge.s32.totalorder %s1076_s11, 1  ;;  %s1076_s11 = sphi %s1109_s11, %s12_s11   ;;  %s1072_s10 = sphi %s1107_s10, %s1280_s10   ;;  %s1068_s9 = sphi %s1105_s9, %s1279_s9  }
   0x3   : > { %p26_p1 = scmp.ge.s32.totalorder %s24_s12, 2  ;;  %p138_p2 = scmp.lt.s32.totalorder %s1076_s11, 3 }
   0x5   : > { %s1282_s12 = smov (%p26_p1, %s24_s12), 0  ;;  %p139_p3 = pnand %p914_p0, %p138_p2 }
   0x6   : > { %p165_p4 = scmp.lt.s32.totalorder (!%p139_p3), %s1068_s9, 1  ;;  %s1081_s17 = smov (!%p139_p3), 64  }
   0x7   : > { %142 = sbr.rel (%p139_p3) target bundleno = 1530 (0x5fa), region = 28  ;;  %s1084_s21 = smov (!%p139_p3), 48  }
   0x8   : > { %s1085_s22 = smov (!%p139_p3), 112   ;;  %s1086_s23 = smov (!%p139_p3), 32  }
   0x9   : > { %s1087_s24 = smov (!%p139_p3), 96   ;;  %s1088_s25 = smov (!%p139_p3), 16  }
   0xa   : > { %s1089_s26 = smov (!%p139_p3), 80  }
   0xc   : > { %v212_v0 = vlaneseq  ;;  %v1078_v1 = vmov 1966171168   ;;  %v1079_v3 = vmov 0.0   ;;  %s1284_s9 = smov (!%p165_p4, %s1068_s9), 1  ;;  %vm1080_vm0 = vmmov 0  }
   0xd   : > { %v210_v2 = vunpack.c.l.s4 %v1078_v1  ;;  %944 = vmatprep.subr.bf16.mxu0 %v1079_v3  ;;  %950 = vmatprep.subr.bf16.mxu1 %v1079_v3  ;;  %s915_s13 = sshll.u32 %s1284_s9, 1  ;;  %vm218_vm1 = vcmask 130048   ;;  %vm185_vm2 = vcmask 1024   ;;  %v1082_v12 = vmov -inf   ;;  %s179_s29 = scalar_lea.vmem %s1278_s2, %s1284_s9 }
   0xe   : > { %v213_v4 = vshrl.u32 %v212_v0, 7  ;;  %946 = vmatprep.mubr.msk.bf16.mxu0 %vm1080_vm0, %v1079_v3  ;;  %952 = vmatprep.mubr.msk.bf16.mxu1 %vm1080_vm0, %v1079_v3  ;;  %s176_s16 = scalar_lea.vmem %s1277_s1, %s915_s13  ;;  %s168_s20 = scalar_lea.vmem %s1276_s0, %s915_s13  ;;  %186 = vst.msk [vmem:[#allocation2] sm:$0x3] %vm185_vm2, %v1082_v12  ;;  %187 = vst.msk [vmem:[#allocation2 + $0x2] sm:$0x3] %vm185_vm2, %v1082_v12  ;;  %vm266_vm3 = vcmask 9216  }
   0xf   : > { %v211_v5 = vunpack.c.0.s8 %v210_v2  ;;  %v917_v7 = vld.sshfl [vmem:[%s176_s16] sm:$0x11 pattern:$0x75316420]  ;;  %188 = vst.msk [vmem:[#allocation2 + $0x4] sm:$0x3] %vm185_vm2, %v1082_v12 }
  0x10   : > { %v199_v11 = vld [vmem:[%s168_s20] sm:$0x3]  ;;  %189 = vst.msk [vmem:[#allocation2 + $0x6] sm:$0x3] %vm185_vm2, %v1082_v12  ;;  %190 = vst.msk [vmem:[#allocation3] sm:$0x3] %vm185_vm2, %v1079_v3  ;;  %v298_v20 = vcombine.high %v917_v7, %v917_v7 }
  0x11   : > { %v214_v6 = vsub.s32 %v211_v5, %v213_v4  ;;  %191 = vst.msk [vmem:[#allocation3 + $0x2] sm:$0x3] %vm185_vm2, %v1079_v3  ;;  %192 = vst.msk [vmem:[#allocation3 + $0x4] sm:$0x3] %vm185_vm2, %v1079_v3  ;;  %v1083_v18 = vmov 0   ;;  %vm310_vm4 = vcmask 1040384  }
  0x12   : > { %193 = vst.msk [vmem:[#allocation3 + $0x6] sm:$0x3] %vm185_vm2, %v1079_v3  ;;  %1028 = vset.pattern.permute.xlu1 %v1083_v18  ;;  %1029 = vset.pattern.permute.xlu0 %v1083_v18  ;;  %vm306_vm5 = vcmask 15360   ;;  %vm194_vm6 = vcmask 123904   ;;  %vm830_vm7 = vcmask 261120   ;;  %vm832_vm8 = vcmask 392192  }
  0x13   : > { %v215_v8 = vrot.slane %v917_v7, %v214_v6  ;;  %v365_v23 = vrot.slane %v199_v11, %v214_v6  ;;  %v1166_v25 = vrot.slane %v298_v20, %v214_v6  ;;  %195 = vst.msk [vmem:[#allocation4] sm:$0x3] %vm194_vm6, %v1079_v3  ;;  %196 = vst.msk [vmem:[#allocation4 + $0x2] sm:$0x3] %vm194_vm6, %v1079_v3  ;;  %vm835_vm9 = vcmask 516096  }
  0x14   : > { %197 = vst.msk [vmem:[#allocation4 + $0x4] sm:$0x3] %vm194_vm6, %v1079_v3  ;;  %198 = vst.msk [vmem:[#allocation4 + $0x6] sm:$0x3] %vm194_vm6, %v1079_v3 }
  0x15   : > { %216 = vrot.lane.b32.xlu0 %v215_v8, %s1081_s17  ;;  %v1156_v19 = vld [vmem:[#allocation2] sm:$0x3]  ;;  %v312_v26 = vsel %vm310_vm4, %v1166_v25, 0  ;;  %v372_v27 = vrot.slane %v365_v23, %v214_v6  ;;  %v1201_v61 = vld [vmem:[#allocation2 + $0x2] sm:$0x3] }
  0x16   : > { %951 = vmatpush3.bf16.msra.mxu1 %v312_v26  ;;  %v559_v1 = vld [vmem:[#allocation2 + $0x4] sm:$0x3] }
  0x17   : > { %956 = vmatprep.subr.bf16.mxu1 %v1079_v3  ;;  %v694_v6 = vld [vmem:[#allocation2 + $0x6] sm:$0x3] }
  0x87   : > { %v217_v9 = vpop.permute.xlu0 %216 }
  0x88   : > { %v223_v10 = vsel %vm218_vm1, %v217_v9, 0 }
  0x89   : > { %945 = vmatpush3.bf16.xpose.msra.mxu0 %v223_v10 }
  0x8a   : > { %962 = vmatprep.subr.bf16.mxu0 %v1079_v3 }
  0x90   : > { %947 = vmatmul.mubr.msk.bf16.vlgmr.msra.gmra.mxu0 %vm218_vm1, %v199_v11 }
  0x91   : > { %964 = vmatprep.mubr.msk.bf16.mxu0 %vm1080_vm0, %v1079_v3 }
 0x150   : > { %v259_v13 = vpop.f32.mrf.mxu0 }
 0x151   : > { %v267_v14 = vsel %vm266_vm3, %v259_v13, -inf }
 0x152   : > { %268 = vmax.xlane.f32.xlu0 %v267_v14  ;;  %v948_v15 = vpop.f32.mrf.mxu0 }
 0x154   : > { %v262_v16 = vpop.f32.mrf.mxu0 }
 0x156   : > { %v949_v17 = vpop.f32.mrf.mxu0 }
 0x1db   : > { %v269_v21 = vpop.xlane.xlu0 %268 }
 0x1dc   : > { %v1159_v22 = vmax.f32 %v1156_v19, %v269_v21 }
 0x1de   : > { %v271_v24 = vsub.f32 %v1156_v19, %v1159_v22  ;;  %357 = vst.msk [vmem:[#allocation2] sm:$0x3] %vm185_vm2, %v1159_v22  ;;  %276 = vperm.xlu1 %1028, %v1159_v22  }
 0x1e0   : > { %v272_v21 = vmul.f32 1.442695, %v271_v24 }
 0x1e2   : > { %375 = vrot.lane.b32.xlu1 %v215_v8, %s1084_s21 }
 0x1e6   : > { %373 = vrot.lane.b32.xlu1 %v372_v27, %s1085_s22 }
 0x1ea   : > { %510 = vrot.lane.b32.xlu1 %v215_v8, %s1086_s23 }
 0x1ee   : > { %508 = vrot.lane.b32.xlu1 %v372_v27, %s1087_s24 }
 0x1f2   : > { %645 = vrot.lane.b32.xlu1 %v215_v8, %s1088_s25 }
 0x1f6   : > { %643 = vrot.lane.b32.xlu1 %v372_v27, %s1089_s26 }
 0x259   : > { %v277_v28 = vpop.permute.xlu1 %276 }
 0x25a   : > { %v279_v29 = vsub.f32 %v259_v13, %v277_v28 }
 0x25c   : > { %v280_v30 = vmul.f32 1.442695, %v279_v29 }
 0x25d   : > { %v376_v31 = vpop.permute.xlu1 %375 }
 0x25e   : > { %1030 = vpow2.f32 %v280_v30  ;;  %v381_v34 = vsel %vm218_vm1, %v376_v31, 0 }
 0x261   : > { %v374_v32 = vpop.permute.xlu1 %373 }
 0x265   : > { %v511_v36 = vpop.permute.xlu1 %510 }
 0x266   : > { %v516_v38 = vsel %vm218_vm1, %v511_v36, 0 }
 0x269   : > { %v509_v37 = vpop.permute.xlu1 %508 }
 0x26b   : > { %v1177_v33 = vpop.eup %1030 }
 0x26c   : > { %v297_v35 = vpack.c.bf16 %v1177_v33, %v1177_v33  ;;  %v284_v10 = vsel %vm266_vm3, %v1177_v33, 0.0 }
 0x26d   : > { %v646_v39 = vpop.permute.xlu1 %645 }
 0x26e   : > { %953 = vmatmul.mubr.msk.bf16.vlgmr.msra.gmra.mxu1 %vm306_vm5, %v297_v35  ;;  %v651_v40 = vsel %vm218_vm1, %v646_v39, 0 }
 0x26f   : > { %957 = vmatpush3.bf16.xpose.msra.mxu1 %v381_v34  ;;  %958 = vmatprep.mubr.msk.bf16.mxu1 %vm1080_vm0, %v1079_v3 }
 0x270   : > { %968 = vmatprep.subr.bf16.mxu1 %v1079_v3 }
 0x271   : > { %v644_v41 = vpop.permute.xlu1 %643 }
 0x276   : > { %959 = vmatmul.mubr.msk.bf16.vlgmr.msra.gmra.mxu1 %vm218_vm1, %v374_v32 }
 0x277   : > { %969 = vmatpush3.bf16.xpose.msra.mxu1 %v516_v38  ;;  %970 = vmatprep.mubr.msk.bf16.mxu1 %vm1080_vm0, %v1079_v3 }
 0x278   : > { %980 = vmatprep.subr.bf16.mxu1 %v1079_v3 }
 0x27e   : > { %971 = vmatmul.mubr.msk.bf16.vlgmr.msra.gmra.mxu1 %vm218_vm1, %v509_v37 }
 0x27f   : > { %981 = vmatpush3.bf16.xpose.msra.mxu1 %v651_v40  ;;  %982 = vmatprep.mubr.msk.bf16.mxu1 %vm1080_vm0, %v1079_v3 }
 0x286   : > { %983 = vmatmul.mubr.msk.bf16.vlgmr.msra.gmra.mxu1 %vm218_vm1, %v644_v41 }
 0x32e   : > { %v1196_v42 = vpop.f32.mrf.mxu1 }
 0x330   : > { %v954_v43 = vpop.f32.mrf.mxu1 }
 0x331   : > { %v282_v43 = vld [vmem:[#allocation3] sm:$0x3] }
 0x332   : > { %v351_v44 = vpop.f32.mrf.mxu1 }
 0x334   : > { %v955_v45 = vpop.f32.mrf.mxu1 }
 0x336   : > { %v417_v46 = vpop.f32.mrf.mxu1 }
 0x337   : > { %v425_v47 = vsel %vm266_vm3, %v417_v46, -inf }
 0x338   : > { %426 = vmax.xlane.f32.xlu1 %v425_v47  ;;  %v960_v48 = vpop.f32.mrf.mxu1 }
 0x33a   : > { %v420_v49 = vpop.f32.mrf.mxu1 }
 0x33b   : > { %v441_v49 = vld [vmem:[#allocation3 + $0x2] sm:$0x3] }
 0x33c   : > { %v961_v50 = vpop.f32.mrf.mxu1 }
 0x33e   : > { %v552_v51 = vpop.f32.mrf.mxu1 }
 0x33f   : > { %v560_v52 = vsel %vm266_vm3, %v552_v51, -inf }
 0x340   : > { %561 = vmax.xlane.f32.xlu0 %v560_v52  ;;  %v972_v53 = vpop.f32.mrf.mxu1 }
 0x341   : > { %v290_v53 = vld [vmem:[#allocation4] sm:$0x3] }
 0x342   : > { %v555_v54 = vpop.f32.mrf.mxu1 }
 0x344   : > { %v973_v55 = vpop.f32.mrf.mxu1 }
 0x345   : > { %v576_v55 = vld [vmem:[#allocation3 + $0x4] sm:$0x3] }
 0x346   : > { %v687_v56 = vpop.f32.mrf.mxu1 }
 0x347   : > { %v695_v57 = vsel %vm266_vm3, %v687_v56, -inf }
 0x348   : > { %696 = vmax.xlane.f32.xlu0 %v695_v57  ;;  %v984_v58 = vpop.f32.mrf.mxu1 }
 0x34a   : > { %v690_v59 = vpop.f32.mrf.mxu1 }
 0x34c   : > { %v985_v60 = vpop.f32.mrf.mxu1 }
 0x3c1   : > { %v427_v62 = vpop.xlane.xlu1 %426 }
 0x3c2   : > { %v1204_v63 = vmax.f32 %v1201_v61, %v427_v62  ;;  %v711_v62 = vld [vmem:[#allocation3 + $0x6] sm:$0x3] }
 0x3c4   : > { %v429_v0 = vsub.f32 %v1201_v61, %v1204_v63  ;;  %507 = vst.msk [vmem:[#allocation2 + $0x2] sm:$0x3] %vm185_vm2, %v1204_v63  ;;  %434 = vperm.xlu0 %1029, %v1204_v63  }
 0x3c6   : > { %v430_v40 = vmul.f32 1.442695, %v429_v0 }
 0x3c8   : > { %592 = vrot.lane.b32.xlu0 %v1166_v25, %s1087_s24 }
 0x3c9   : > { %v562_v2 = vpop.xlane.xlu0 %561 }
 0x3ca   : > { %v563_v4 = vmax.f32 %v559_v1, %v562_v2 }
 0x3cc   : > { %v564_v5 = vsub.f32 %v559_v1, %v563_v4  ;;  %642 = vst.msk [vmem:[#allocation2 + $0x4] sm:$0x3] %vm185_vm2, %v563_v4  ;;  %569 = vperm.xlu1 %1028, %v563_v4  }
 0x3ce   : > { %v565_v29 = vmul.f32 1.442695, %v564_v5 }
 0x3d1   : > { %v697_v7 = vpop.xlane.xlu0 %696 }
 0x3d2   : > { %v698_v8 = vmax.f32 %v694_v6, %v697_v7  ;;  %v449_v7 = vld [vmem:[#allocation4 + $0x2] sm:$0x3] }
 0x3d4   : > { %v699_v9 = vsub.f32 %v694_v6, %v698_v8  ;;  %777 = vst.msk [vmem:[#allocation2 + $0x6] sm:$0x3] %vm185_vm2, %v698_v8  ;;  %704 = vperm.xlu1 %1028, %v698_v8  }
 0x3d6   : > { %v700_v22 = vmul.f32 1.442695, %v699_v9 }
 0x3d8   : > { %457 = vrot.lane.b32.xlu1 %v1166_v25, %s1085_s22 }
 0x3dc   : > { %727 = vrot.lane.b32.xlu1 %v1166_v25, %s1089_s26 }
 0x3e7   : > { %285 = vadd.xlane.f32.xlu0 %v284_v10 }
 0x43f   : > { %v435_v11 = vpop.permute.xlu0 %434 }
 0x440   : > { %v437_v12 = vsub.f32 %v417_v46, %v435_v11 }
 0x442   : > { %v438_v13 = vmul.f32 1.442695, %v437_v12 }
 0x443   : > { %v593_v27 = vpop.permute.xlu0 %592 }
 0x444   : > { %1032 = vpow2.f32 %v438_v13  ;;  %v598_v31 = vsel %vm310_vm4, %v593_v27, 0  ;;  %v584_v13 = vld [vmem:[#allocation4 + $0x4] sm:$0x3] }
 0x447   : > { %v570_v14 = vpop.permute.xlu1 %569 }
 0x448   : > { %v572_v15 = vsub.f32 %v552_v51, %v570_v14 }
 0x44a   : > { %v573_v16 = vmul.f32 1.442695, %v572_v15 }
 0x44c   : > { %1034 = vpow2.f32 %v573_v16 }
 0x44f   : > { %v705_v17 = vpop.permute.xlu1 %704 }
 0x450   : > { %v707_v18 = vsub.f32 %v687_v56, %v705_v17 }
 0x451   : > { %v1033_v20 = vpop.eup %1032 }
 0x452   : > { %v708_v23 = vmul.f32 1.442695, %v707_v18  ;;  %v443_v25 = vsel %vm266_vm3, %v1033_v20, 0.0  ;;  %v456_v30 = vpack.c.bf16 %v1033_v20, %v1033_v20 }
 0x453   : > { %444 = vadd.xlane.f32.xlu1 %v443_v25  ;;  %v458_v26 = vpop.permute.xlu1 %457 }
 0x454   : > { %1036 = vpow2.f32 %v708_v23  ;;  %v463_v28 = vsel %vm310_vm4, %v458_v26, 0  ;;  %v719_v23 = vld [vmem:[#allocation4 + $0x6] sm:$0x3] }
 0x455   : > { %963 = vmatpush3.bf16.msra.mxu0 %v463_v28  ;;  %1038 = vpow2.f32 %v272_v21 }
 0x456   : > { %974 = vmatprep.subr.bf16.mxu0 %v1079_v3  ;;  %1040 = vpow2.f32 %v565_v29 }
 0x457   : > { %v728_v32 = vpop.permute.xlu1 %727  ;;  %1042 = vpow2.f32 %v700_v22 }
 0x458   : > { %965 = vmatmul.mubr.msk.bf16.vlgmr.msra.gmra.mxu0 %vm306_vm5, %v456_v30  ;;  %v733_v34 = vsel %vm310_vm4, %v728_v32, 0  ;;  %1044 = vpow2.f32 %v430_v40 }
 0x459   : > { %v1035_v19 = vpop.eup %1034  ;;  %975 = vmatpush3.bf16.msra.mxu0 %v598_v31  ;;  %976 = vmatprep.mubr.msk.bf16.mxu0 %vm1080_vm0, %v1079_v3 }
 0x45a   : > { %v578_v24 = vsel %vm266_vm3, %v1035_v19, 0.0  ;;  %986 = vmatprep.subr.bf16.mxu0 %v1079_v3  ;;  %v591_v33 = vpack.c.bf16 %v1035_v19, %v1035_v19 }
 0x45b   : > { %579 = vadd.xlane.f32.xlu0 %v578_v24 }
 0x460   : > { %977 = vmatmul.mubr.msk.bf16.vlgmr.msra.gmra.mxu0 %vm306_vm5, %v591_v33 }
 0x461   : > { %v1037_v35 = vpop.eup %1036  ;;  %987 = vmatpush3.bf16.msra.mxu0 %v733_v34  ;;  %988 = vmatprep.mubr.msk.bf16.mxu0 %vm1080_vm0, %v1079_v3 }
 0x462   : > { %v713_v36 = vsel %vm266_vm3, %v1037_v35, 0.0  ;;  %v1039_v37 = vpop.eup %1038  ;;  %v726_v38 = vpack.c.bf16 %v1037_v35, %v1037_v35 }
 0x463   : > { %714 = vadd.xlane.f32.xlu0 %v713_v36  ;;  %v1041_v39 = vpop.eup %1040  ;;  %v283_v44 = vmul.f32 %v1039_v37, %v282_v43 }
 0x464   : > { %293 = vperm.xlu1 %1028, %v1039_v37   ;;  %v1043_v41 = vpop.eup %1042  ;;  %v577_v58 = vmul.f32 %v1041_v39, %v576_v55 }
 0x465   : > { %v1045_v46 = vpop.eup %1044  ;;  %v712_v63 = vmul.f32 %v1043_v41, %v711_v62 }
 0x466   : > { %v442_v50 = vmul.f32 %v1045_v46, %v441_v49 }
 0x468   : > { %989 = vmatmul.mubr.msk.bf16.vlgmr.msra.gmra.mxu0 %vm306_vm5, %v726_v38  ;;  %587 = vperm.xlu1 %1028, %v1041_v39  }
 0x46c   : > { %722 = vperm.xlu1 %1028, %v1043_v41  }
 0x470   : > { %v286_v3 = vpop.xlane.xlu0 %285 }
 0x471   : > { %v287_v45 = vadd.f32 %v286_v3, %v283_v44 }
 0x473   : > { %289 = vst.msk [vmem:[#allocation3] sm:$0x3] %vm185_vm2, %v287_v45 }
 0x479   : > { %452 = vperm.xlu0 %1029, %v1045_v46  }
 0x47a   : > { %v782_v47 = vld [vmem:[#allocation3] sm:$0x3] }
 0x47b   : > { %1046 = vrcp.f32 %v782_v47 }
 0x488   : > { %v1047_v48 = vpop.eup %1046 }
 0x489   : > { %786 = vperm.xlu0 %1029, %v1047_v48  }
 0x4dc   : > { %v445_v51 = vpop.xlane.xlu1 %444 }
 0x4dd   : > { %v446_v52 = vadd.f32 %v445_v51, %v442_v50 }
 0x4df   : > { %447 = vst.msk [vmem:[#allocation3 + $0x2] sm:$0x3] %vm185_vm2, %v446_v52 }
 0x4e0   : > { %v294_v54 = vpop.permute.xlu1 %293 }
 0x4e1   : > { %v296_v56 = vmul.f32 %v294_v54, %v290_v53 }
 0x4e3   : > { %v354_v57 = vadd.f32 %v1196_v42, %v296_v56 }
 0x4e4   : > { %v580_v59 = vpop.xlane.xlu0 %579  ;;  %v588_v14 = vpop.permute.xlu1 %587 }
 0x4e5   : > { %356 = vst.msk [vmem:[#allocation4] sm:$0x3] %vm194_vm6, %v354_v57  ;;  %v581_v60 = vadd.f32 %v580_v59, %v577_v58  ;;  %v590_v17 = vmul.f32 %v588_v14, %v584_v13 }
 0x4e6   : > { %v791_v61 = vld [vmem:[#allocation3 + $0x2] sm:$0x3] }
 0x4e7   : > { %582 = vst.msk [vmem:[#allocation3 + $0x4] sm:$0x3] %vm185_vm2, %v581_v60  ;;  %1048 = vrcp.f32 %v791_v61 }
 0x4e8   : > { %v723_v25 = vpop.permute.xlu1 %722 }
 0x4e9   : > { %v725_v28 = vmul.f32 %v723_v25, %v719_v23 }
 0x4ec   : > { %v715_v0 = vpop.xlane.xlu0 %714  ;;  %v781_v41 = vld [vmem:[#allocation4] sm:$0x3] }
 0x4ed   : > { %v716_v1 = vadd.f32 %v715_v0, %v712_v63 }
 0x4ee   : > { %v800_v2 = vld [vmem:[#allocation3 + $0x4] sm:$0x3] }
 0x4ef   : > { %717 = vst.msk [vmem:[#allocation3 + $0x6] sm:$0x3] %vm185_vm2, %v716_v1  ;;  %1050 = vrcp.f32 %v800_v2 }
 0x4f4   : > { %v1049_v4 = vpop.eup %1048  ;;  %v453_v8 = vpop.permute.xlu0 %452 }
 0x4f5   : > { %795 = vperm.xlu1 %1028, %v1049_v4   ;;  %v455_v9 = vmul.f32 %v453_v8, %v449_v7 }
 0x4f6   : > { %v809_v42 = vld [vmem:[#allocation3 + $0x6] sm:$0x3] }
 0x4f7   : > { %1052 = vrcp.f32 %v809_v42 }
 0x4fc   : > { %v1051_v5 = vpop.eup %1050 }
 0x4fd   : > { %804 = vperm.xlu0 %1029, %v1051_v5  }
 0x504   : > { %v1053_v6 = vpop.eup %1052  ;;  %v787_v34 = vpop.permute.xlu0 %786 }
 0x505   : > { %813 = vperm.xlu1 %1028, %v1053_v6   ;;  %v789_v44 = vmul.f32 %v787_v34, %v781_v41 }
 0x518   : > { %v499_v10 = vpop.f32.mrf.mxu0 }
 0x519   : > { %v505_v11 = vadd.f32 %v499_v10, %v455_v9 }
 0x51a   : > { %v966_v12 = vpop.f32.mrf.mxu0 }
 0x51b   : > { %506 = vst.msk [vmem:[#allocation4 + $0x2] sm:$0x3] %vm194_vm6, %v505_v11 }
 0x51c   : > { %v502_v15 = vpop.f32.mrf.mxu0 }
 0x51e   : > { %v967_v16 = vpop.f32.mrf.mxu0 }
 0x520   : > { %v634_v18 = vpop.f32.mrf.mxu0 }
 0x521   : > { %v640_v20 = vadd.f32 %v634_v18, %v590_v17 }
 0x522   : > { %v978_v21 = vpop.f32.mrf.mxu0  ;;  %v790_v32 = vld [vmem:[#allocation4 + $0x2] sm:$0x3] }
 0x523   : > { %641 = vst.msk [vmem:[#allocation4 + $0x4] sm:$0x3] %vm194_vm6, %v640_v20 }
 0x524   : > { %v637_v26 = vpop.f32.mrf.mxu0 }
 0x526   : > { %v979_v27 = vpop.f32.mrf.mxu0 }
 0x528   : > { %v769_v29 = vpop.f32.mrf.mxu0 }
 0x529   : > { %v775_v30 = vadd.f32 %v769_v29, %v725_v28 }
 0x52a   : > { %v990_v31 = vpop.f32.mrf.mxu0  ;;  %v799_v36 = vld [vmem:[#allocation4 + $0x4] sm:$0x3] }
 0x52b   : > { %776 = vst.msk [vmem:[#allocation4 + $0x6] sm:$0x3] %vm194_vm6, %v775_v30 }
 0x52c   : > { %v772_v19 = vpop.f32.mrf.mxu0 }
 0x52e   : > { %v991_v22 = vpop.f32.mrf.mxu0 }
 0x532   : > { %v808_v39 = vld [vmem:[#allocation4 + $0x6] sm:$0x3] }
 0x570   : > { %v796_v24 = vpop.permute.xlu1 %795 }
 0x571   : > { %v798_v33 = vmul.f32 %v796_v24, %v790_v32 }
 0x573   : > { %818 = vrot.lane.b32.xlu0 %v798_v33, %s1088_s25 }
 0x578   : > { %v805_v35 = vpop.permute.xlu0 %804 }
 0x579   : > { %v807_v37 = vmul.f32 %v805_v35, %v799_v36 }
 0x57b   : > { %822 = vrot.lane.b32.xlu1 %v807_v37, %s1086_s23 }
 0x580   : > { %v814_v38 = vpop.permute.xlu1 %813 }
 0x581   : > { %v816_v40 = vmul.f32 %v814_v38, %v808_v39 }
 0x583   : > { %826 = vrot.lane.b32.xlu0 %v816_v40, %s1084_s21 }
 0x5e5   : > { %v819_v43 = vpop.permute.xlu0 %818 }
 0x5e6   : > { %v829_v45 = vsel %vm218_vm1, %v789_v44, %v819_v43 }
 0x5ed   : > { %v823_v3 = vpop.permute.xlu1 %822 }
 0x5ee   : > { %v831_v46 = vsel %vm830_vm7, %v829_v45, %v823_v3 }
 0x5f5   : > { %v827_v47 = vpop.permute.xlu0 %826 }
 0x5f6   : > { %v833_v48 = vsel %vm832_vm8, %v831_v46, %v827_v47 }
 0x5f7   : > { %v834_v49 = vpack.c.bf16 %v833_v48, %v833_v48 }
 0x5f9   : > { %836 = vst.msk [vmem:[%s179_s29] sm:$0x1] %vm835_vm9, %v834_v49 }
 0x5fa PF: > { %s12_s11 = sadd.s32 1, %s1076_s11   ;;  %s1279_s9 = smov %s1072_s10 }
 0x5fb   : > { %p9_p5 = scmp.ge.s32.totalorder %s12_s11, 4   ;;  %s1280_s10 = smov %s1282_s12 }
 0x5fd   :  { %11 = sbr.rel (!%p9_p5) target bundleno = 2 (0x2), region = 78 }

// kernel: speech_transformer_forward.48
= control target key start
LH: loop header
LB: loop body
LE: loop exit
PB: predicated region body
PF: predicated region fallthrough
CT: control target
= control target key end

     0   :  { %v135_v0 = vmov 0.0   ;;  %vm136_vm0 = vmmov 0   ;;  %vm55_vm1 = vcmask 523264   ;;  %vm100_vm2 = vcmask 517120   ;;  %s178_s1 = inlined_call_operand.vmem [shape: bf16[64,64], index: 1, kind: input, shape index: {}]   ;;  %s179_s0 = inlined_call_operand.vmem [shape: bf16[4,64], index: 0, kind: input, shape index: {}]   ;;  %s180_s2 = inlined_call_operand.vmem [shape: f32[1,64], index: 2, kind: input, shape index: {}]   ;;  %s181_s3 = inlined_call_operand.vmem [shape: bf16[4,64], index: 3, kind: output, shape index: {}]  }
   0x1   :  { %117 = vmatprep.subr.bf16.mxu0 %v135_v0  ;;  %v131_v1 = vld [vmem:[%s178_s1 + $0x18] sm:$0xff]   ;;  %125 = vmatprep.mubr.msk.bf16.mxu0 %vm136_vm0, %v135_v0  ;;  %v132_v2 = vld [vmem:[%s178_s1 + $0x10] sm:$0xff]   ;;  %v133_v3 = vld [vmem:[%s178_s1 + $0x8] sm:$0xff]  }
   0x2   :  { %118 = vmatpush3.bf16.msra.mxu0 %v131_v1  ;;  %v134_v4 = vld [vmem:[%s178_s1] sm:$0xff]  }
   0x3   :  { %119 = vmatprep.subr.bf16.mxu0 %v135_v0  ;;  %v15_v5 = vld [vmem:[%s179_s0] sm:$0x3] }
   0x4   :  { %v106_v6 = vld [vmem:[%s180_s2] ss:$0 sm:$0xff] }
   0x6   :  { %120 = vmatpush3.bf16.msra.mxu0 %v132_v2 }
   0x7   :  { %121 = vmatprep.subr.bf16.mxu0 %v135_v0 }
   0xa   :  { %122 = vmatpush3.bf16.msra.mxu0 %v133_v3 }
   0xb   :  { %123 = vmatprep.subr.bf16.mxu0 %v135_v0 }
   0xe   :  { %124 = vmatpush3.bf16.msra.mxu0 %v134_v4 }
  0x11   :  { %126 = vmatmul.mubr.msk.bf16.vlgmr.msra.gmra.mxu0 %vm55_vm1, %v15_v5 }
  0xd1   :  { %v93_v7 = vpop.f32.mrf.mxu0 }
  0xd2   :  { %v94_v8 = vadd.f32 %v106_v6, %v93_v7 }
  0xd3   :  { %v127_v9 = vpop.f32.mrf.mxu0 }
  0xd4   :  { %v99_v10 = vpack.c.bf16 %v94_v8, %v94_v8 }
  0xd5   :  { %v96_v11 = vpop.f32.mrf.mxu0 }
  0xd6   :  { %101 = vst.msk [vmem:[%s181_s3] sm:$0x3] %vm100_vm2, %v99_v10 }
  0xd7   :  { %v128_v12 = vpop.f32.mrf.mxu0 }

// kernel: speech_transformer_forward.61
= control target key start
LH: loop header
LB: loop body
LE: loop exit
PB: predicated region body
PF: predicated region fallthrough
CT: control target
= control target key end

     0   :  { %v168_v1 = vmov 0.0   ;;  %vm169_vm0 = vmmov 0   ;;  %s212_s0 = inlined_call_operand.vmem [shape: bf16[4,64], index: 0, kind: input, shape index: {}]   ;;  %s213_s1 = inlined_call_operand.vmem [shape: bf16[64,16], index: 1, kind: input, shape index: {}]   ;;  %s214_s2 = inlined_call_operand.vmem [shape: f32[1,16], index: 2, kind: input, shape index: {}]   ;;  %s215_s3 = inlined_call_operand.hbm [shape: f32[4,16], index: 3, kind: output, shape index: {}]  }
   0x1   :  { %v142_v0 = vld [vmem:[%s213_s1 + $0x18] sm:$0xff]   ;;  %127 = vmatprep.subr.bf16.mxu0 %v168_v1  ;;  %v143_v2 = vld [vmem:[%s213_s1 + $0x10] sm:$0xff]   ;;  %135 = vmatprep.mubr.msk.bf16.mxu0 %vm169_vm0, %v168_v1 }
   0x2   :  { %128 = vmatpush3.bf16.msra.mxu0 %v142_v0 }
   0x3   :  { %129 = vmatprep.subr.bf16.mxu0 %v168_v1 }
   0x4   :  { %8 = vsyncpa [#allocation3], 0  ;;  %v144_v3 = vld [vmem:[%s213_s1 + $0x8] sm:$0xff]   ;;  %v145_v4 = vld [vmem:[%s213_s1] sm:$0xff]   ;;  %vm56_vm1 = vcmask 523264   ;;  %s170_s24 = smov [#allocation2]  }
   0x5   :  { %v16_v5 = vld [vmem:[%s212_s0] sm:$0x3]  ;;  %s108_s25 = sshll.u32 %s170_s24, 4  ;;  %vm100_vm2 = vcmask 125952   ;;  %s109_s25 = int_to_ptr.vmem [resolvable:$true] %s108_s25 }
   0x6   :  { %130 = vmatpush3.bf16.msra.mxu0 %v143_v2  ;;  %v116_v6 = vld [vmem:[%s214_s2] ss:$0 sm:$0xff]  ;;  %s146_s1 = scalar_lea.vmem %s109_s25, 64  ;;  %p151_p1 = scmp.lt.s32.totalorder %s109_s25, %s109_s25 }
   0x7   :  { %131 = vmatprep.subr.bf16.mxu0 %v168_v1  ;;  %p147_p0 = scmp.ne.s32.totalorder %s109_s25, %s146_s1  ;;  %p152_p2 = scmp.lt.s32.totalorder %s146_s1, %s146_s1 }
   0x9   :  { %p153_p3 = por %p152_p2, %p151_p1 }
   0xa   :  { %132 = vmatpush3.bf16.msra.mxu0 %v144_v3 }
   0xb   :  { %133 = vmatprep.subr.bf16.mxu0 %v168_v1  ;;  %p154_p4 = pnand %p153_p3, %p147_p0 }
   0xe   :  { %134 = vmatpush3.bf16.msra.mxu0 %v145_v4 }
  0x11   :  { %136 = vmatmul.mubr.msk.bf16.vlgmr.msra.gmra.mxu0 %vm56_vm1, %v16_v5 }
  0xd1   :  { %v94_v7 = vpop.f32.mrf.mxu0 }
  0xd2   :  { %v95_v8 = vadd.f32 %v116_v6, %v94_v7 }
  0xd3   :  { %v137_v9 = vpop.f32.mrf.mxu0 }
  0xd4   :  { %101 = vst.msk [vmem:[#allocation2] sm:$0xf] %vm100_vm2, %v95_v8 }
  0xd5   :  { %v97_v10 = vpop.f32.mrf.mxu0 }
  0xd6   :  { %157 = shalt.err (!%p154_p4)
}
  0xd7   :  { %111 = dma.vmem_to_hbm [thread:$0]  %s109_s25, 64, %s215_s3, [#allocation3]   ;;  %v138_v11 = vpop.f32.mrf.mxu0 }
  0xd8   :  { %166 = dma.done.wait [#allocation3], 64  }
  0xd9   :  { %167 = vsyncadd [#allocation3], 4294967232 }
  0xda   :  { %115 = vsyncpa [#allocation3], 1 }

// kernel: speech_transformer_forward.50
= control target key start
LH: loop header
LB: loop body
LE: loop exit
PB: predicated region body
PF: predicated region fallthrough
CT: control target
= control target key end

     0   :  { %s1076_s9 = smov 0   ;;  %s1078_s10 = smov 0   ;;  %s1245_s0 = inlined_call_operand.vmem [shape: bf16[2,2,64], index: 0, kind: input, shape index: {}]   ;;  %s1246_s1 = inlined_call_operand.vmem [shape: bf16[2,2,128], index: 1, kind: input, shape index: {}]   ;;  %s1247_s2 = inlined_call_operand.vmem [shape: bf16[2,2,64], index: 2, kind: output, shape index: {}]  }
   0x1   :  { %s1080_s11 = smov 0  }
   0x2 LB: > { %s24_s12 = sadd.s32 1, %s1043_s10  ;;  %p888_p0 = scmp.ge.s32.totalorder %s1047_s11, 1  ;;  %s1047_s11 = sphi %s1080_s11, %s12_s11   ;;  %s1043_s10 = sphi %s1078_s10, %s1249_s10   ;;  %s1039_s9 = sphi %s1076_s9, %s1248_s9  }
   0x3   : > { %p26_p1 = scmp.ge.s32.totalorder %s24_s12, 2  ;;  %p135_p2 = scmp.lt.s32.totalorder %s1047_s11, 3 }
   0x5   : > { %s1251_s12 = smov (%p26_p1, %s24_s12), 0  ;;  %p136_p3 = pnand %p888_p0, %p135_p2 }
   0x6   : > { %p159_p4 = scmp.lt.s32.totalorder (!%p136_p3), %s1039_s9, 1  ;;  %s1054_s19 = smov (!%p136_p3), 64  }
   0x7   : > { %139 = sbr.rel (%p136_p3) target bundleno = 1409 (0x581), region = 28  ;;  %s1055_s20 = smov (!%p136_p3), 112  }
   0x8   : > { %s1056_s21 = smov (!%p136_p3), 96   ;;  %s1057_s22 = smov (!%p136_p3), 80  }
   0x9   : > { %s1058_s23 = smov (!%p136_p3), 48   ;;  %s1059_s24 = smov (!%p136_p3), 32  }
   0xa   : > { %s1060_s25 = smov (!%p136_p3), 16  }
   0xc   : > { %v1049_v0 = vmov 0.0   ;;  %s1253_s9 = smov (!%p159_p4, %s1039_s9), 1  ;;  %vm1050_vm0 = vmmov 0   ;;  %vm192_vm1 = vcmask 130048   ;;  %vm176_vm2 = vcmask 1024  }
   0xd   : > { %915 = vmatprep.subr.bf16.mxu0 %v1049_v0  ;;  %921 = vmatprep.subr.bf16.mxu1 %v1049_v0  ;;  %s167_s15 = scalar_lea.vmem %s1246_s1, %s1253_s9  ;;  %s161_s18 = scalar_lea.vmem %s1245_s0, %s1253_s9  ;;  %v1051_v4 = vmov -inf   ;;  %181 = vst.msk [vmem:[#allocation3] sm:$0x3] %vm176_vm2, %v1049_v0  ;;  %182 = vst.msk [vmem:[#allocation3 + $0x2] sm:$0x3] %vm176_vm2, %v1049_v0  ;;  %vm240_vm3 = vcmask 9216   ;;  %v276_v7 = vlaneseq }
   0xe   : > { %917 = vmatprep.mubr.msk.bf16.mxu0 %vm1050_vm0, %v1049_v0  ;;  %923 = vmatprep.mubr.msk.bf16.mxu1 %vm1050_vm0, %v1049_v0  ;;  %v191_v1 = vld [vmem:[%s167_s15] sm:$0x1]  ;;  %177 = vst.msk [vmem:[#allocation2] sm:$0x3] %vm176_vm2, %v1051_v4  ;;  %178 = vst.msk [vmem:[#allocation2 + $0x2] sm:$0x3] %vm176_vm2, %v1051_v4  ;;  %s170_s28 = scalar_lea.vmem %s1247_s2, %s1253_s9 }
   0xf   : > { %v197_v2 = vsel %vm192_vm1, %v191_v1, 0  ;;  %v190_v3 = vld [vmem:[%s161_s18] sm:$0x1]  ;;  %179 = vst.msk [vmem:[#allocation2 + $0x4] sm:$0x3] %vm176_vm2, %v1051_v4  ;;  %v277_v12 = vshrl.u32 %v276_v7, 7 }
  0x10   : > { %916 = vmatpush3.bf16.xpose.msra.mxu0 %v197_v2  ;;  %180 = vst.msk [vmem:[#allocation2 + $0x6] sm:$0x3] %vm176_vm2, %v1051_v4  ;;  %183 = vst.msk [vmem:[#allocation3 + $0x4] sm:$0x3] %vm176_vm2, %v1049_v0  ;;  %v1052_v5 = vmov 1966171168  }
  0x11   : > { %933 = vmatprep.subr.bf16.mxu0 %v1049_v0  ;;  %184 = vst.msk [vmem:[#allocation3 + $0x6] sm:$0x3] %vm176_vm2, %v1049_v0  ;;  %v274_v6 = vunpack.c.l.s4 %v1052_v5  ;;  %v1053_v17 = vmov 0   ;;  %vm293_vm4 = vcmask 1040384   ;;  %vm289_vm5 = vcmask 15360  }
  0x12   : > { %999 = vset.pattern.permute.xlu0 %v1053_v17  ;;  %1000 = vset.pattern.permute.xlu1 %v1053_v17  ;;  %vm185_vm6 = vcmask 123904   ;;  %vm813_vm7 = vcmask 261120   ;;  %vm815_vm8 = vcmask 392192   ;;  %vm818_vm9 = vcmask 516096  }
  0x13   : > { %v275_v11 = vunpack.c.0.s8 %v274_v6  ;;  %186 = vst.msk [vmem:[#allocation4] sm:$0x3] %vm185_vm6, %v1049_v0  ;;  %187 = vst.msk [vmem:[#allocation4 + $0x2] sm:$0x3] %vm185_vm6, %v1049_v0 }
  0x14   : > { %188 = vst.msk [vmem:[#allocation4 + $0x4] sm:$0x3] %vm185_vm6, %v1049_v0  ;;  %189 = vst.msk [vmem:[#allocation4 + $0x6] sm:$0x3] %vm185_vm6, %v1049_v0 }
  0x15   : > { %v278_v15 = vsub.s32 %v275_v11, %v277_v12  ;;  %v1134_v21 = vld [vmem:[#allocation2] sm:$0x3]  ;;  %v1170_v60 = vld [vmem:[#allocation2 + $0x2] sm:$0x3] }
  0x17   : > { %918 = vmatmul.mubr.msk.bf16.vlgmr.msra.gmra.mxu0 %vm192_vm1, %v190_v3  ;;  %v279_v16 = vrot.slane %v191_v1, %v278_v15  ;;  %v348_v19 = vrot.slane %v190_v3, %v278_v15  ;;  %v542_v1 = vld [vmem:[#allocation2 + $0x4] sm:$0x3]  ;;  %v677_v5 = vld [vmem:[#allocation2 + $0x6] sm:$0x3] }
  0x18   : > { %935 = vmatprep.mubr.msk.bf16.mxu0 %vm1050_vm0, %v1049_v0 }
  0x19   : > { %v1128_v18 = vrot.slane %v279_v16, %v278_v15  ;;  %v355_v20 = vrot.slane %v348_v19, %v278_v15 }
  0x1b   : > { %287 = vrot.lane.b32.xlu1 %v1128_v18, %s1054_s19 }
  0x1f   : > { %358 = vrot.lane.b32.xlu1 %v1128_v18, %s1055_s20 }
  0x23   : > { %356 = vrot.lane.b32.xlu1 %v355_v20, %s1055_s20 }
  0x27   : > { %493 = vrot.lane.b32.xlu1 %v1128_v18, %s1056_s21 }
  0x2b   : > { %491 = vrot.lane.b32.xlu1 %v355_v20, %s1056_s21 }
  0x2f   : > { %628 = vrot.lane.b32.xlu1 %v1128_v18, %s1057_s22 }
  0x33   : > { %626 = vrot.lane.b32.xlu1 %v355_v20, %s1057_s22 }
  0x8d   : > { %v288_v25 = vpop.permute.xlu1 %287 }
  0x8e   : > { %v295_v26 = vsel %vm293_vm4, %v288_v25, 0 }
  0x8f   : > { %922 = vmatpush3.bf16.msra.mxu1 %v295_v26 }
  0x90   : > { %927 = vmatprep.subr.bf16.mxu1 %v1049_v0 }
  0x91   : > { %v359_v30 = vpop.permute.xlu1 %358 }
  0x92   : > { %v364_v33 = vsel %vm192_vm1, %v359_v30, 0 }
  0x95   : > { %v357_v31 = vpop.permute.xlu1 %356 }
  0x99   : > { %v494_v35 = vpop.permute.xlu1 %493 }
  0x9a   : > { %v499_v37 = vsel %vm192_vm1, %v494_v35, 0 }
  0x9d   : > { %v492_v36 = vpop.permute.xlu1 %491 }
  0xa1   : > { %v629_v38 = vpop.permute.xlu1 %628 }
  0xa2   : > { %v634_v39 = vsel %vm192_vm1, %v629_v38, 0 }
  0xa5   : > { %v627_v40 = vpop.permute.xlu1 %626 }
  0xd7   : > { %v233_v8 = vpop.f32.mrf.mxu0 }
  0xd8   : > { %v241_v9 = vsel %vm240_vm3, %v233_v8, -inf }
  0xd9   : > { %242 = vmax.xlane.f32.xlu0 %v241_v9  ;;  %v919_v10 = vpop.f32.mrf.mxu0 }
  0xdb   : > { %v236_v13 = vpop.f32.mrf.mxu0 }
  0xdd   : > { %v920_v14 = vpop.f32.mrf.mxu0 }
 0x162   : > { %v243_v22 = vpop.xlane.xlu0 %242 }
 0x163   : > { %v1137_v23 = vmax.f32 %v1134_v21, %v243_v22 }
 0x165   : > { %v245_v24 = vsub.f32 %v1134_v21, %v1137_v23  ;;  %340 = vst.msk [vmem:[#allocation2] sm:$0x3] %vm176_vm2, %v1137_v23  ;;  %250 = vperm.xlu0 %999, %v1137_v23  }
 0x167   : > { %v246_v20 = vmul.f32 1.442695, %v245_v24 }
 0x1e0   : > { %v251_v27 = vpop.permute.xlu0 %250 }
 0x1e1   : > { %v253_v28 = vsub.f32 %v233_v8, %v251_v27 }
 0x1e3   : > { %v254_v29 = vmul.f32 1.442695, %v253_v28 }
 0x1e5   : > { %1001 = vpow2.f32 %v254_v29 }
 0x1f2   : > { %v1146_v32 = vpop.eup %1001 }
 0x1f3   : > { %v271_v34 = vpack.c.bf16 %v1146_v32, %v1146_v32  ;;  %v258_v9 = vsel %vm240_vm3, %v1146_v32, 0.0 }
 0x1f5   : > { %924 = vmatmul.mubr.msk.bf16.vlgmr.msra.gmra.mxu1 %vm289_vm5, %v271_v34 }
 0x1f6   : > { %928 = vmatpush3.bf16.xpose.msra.mxu1 %v364_v33  ;;  %929 = vmatprep.mubr.msk.bf16.mxu1 %vm1050_vm0, %v1049_v0 }
 0x1f7   : > { %939 = vmatprep.subr.bf16.mxu1 %v1049_v0 }
 0x1fd   : > { %930 = vmatmul.mubr.msk.bf16.vlgmr.msra.gmra.mxu1 %vm192_vm1, %v357_v31 }
 0x1fe   : > { %940 = vmatpush3.bf16.xpose.msra.mxu1 %v499_v37  ;;  %941 = vmatprep.mubr.msk.bf16.mxu1 %vm1050_vm0, %v1049_v0 }
 0x1ff   : > { %951 = vmatprep.subr.bf16.mxu1 %v1049_v0 }
 0x205   : > { %942 = vmatmul.mubr.msk.bf16.vlgmr.msra.gmra.mxu1 %vm192_vm1, %v492_v36 }
 0x206   : > { %952 = vmatpush3.bf16.xpose.msra.mxu1 %v634_v39  ;;  %953 = vmatprep.mubr.msk.bf16.mxu1 %vm1050_vm0, %v1049_v0 }
 0x20d   : > { %954 = vmatmul.mubr.msk.bf16.vlgmr.msra.gmra.mxu1 %vm192_vm1, %v627_v40 }
 0x2b5   : > { %v1165_v41 = vpop.f32.mrf.mxu1 }
 0x2b7   : > { %v925_v42 = vpop.f32.mrf.mxu1 }
 0x2b8   : > { %v256_v42 = vld [vmem:[#allocation3] sm:$0x3] }
 0x2b9   : > { %v334_v43 = vpop.f32.mrf.mxu1 }
 0x2bb   : > { %v926_v44 = vpop.f32.mrf.mxu1 }
 0x2bd   : > { %v400_v45 = vpop.f32.mrf.mxu1 }
 0x2be   : > { %v408_v46 = vsel %vm240_vm3, %v400_v45, -inf }
 0x2bf   : > { %409 = vmax.xlane.f32.xlu1 %v408_v46  ;;  %v931_v47 = vpop.f32.mrf.mxu1 }
 0x2c1   : > { %v403_v48 = vpop.f32.mrf.mxu1 }
 0x2c2   : > { %v424_v48 = vld [vmem:[#allocation3 + $0x2] sm:$0x3] }
 0x2c3   : > { %v932_v49 = vpop.f32.mrf.mxu1 }
 0x2c5   : > { %v535_v50 = vpop.f32.mrf.mxu1 }
 0x2c6   : > { %v543_v51 = vsel %vm240_vm3, %v535_v50, -inf }
 0x2c7   : > { %544 = vmax.xlane.f32.xlu0 %v543_v51  ;;  %v943_v52 = vpop.f32.mrf.mxu1 }
 0x2c8   : > { %v264_v52 = vld [vmem:[#allocation4] sm:$0x3] }
 0x2c9   : > { %v538_v53 = vpop.f32.mrf.mxu1 }
 0x2cb   : > { %v944_v54 = vpop.f32.mrf.mxu1 }
 0x2cc   : > { %v559_v54 = vld [vmem:[#allocation3 + $0x4] sm:$0x3] }
 0x2cd   : > { %v670_v55 = vpop.f32.mrf.mxu1 }
 0x2ce   : > { %v678_v56 = vsel %vm240_vm3, %v670_v55, -inf }
 0x2cf   : > { %679 = vmax.xlane.f32.xlu1 %v678_v56  ;;  %v955_v57 = vpop.f32.mrf.mxu1 }
 0x2d1   : > { %v673_v58 = vpop.f32.mrf.mxu1 }
 0x2d3   : > { %v956_v59 = vpop.f32.mrf.mxu1 }
 0x348   : > { %v410_v61 = vpop.xlane.xlu1 %409 }
 0x349   : > { %v1173_v62 = vmax.f32 %v1170_v60, %v410_v61  ;;  %v694_v61 = vld [vmem:[#allocation3 + $0x6] sm:$0x3] }
 0x34b   : > { %v412_v63 = vsub.f32 %v1170_v60, %v1173_v62  ;;  %490 = vst.msk [vmem:[#allocation2 + $0x2] sm:$0x3] %vm176_vm2, %v1173_v62  ;;  %417 = vperm.xlu1 %1000, %v1173_v62  }
 0x34d   : > { %v413_v39 = vmul.f32 1.442695, %v412_v63 }
 0x350   : > { %v545_v2 = vpop.xlane.xlu0 %544 }
 0x351   : > { %v546_v3 = vmax.f32 %v542_v1, %v545_v2 }
 0x353   : > { %v547_v4 = vsub.f32 %v542_v1, %v546_v3  ;;  %625 = vst.msk [vmem:[#allocation2 + $0x4] sm:$0x3] %vm176_vm2, %v546_v3  ;;  %552 = vperm.xlu0 %999, %v546_v3  }
 0x355   : > { %v548_v27 = vmul.f32 1.442695, %v547_v4 }
 0x358   : > { %v680_v6 = vpop.xlane.xlu1 %679 }
 0x359   : > { %v681_v7 = vmax.f32 %v677_v5, %v680_v6  ;;  %v432_v6 = vld [vmem:[#allocation4 + $0x2] sm:$0x3] }
 0x35b   : > { %v682_v8 = vsub.f32 %v677_v5, %v681_v7  ;;  %760 = vst.msk [vmem:[#allocation2 + $0x6] sm:$0x3] %vm176_vm2, %v681_v7  ;;  %687 = vperm.xlu1 %1000, %v681_v7  }
 0x35d   : > { %v683_v24 = vmul.f32 1.442695, %v682_v8 }
 0x35f   : > { %440 = vrot.lane.b32.xlu1 %v1128_v18, %s1058_s23 }
 0x363   : > { %575 = vrot.lane.b32.xlu1 %v1128_v18, %s1059_s24 }
 0x367   : > { %710 = vrot.lane.b32.xlu1 %v1128_v18, %s1060_s25 }
 0x372   : > { %259 = vadd.xlane.f32.xlu0 %v258_v9 }
 0x3c6   : > { %v418_v10 = vpop.permute.xlu1 %417 }
 0x3c7   : > { %v420_v11 = vsub.f32 %v400_v45, %v418_v10 }
 0x3c9   : > { %v421_v12 = vmul.f32 1.442695, %v420_v11 }
 0x3cb   : > { %1003 = vpow2.f32 %v421_v12  ;;  %v567_v12 = vld [vmem:[#allocation4 + $0x4] sm:$0x3] }
 0x3ce   : > { %v553_v13 = vpop.permute.xlu0 %552 }
 0x3cf   : > { %v555_v14 = vsub.f32 %v535_v50, %v553_v13 }
 0x3d1   : > { %v556_v15 = vmul.f32 1.442695, %v555_v14 }
 0x3d3   : > { %1005 = vpow2.f32 %v556_v15 }
 0x3d6   : > { %v688_v16 = vpop.permute.xlu1 %687 }
 0x3d7   : > { %v690_v17 = vsub.f32 %v670_v55, %v688_v16 }
 0x3d8   : > { %v1004_v19 = vpop.eup %1003 }
 0x3d9   : > { %v691_v18 = vmul.f32 1.442695, %v690_v17  ;;  %v426_v22 = vsel %vm240_vm3, %v1004_v19, 0.0  ;;  %v439_v28 = vpack.c.bf16 %v1004_v19, %v1004_v19 }
 0x3da   : > { %427 = vadd.xlane.f32.xlu1 %v426_v22  ;;  %v441_v25 = vpop.permute.xlu1 %440 }
 0x3db   : > { %1007 = vpow2.f32 %v691_v18  ;;  %v446_v26 = vsel %vm293_vm4, %v441_v25, 0  ;;  %v702_v18 = vld [vmem:[#allocation4 + $0x6] sm:$0x3] }
 0x3dc   : > { %934 = vmatpush3.bf16.msra.mxu0 %v446_v26  ;;  %1009 = vpow2.f32 %v246_v20 }
 0x3dd   : > { %945 = vmatprep.subr.bf16.mxu0 %v1049_v0  ;;  %1011 = vpow2.f32 %v548_v27 }
 0x3de   : > { %v576_v29 = vpop.permute.xlu1 %575  ;;  %1013 = vpow2.f32 %v683_v24 }
 0x3df   : > { %936 = vmatmul.mubr.msk.bf16.vlgmr.msra.gmra.mxu0 %vm289_vm5, %v439_v28  ;;  %v581_v21 = vsel %vm293_vm4, %v576_v29, 0  ;;  %1015 = vpow2.f32 %v413_v39 }
 0x3e0   : > { %v1006_v23 = vpop.eup %1005  ;;  %946 = vmatpush3.bf16.msra.mxu0 %v581_v21  ;;  %947 = vmatprep.mubr.msk.bf16.mxu0 %vm1050_vm0, %v1049_v0 }
 0x3e1   : > { %v561_v30 = vsel %vm240_vm3, %v1006_v23, 0.0  ;;  %957 = vmatprep.subr.bf16.mxu0 %v1049_v0  ;;  %v574_v32 = vpack.c.bf16 %v1006_v23, %v1006_v23 }
 0x3e2   : > { %562 = vadd.xlane.f32.xlu0 %v561_v30  ;;  %v711_v31 = vpop.permute.xlu1 %710 }
 0x3e3   : > { %v716_v33 = vsel %vm293_vm4, %v711_v31, 0 }
 0x3e7   : > { %948 = vmatmul.mubr.msk.bf16.vlgmr.msra.gmra.mxu0 %vm289_vm5, %v574_v32 }
 0x3e8   : > { %v1008_v34 = vpop.eup %1007  ;;  %958 = vmatpush3.bf16.msra.mxu0 %v716_v33  ;;  %959 = vmatprep.mubr.msk.bf16.mxu0 %vm1050_vm0, %v1049_v0 }
 0x3e9   : > { %v696_v35 = vsel %vm240_vm3, %v1008_v34, 0.0  ;;  %v1010_v36 = vpop.eup %1009  ;;  %v709_v37 = vpack.c.bf16 %v1008_v34, %v1008_v34 }
 0x3ea   : > { %697 = vadd.xlane.f32.xlu0 %v696_v35  ;;  %v1012_v38 = vpop.eup %1011  ;;  %v257_v43 = vmul.f32 %v1010_v36, %v256_v42 }
 0x3eb   : > { %267 = vperm.xlu1 %1000, %v1010_v36   ;;  %v1014_v40 = vpop.eup %1013  ;;  %v560_v57 = vmul.f32 %v1012_v38, %v559_v54 }
 0x3ec   : > { %v1016_v45 = vpop.eup %1015  ;;  %v695_v62 = vmul.f32 %v1014_v40, %v694_v61 }
 0x3ed   : > { %v425_v49 = vmul.f32 %v1016_v45, %v424_v48 }
 0x3ef   : > { %960 = vmatmul.mubr.msk.bf16.vlgmr.msra.gmra.mxu0 %vm289_vm5, %v709_v37  ;;  %570 = vperm.xlu1 %1000, %v1012_v38  }
 0x3f3   : > { %705 = vperm.xlu1 %1000, %v1014_v40  }
 0x3fb   : > { %v260_v0 = vpop.xlane.xlu0 %259 }
 0x3fc   : > { %v261_v44 = vadd.f32 %v260_v0, %v257_v43 }
 0x3fe   : > { %263 = vst.msk [vmem:[#allocation3] sm:$0x3] %vm176_vm2, %v261_v44 }
 0x400   : > { %435 = vperm.xlu0 %999, %v1016_v45  }
 0x405   : > { %v765_v46 = vld [vmem:[#allocation3] sm:$0x3] }
 0x406   : > { %1017 = vrcp.f32 %v765_v46 }
 0x413   : > { %v1018_v47 = vpop.eup %1017 }
 0x414   : > { %769 = vperm.xlu0 %999, %v1018_v47  }
 0x463   : > { %v428_v50 = vpop.xlane.xlu1 %427 }
 0x464   : > { %v429_v51 = vadd.f32 %v428_v50, %v425_v49 }
 0x466   : > { %430 = vst.msk [vmem:[#allocation3 + $0x2] sm:$0x3] %vm176_vm2, %v429_v51 }
 0x467   : > { %v268_v53 = vpop.permute.xlu1 %267 }
 0x468   : > { %v270_v55 = vmul.f32 %v268_v53, %v264_v52 }
 0x46a   : > { %v337_v56 = vadd.f32 %v1165_v41, %v270_v55 }
 0x46b   : > { %v563_v58 = vpop.xlane.xlu0 %562  ;;  %v571_v13 = vpop.permute.xlu1 %570 }
 0x46c   : > { %339 = vst.msk [vmem:[#allocation4] sm:$0x3] %vm185_vm6, %v337_v56  ;;  %v564_v59 = vadd.f32 %v563_v58, %v560_v57  ;;  %v573_v16 = vmul.f32 %v571_v13, %v567_v12 }
 0x46d   : > { %v774_v60 = vld [vmem:[#allocation3 + $0x2] sm:$0x3] }
 0x46e   : > { %565 = vst.msk [vmem:[#allocation3 + $0x4] sm:$0x3] %vm176_vm2, %v564_v59  ;;  %1019 = vrcp.f32 %v774_v60 }
 0x46f   : > { %v706_v22 = vpop.permute.xlu1 %705 }
 0x470   : > { %v708_v27 = vmul.f32 %v706_v22, %v702_v18 }
 0x473   : > { %v698_v63 = vpop.xlane.xlu0 %697  ;;  %v764_v40 = vld [vmem:[#allocation4] sm:$0x3] }
 0x474   : > { %v699_v1 = vadd.f32 %v698_v63, %v695_v62 }
 0x475   : > { %v783_v2 = vld [vmem:[#allocation3 + $0x4] sm:$0x3] }
 0x476   : > { %700 = vst.msk [vmem:[#allocation3 + $0x6] sm:$0x3] %vm176_vm2, %v699_v1  ;;  %1021 = vrcp.f32 %v783_v2 }
 0x47b   : > { %v1020_v3 = vpop.eup %1019  ;;  %v436_v7 = vpop.permute.xlu0 %435 }
 0x47c   : > { %778 = vperm.xlu1 %1000, %v1020_v3   ;;  %v438_v8 = vmul.f32 %v436_v7, %v432_v6 }
 0x47d   : > { %v792_v41 = vld [vmem:[#allocation3 + $0x6] sm:$0x3] }
 0x47e   : > { %1023 = vrcp.f32 %v792_v41 }
 0x483   : > { %v1022_v4 = vpop.eup %1021 }
 0x484   : > { %787 = vperm.xlu0 %999, %v1022_v4  }
 0x48b   : > { %v1024_v5 = vpop.eup %1023 }
 0x48c   : > { %796 = vperm.xlu1 %1000, %v1024_v5  }
 0x48f   : > { %v770_v33 = vpop.permute.xlu0 %769 }
 0x490   : > { %v772_v43 = vmul.f32 %v770_v33, %v764_v40 }
 0x49f   : > { %v482_v9 = vpop.f32.mrf.mxu0 }
 0x4a0   : > { %v488_v10 = vadd.f32 %v482_v9, %v438_v8 }
 0x4a1   : > { %v937_v11 = vpop.f32.mrf.mxu0 }
 0x4a2   : > { %489 = vst.msk [vmem:[#allocation4 + $0x2] sm:$0x3] %vm185_vm6, %v488_v10 }
 0x4a3   : > { %v485_v14 = vpop.f32.mrf.mxu0 }
 0x4a5   : > { %v938_v15 = vpop.f32.mrf.mxu0 }
 0x4a7   : > { %v617_v17 = vpop.f32.mrf.mxu0 }
 0x4a8   : > { %v623_v19 = vadd.f32 %v617_v17, %v573_v16 }
 0x4a9   : > { %v949_v20 = vpop.f32.mrf.mxu0  ;;  %v773_v31 = vld [vmem:[#allocation4 + $0x2] sm:$0x3] }
 0x4aa   : > { %624 = vst.msk [vmem:[#allocation4 + $0x4] sm:$0x3] %vm185_vm6, %v623_v19 }
 0x4ab   : > { %v620_v25 = vpop.f32.mrf.mxu0 }
 0x4ad   : > { %v950_v26 = vpop.f32.mrf.mxu0 }
 0x4af   : > { %v752_v28 = vpop.f32.mrf.mxu0 }
 0x4b0   : > { %v758_v29 = vadd.f32 %v752_v28, %v708_v27 }
 0x4b1   : > { %v961_v21 = vpop.f32.mrf.mxu0  ;;  %v782_v35 = vld [vmem:[#allocation4 + $0x4] sm:$0x3] }
 0x4b2   : > { %759 = vst.msk [vmem:[#allocation4 + $0x6] sm:$0x3] %vm185_vm6, %v758_v29 }
 0x4b3   : > { %v755_v23 = vpop.f32.mrf.mxu0 }
 0x4b5   : > { %v962_v24 = vpop.f32.mrf.mxu0 }
 0x4b9   : > { %v791_v38 = vld [vmem:[#allocation4 + $0x6] sm:$0x3] }
 0x4f7   : > { %v779_v30 = vpop.permute.xlu1 %778 }
 0x4f8   : > { %v781_v32 = vmul.f32 %v779_v30, %v773_v31 }
 0x4fa   : > { %801 = vrot.lane.b32.xlu0 %v781_v32, %s1060_s25 }
 0x4ff   : > { %v788_v34 = vpop.permute.xlu0 %787 }
 0x500   : > { %v790_v36 = vmul.f32 %v788_v34, %v782_v35 }
 0x502   : > { %805 = vrot.lane.b32.xlu1 %v790_v36, %s1059_s24 }
 0x507   : > { %v797_v37 = vpop.permute.xlu1 %796 }
 0x508   : > { %v799_v39 = vmul.f32 %v797_v37, %v791_v38 }
 0x50a   : > { %809 = vrot.lane.b32.xlu0 %v799_v39, %s1058_s23 }
 0x56c   : > { %v802_v42 = vpop.permute.xlu0 %801 }
 0x56d   : > { %v812_v44 = vsel %vm192_vm1, %v772_v43, %v802_v42 }
 0x574   : > { %v806_v0 = vpop.permute.xlu1 %805 }
 0x575   : > { %v814_v45 = vsel %vm813_vm7, %v812_v44, %v806_v0 }
 0x57c   : > { %v810_v46 = vpop.permute.xlu0 %809 }
 0x57d   : > { %v816_v47 = vsel %vm815_vm8, %v814_v45, %v810_v46 }
 0x57e   : > { %v817_v48 = vpack.c.bf16 %v816_v47, %v816_v47 }
 0x580   : > { %819 = vst.msk [vmem:[%s170_s28] sm:$0x1] %vm818_vm9, %v817_v48 }
 0x581 PF: > { %s12_s11 = sadd.s32 1, %s1047_s11   ;;  %s1248_s9 = smov %s1043_s10 }
 0x582   : > { %p9_p5 = scmp.ge.s32.totalorder %s12_s11, 4   ;;  %s1249_s10 = smov %s1251_s12 }
 0x584   :  { %11 = sbr.rel (!%p9_p5) target bundleno = 2 (0x2), region = 78 }

</bundles_post_ra>
